<compile_context>
chip_gen: v5e
topology: v5e:2x2
jax: 0.10.0
libtpu: 0.0.40
codegen_flags: <defaults>
</compile_context>

<pallas_src>
import functools

import jax
import jax.numpy as jnp
from jax.experimental import pallas as pl
from jax.experimental.pallas import tpu as pltpu


def _double_conv_kernel(x_ref, m_ref, w1_ref, b1_ref, w2_ref, b2_ref, o_ref, *,
                        tile_rows, wp, l1p, front_pad, compute_dtype):
    """One (batch, row-tile) step of conv3x3->BN->ReLU->conv3x3->BN->ReLU.

    x_ref  : (L_in, Cin)   flattened, zero-padded input band (rows*Wp + slack)
    m_ref  : (L1p, 1)      validity mask for the intermediate (0 = conv2 pad)
    w1_ref : (3,3,Cin,Cmid)  BN-scale-folded HWIO weights
    b1_ref : (1, Cmid)       folded BN bias
    w2_ref : (3,3,Cmid,Cout)
    b2_ref : (1, Cout)
    o_ref  : (TH*Wp, Cout)   flattened output (padding columns dropped outside)
    """
    l2 = tile_rows * wp
    cmid = w1_ref.shape[-1]
    cout = w2_ref.shape[-1]

    # ---- conv1: 9 taps = 9 contiguous offset-window matmuls on the MXU ----
    # bias seeds the accumulator (no separate scale/add epilogue).
    acc1 = jnp.broadcast_to(b1_ref[...], (l1p, cmid)).astype(jnp.float32)
    for kh in range(3):
        for kw in range(3):
            off = kh * wp + kw + front_pad - 2
            xs = x_ref[pl.ds(off, l1p), :].astype(compute_dtype)
            acc1 = acc1 + jnp.dot(xs, w1_ref[kh, kw],
                                  preferred_element_type=jnp.float32)
    # ReLU, then zero the conv2 padding columns / out-of-image halo rows.
    y1 = (jnp.maximum(acc1, 0.0) * m_ref[...]).astype(compute_dtype)

    # ---- conv2: same tap structure on the flattened intermediate ----
    acc2 = jnp.broadcast_to(b2_ref[...], (l2, cout)).astype(jnp.float32)
    for kh in range(3):
        for kw in range(3):
            off = kh * wp + kw
            ys = y1[off:off + l2, :]
            acc2 = acc2 + jnp.dot(ys, w2_ref[kh, kw],
                                  preferred_element_type=jnp.float32)
    o_ref[...] = jnp.maximum(acc2, 0.0).astype(o_ref.dtype)


def _auto_tile_rows(H, Wp, cin, cmid, cout, budget_bytes=6 << 20):
    """Largest row tile TH dividing H whose per-step VMEM estimate fits budget
    (conservative so it also holds on v7x's 64 MiB VMEM with double buffering)."""
    best = 1
    for th in range(1, H + 1):
        if H % th:
            continue
        est = 4 * (2 * (th + 4) * Wp * cin      # double-buffered input band
                   + 2 * (th + 2) * Wp * cmid   # acc1 + masked intermediate
                   + 3 * th * Wp * cout)        # acc2 + double-buffered output
        if est <= budget_bytes:
            best = th
    return best


def double_conv_pallas(x_nchw, w1_oihw, w2_oihw, scale1, bias1, scale2, bias2,
                       *, tile_rows=None, compute_dtype=jnp.float32):
    """DoubleConv forward. x_nchw: (N, Cin, H, W) f32 -> (N, Cout, H, W) f32."""
    N, Cin, H, W = x_nchw.shape
    Cmid = w1_oihw.shape[0]
    Cout = w2_oihw.shape[0]

    Wp = ((W + 2 + 7) // 8) * 8                 # layout-friendly padded row width
    if tile_rows is None:
        TH = _auto_tile_rows(H, Wp, Cin, Cmid, Cout)
    else:
        TH = max(d for d in range(1, min(tile_rows, H) + 1) if H % d == 0)
    T = H // TH

    FRONT, BACK = 8, 16                          # slack so all tap windows stay in-bounds
    L_in = (TH + 4) * Wp + FRONT + BACK          # flattened input band per tile
    L1p = (((TH + 2) * Wp + 2) + 7) // 8 * 8     # flattened intermediate (+halo rows)
    L2 = TH * Wp                                 # flattened output rows per tile

    # ---- fold BN (inference form) into conv weights / biases ----
    w1 = (jnp.transpose(w1_oihw, (2, 3, 1, 0))            # OIHW -> HWIO
          * scale1.reshape(1, 1, 1, Cmid)).astype(compute_dtype)
    w2 = (jnp.transpose(w2_oihw, (2, 3, 1, 0))
          * scale2.reshape(1, 1, 1, Cout)).astype(compute_dtype)
    b1 = bias1.reshape(1, Cmid).astype(jnp.float32)
    b2 = bias2.reshape(1, Cout).astype(jnp.float32)

    # ---- NCHW -> NHWC, zero-pad, overlapping row bands, flatten per tile ----
    x = jnp.transpose(x_nchw, (0, 2, 3, 1)).astype(jnp.float32)
    xp = jnp.pad(x, ((0, 0), (2, 2), (1, Wp - W - 1), (0, 0)))
    x_tiles = jnp.stack([xp[:, t * TH: t * TH + TH + 4] for t in range(T)],
                        axis=1)                            # (N, T, TH+4, Wp, Cin)
    x_tiles = x_tiles.reshape(N, T, (TH + 4) * Wp, Cin)
    x_tiles = jnp.pad(x_tiles, ((0, 0), (0, 0), (FRONT, BACK), (0, 0)))

    # ---- per-tile validity mask for the intermediate ----
    # position j of the intermediate corresponds to flattened (row, col) = divmod(j-1, Wp);
    # keep only in-image rows and columns 1..W (everything else is conv2 zero padding).
    j = jnp.arange(L1p)
    mid_pos = j - 1
    col = mid_pos % Wp
    row = mid_pos // Wp
    col_ok = ((mid_pos >= 0) & (mid_pos < (TH + 2) * Wp)
              & (col >= 1) & (col <= W))
    grow = jnp.arange(T)[:, None] * TH + row[None, :] - 1   # global image row
    mask = (col_ok[None, :] & (grow >= 0) & (grow < H)).astype(jnp.float32)
    mask = mask[:, :, None]                                  # (T, L1p, 1)

    kernel = functools.partial(_double_conv_kernel, tile_rows=TH, wp=Wp,
                               l1p=L1p, front_pad=FRONT,
                               compute_dtype=compute_dtype)

    out = pl.pallas_call(
        kernel,
        out_shape=jax.ShapeDtypeStruct((N, T, L2, Cout), jnp.float32),
        grid=(N, T),
        in_specs=[
            pl.BlockSpec((None, None, L_in, Cin), lambda n, t: (n, t, 0, 0)),
            pl.BlockSpec((None, L1p, 1), lambda n, t: (t, 0, 0)),
            pl.BlockSpec((3, 3, Cin, Cmid), lambda n, t: (0, 0, 0, 0)),
            pl.BlockSpec((1, Cmid), lambda n, t: (0, 0)),
            pl.BlockSpec((3, 3, Cmid, Cout), lambda n, t: (0, 0, 0, 0)),
            pl.BlockSpec((1, Cout), lambda n, t: (0, 0)),
        ],
        out_specs=pl.BlockSpec((None, None, L2, Cout), lambda n, t: (n, t, 0, 0)),
        compiler_params=pltpu.CompilerParams(
            dimension_semantics=("parallel", "parallel")),
    )(x_tiles, mask, w1, b1, w2, b2)

    # drop the padding columns, restore NCHW
    out = out.reshape(N, T, TH, Wp, Cout)[:, :, :, 1:W + 1, :]
    out = out.reshape(N, H, W, Cout)
    return jnp.transpose(out, (0, 3, 1, 2))


def _reference_double_conv(x, w1, w2, s1, b1, s2, b2):
    """Pure-JAX reference (lax.conv) for correctness checking."""
    def cbr(x, w, s, b):
        y = jax.lax.conv_general_dilated(
            x, w, window_strides=(1, 1), padding=((1, 1), (1, 1)),
            dimension_numbers=("NCHW", "OIHW", "NCHW"))
        y = y * s[None, :, None, None] + b[None, :, None, None]
        return jnp.maximum(y, 0.0)
    return cbr(cbr(x, w1, s1, b1), w2, s2, b2)


if __name__ == "__main__":
    key = jax.random.PRNGKey(0)
    kx, k1, k2 = jax.random.split(key, 3)

    N, Cin, H, W = 2, 4, 16, 16
    Cout = 8
    Cmid = Cout  # DoubleConv default: mid_channels = out_channels

    x = jax.random.normal(kx, (N, Cin, H, W), dtype=jnp.float32)

    # Conv weights (bias=False), PyTorch OIHW layout.
    w1 = jax.random.normal(k1, (Cmid, Cin, 3, 3), dtype=jnp.float32) * 0.1
    w2 = jax.random.normal(k2, (Cout, Cmid, 3, 3), dtype=jnp.float32) * 0.1

    # BatchNorm2d defaults at init: gamma=1, beta=0, mean=0, var=1, eps=1e-5.
    eps = 1e-5
    gamma1 = jnp.ones((Cmid,), jnp.float32)
    beta1 = jnp.zeros((Cmid,), jnp.float32)
    mean1 = jnp.zeros((Cmid,), jnp.float32)
    var1 = jnp.ones((Cmid,), jnp.float32)
    scale1 = gamma1 / jnp.sqrt(var1 + eps)
    bias1 = beta1 - mean1 * scale1

    gamma2 = jnp.ones((Cout,), jnp.float32)
    beta2 = jnp.zeros((Cout,), jnp.float32)
    mean2 = jnp.zeros((Cout,), jnp.float32)
    var2 = jnp.ones((Cout,), jnp.float32)
    scale2 = gamma2 / jnp.sqrt(var2 + eps)
    bias2 = beta2 - mean2 * scale2

    ref = _reference_double_conv(x, w1, w2, scale1, bias1, scale2, bias2)

    # f32 path, 2 row tiles per image (exercises the halo / spatial tiling).
    out = double_conv_pallas(x, w1, w2, scale1, bias1, scale2, bias2,
                             tile_rows=8)
    out = jax.block_until_ready(out)
    assert out.shape == (N, Cout, H, W), out.shape
    assert jnp.allclose(out, ref, atol=1e-4, rtol=1e-4), (
        float(jnp.max(jnp.abs(out - ref))))

    # bf16 MXU-operand path (v6e/v7x optimization), f32 accumulation.
    out_bf16 = double_conv_pallas(x, w1, w2, scale1, bias1, scale2, bias2,
                                  tile_rows=8, compute_dtype=jnp.bfloat16)
    out_bf16 = jax.block_until_ready(out_bf16)
    assert jnp.allclose(out_bf16, ref, atol=1e-1, rtol=1e-1), (
        float(jnp.max(jnp.abs(out_bf16 - ref))))

    print("KERNEL_OK")
</pallas_src>

<mosaic_0001>
module attributes {stable_mosaic.version = 11 : i64} {
  func.func @_double_conv_kernel(%arg0: i32, %arg1: i32, %arg2: memref<1x1x312x4xf32, #tpu.memory_space<vmem>>, %arg3: memref<1x248x1xf32, #tpu.memory_space<vmem>>, %arg4: memref<3x3x4x8xf32, #tpu.memory_space<vmem>>, %arg5: memref<1x8xf32, #tpu.memory_space<vmem>>, %arg6: memref<3x3x8x8xf32, #tpu.memory_space<vmem>>, %arg7: memref<1x8xf32, #tpu.memory_space<vmem>>, %arg8: memref<1x1x192x8xf32, #tpu.memory_space<vmem>>) attributes {dimension_semantics = [#tpu.dimension_semantics<parallel>, #tpu.dimension_semantics<parallel>], iteration_bounds = array<i64: 2, 2>, scalar_prefetch = 0 : i64, scratch_operands = 0 : i64, tpu.core_type = #tpu.core_type<tc>, window_params = [{transform_indices = @transform_0, window_bounds = array<i64: 1, 1, 312, 4>}, {transform_indices = @transform_1, window_bounds = array<i64: 1, 248, 1>}, {pipeline_mode = #tpu.pipeline_mode<synchronous>, transform_indices = @transform_2, window_bounds = array<i64: 3, 3, 4, 8>}, {pipeline_mode = #tpu.pipeline_mode<synchronous>, transform_indices = @transform_3, window_bounds = array<i64: 1, 8>}, {pipeline_mode = #tpu.pipeline_mode<synchronous>, transform_indices = @transform_4, window_bounds = array<i64: 3, 3, 8, 8>}, {pipeline_mode = #tpu.pipeline_mode<synchronous>, transform_indices = @transform_5, window_bounds = array<i64: 1, 8>}, {transform_indices = @transform_6, window_bounds = array<i64: 1, 1, 192, 8>}]} {
    %c0 = arith.constant 0 : index
    %c0_0 = arith.constant 0 : index
    %0 = vector.load %arg5[%c0, %c0_0] : memref<1x8xf32, #tpu.memory_space<vmem>>, vector<1x8xf32>
    %1 = vector.shape_cast %0 : vector<1x8xf32> to vector<1x8xf32>
    %2 = vector.broadcast %1 : vector<1x8xf32> to vector<248x8xf32>
    %c0_1 = arith.constant 0 : index
    %c0_2 = arith.constant 0 : index
    %c6 = arith.constant 6 : index
    %c0_3 = arith.constant 0 : index
    %3 = vector.load %arg2[%c0_1, %c0_2, %c6, %c0_3] : memref<1x1x312x4xf32, #tpu.memory_space<vmem>>, vector<1x1x248x4xf32>
    %4 = vector.shape_cast %3 : vector<1x1x248x4xf32> to vector<248x4xf32>
    %c0_4 = arith.constant 0 : index
    %c0_5 = arith.constant 0 : index
    %c0_6 = arith.constant 0 : index
    %c0_7 = arith.constant 0 : index
    %5 = vector.load %arg4[%c0_4, %c0_5, %c0_6, %c0_7] : memref<3x3x4x8xf32, #tpu.memory_space<vmem>>, vector<1x1x4x8xf32>
    %6 = vector.shape_cast %5 : vector<1x1x4x8xf32> to vector<4x8xf32>
    %cst = arith.constant dense<0.000000e+00> : vector<248x8xf32>
    %7 = tpu.matmul %4, %6, %cst {dimension_numbers = #tpu.dot_dimension_numbers<[1], [0], [0], [1], [0, 0, 1, 1], [], []>} : vector<248x4xf32>, vector<4x8xf32>, vector<248x8xf32> -> vector<248x8xf32>
    %8 = arith.addf %2, %7 : vector<248x8xf32>
    %c0_8 = arith.constant 0 : index
    %c0_9 = arith.constant 0 : index
    %c7 = arith.constant 7 : index
    %c0_10 = arith.constant 0 : index
    %9 = vector.load %arg2[%c0_8, %c0_9, %c7, %c0_10] : memref<1x1x312x4xf32, #tpu.memory_space<vmem>>, vector<1x1x248x4xf32>
    %10 = vector.shape_cast %9 : vector<1x1x248x4xf32> to vector<248x4xf32>
    %c0_11 = arith.constant 0 : index
    %c1 = arith.constant 1 : index
    %c0_12 = arith.constant 0 : index
    %c0_13 = arith.constant 0 : index
    %11 = vector.load %arg4[%c0_11, %c1, %c0_12, %c0_13] : memref<3x3x4x8xf32, #tpu.memory_space<vmem>>, vector<1x1x4x8xf32>
    %12 = vector.shape_cast %11 : vector<1x1x4x8xf32> to vector<4x8xf32>
    %cst_14 = arith.constant dense<0.000000e+00> : vector<248x8xf32>
    %13 = tpu.matmul %10, %12, %cst_14 {dimension_numbers = #tpu.dot_dimension_numbers<[1], [0], [0], [1], [0, 0, 1, 1], [], []>} : vector<248x4xf32>, vector<4x8xf32>, vector<248x8xf32> -> vector<248x8xf32>
    %14 = arith.addf %8, %13 : vector<248x8xf32>
    %c0_15 = arith.constant 0 : index
    %c0_16 = arith.constant 0 : index
    %c8 = arith.constant 8 : index
    %c0_17 = arith.constant 0 : index
    %15 = vector.load %arg2[%c0_15, %c0_16, %c8, %c0_17] : memref<1x1x312x4xf32, #tpu.memory_space<vmem>>, vector<1x1x248x4xf32>
    %16 = vector.shape_cast %15 : vector<1x1x248x4xf32> to vector<248x4xf32>
    %c0_18 = arith.constant 0 : index
    %c2 = arith.constant 2 : index
    %c0_19 = arith.constant 0 : index
    %c0_20 = arith.constant 0 : index
    %17 = vector.load %arg4[%c0_18, %c2, %c0_19, %c0_20] : memref<3x3x4x8xf32, #tpu.memory_space<vmem>>, vector<1x1x4x8xf32>
    %18 = vector.shape_cast %17 : vector<1x1x4x8xf32> to vector<4x8xf32>
    %cst_21 = arith.constant dense<0.000000e+00> : vector<248x8xf32>
    %19 = tpu.matmul %16, %18, %cst_21 {dimension_numbers = #tpu.dot_dimension_numbers<[1], [0], [0], [1], [0, 0, 1, 1], [], []>} : vector<248x4xf32>, vector<4x8xf32>, vector<248x8xf32> -> vector<248x8xf32>
    %20 = arith.addf %14, %19 : vector<248x8xf32>
    %c0_22 = arith.constant 0 : index
    %c0_23 = arith.constant 0 : index
    %c30 = arith.constant 30 : index
    %c0_24 = arith.constant 0 : index
    %21 = vector.load %arg2[%c0_22, %c0_23, %c30, %c0_24] : memref<1x1x312x4xf32, #tpu.memory_space<vmem>>, vector<1x1x248x4xf32>
    %22 = vector.shape_cast %21 : vector<1x1x248x4xf32> to vector<248x4xf32>
    %c1_25 = arith.constant 1 : index
    %c0_26 = arith.constant 0 : index
    %c0_27 = arith.constant 0 : index
    %c0_28 = arith.constant 0 : index
    %23 = vector.load %arg4[%c1_25, %c0_26, %c0_27, %c0_28] : memref<3x3x4x8xf32, #tpu.memory_space<vmem>>, vector<1x1x4x8xf32>
    %24 = vector.shape_cast %23 : vector<1x1x4x8xf32> to vector<4x8xf32>
    %cst_29 = arith.constant dense<0.000000e+00> : vector<248x8xf32>
    %25 = tpu.matmul %22, %24, %cst_29 {dimension_numbers = #tpu.dot_dimension_numbers<[1], [0], [0], [1], [0, 0, 1, 1], [], []>} : vector<248x4xf32>, vector<4x8xf32>, vector<248x8xf32> -> vector<248x8xf32>
    %26 = arith.addf %20, %25 : vector<248x8xf32>
    %c0_30 = arith.constant 0 : index
    %c0_31 = arith.constant 0 : index
    %c31 = arith.constant 31 : index
    %c0_32 = arith.constant 0 : index
    %27 = vector.load %arg2[%c0_30, %c0_31, %c31, %c0_32] : memref<1x1x312x4xf32, #tpu.memory_space<vmem>>, vector<1x1x248x4xf32>
    %28 = vector.shape_cast %27 : vector<1x1x248x4xf32> to vector<248x4xf32>
    %c1_33 = arith.constant 1 : index
    %c1_34 = arith.constant 1 : index
    %c0_35 = arith.constant 0 : index
    %c0_36 = arith.constant 0 : index
    %29 = vector.load %arg4[%c1_33, %c1_34, %c0_35, %c0_36] : memref<3x3x4x8xf32, #tpu.memory_space<vmem>>, vector<1x1x4x8xf32>
    %30 = vector.shape_cast %29 : vector<1x1x4x8xf32> to vector<4x8xf32>
    %cst_37 = arith.constant dense<0.000000e+00> : vector<248x8xf32>
    %31 = tpu.matmul %28, %30, %cst_37 {dimension_numbers = #tpu.dot_dimension_numbers<[1], [0], [0], [1], [0, 0, 1, 1], [], []>} : vector<248x4xf32>, vector<4x8xf32>, vector<248x8xf32> -> vector<248x8xf32>
    %32 = arith.addf %26, %31 : vector<248x8xf32>
    %c0_38 = arith.constant 0 : index
    %c0_39 = arith.constant 0 : index
    %c32 = arith.constant 32 : index
    %c0_40 = arith.constant 0 : index
    %33 = vector.load %arg2[%c0_38, %c0_39, %c32, %c0_40] : memref<1x1x312x4xf32, #tpu.memory_space<vmem>>, vector<1x1x248x4xf32>
    %34 = vector.shape_cast %33 : vector<1x1x248x4xf32> to vector<248x4xf32>
    %c1_41 = arith.constant 1 : index
    %c2_42 = arith.constant 2 : index
    %c0_43 = arith.constant 0 : index
    %c0_44 = arith.constant 0 : index
    %35 = vector.load %arg4[%c1_41, %c2_42, %c0_43, %c0_44] : memref<3x3x4x8xf32, #tpu.memory_space<vmem>>, vector<1x1x4x8xf32>
    %36 = vector.shape_cast %35 : vector<1x1x4x8xf32> to vector<4x8xf32>
    %cst_45 = arith.constant dense<0.000000e+00> : vector<248x8xf32>
    %37 = tpu.matmul %34, %36, %cst_45 {dimension_numbers = #tpu.dot_dimension_numbers<[1], [0], [0], [1], [0, 0, 1, 1], [], []>} : vector<248x4xf32>, vector<4x8xf32>, vector<248x8xf32> -> vector<248x8xf32>
    %38 = arith.addf %32, %37 : vector<248x8xf32>
    %c0_46 = arith.constant 0 : index
    %c0_47 = arith.constant 0 : index
    %c54 = arith.constant 54 : index
    %c0_48 = arith.constant 0 : index
    %39 = vector.load %arg2[%c0_46, %c0_47, %c54, %c0_48] : memref<1x1x312x4xf32, #tpu.memory_space<vmem>>, vector<1x1x248x4xf32>
    %40 = vector.shape_cast %39 : vector<1x1x248x4xf32> to vector<248x4xf32>
    %c2_49 = arith.constant 2 : index
    %c0_50 = arith.constant 0 : index
    %c0_51 = arith.constant 0 : index
    %c0_52 = arith.constant 0 : index
    %41 = vector.load %arg4[%c2_49, %c0_50, %c0_51, %c0_52] : memref<3x3x4x8xf32, #tpu.memory_space<vmem>>, vector<1x1x4x8xf32>
    %42 = vector.shape_cast %41 : vector<1x1x4x8xf32> to vector<4x8xf32>
    %cst_53 = arith.constant dense<0.000000e+00> : vector<248x8xf32>
    %43 = tpu.matmul %40, %42, %cst_53 {dimension_numbers = #tpu.dot_dimension_numbers<[1], [0], [0], [1], [0, 0, 1, 1], [], []>} : vector<248x4xf32>, vector<4x8xf32>, vector<248x8xf32> -> vector<248x8xf32>
    %44 = arith.addf %38, %43 : vector<248x8xf32>
    %c0_54 = arith.constant 0 : index
    %c0_55 = arith.constant 0 : index
    %c55 = arith.constant 55 : index
    %c0_56 = arith.constant 0 : index
    %45 = vector.load %arg2[%c0_54, %c0_55, %c55, %c0_56] : memref<1x1x312x4xf32, #tpu.memory_space<vmem>>, vector<1x1x248x4xf32>
    %46 = vector.shape_cast %45 : vector<1x1x248x4xf32> to vector<248x4xf32>
    %c2_57 = arith.constant 2 : index
    %c1_58 = arith.constant 1 : index
    %c0_59 = arith.constant 0 : index
    %c0_60 = arith.constant 0 : index
    %47 = vector.load %arg4[%c2_57, %c1_58, %c0_59, %c0_60] : memref<3x3x4x8xf32, #tpu.memory_space<vmem>>, vector<1x1x4x8xf32>
    %48 = vector.shape_cast %47 : vector<1x1x4x8xf32> to vector<4x8xf32>
    %cst_61 = arith.constant dense<0.000000e+00> : vector<248x8xf32>
    %49 = tpu.matmul %46, %48, %cst_61 {dimension_numbers = #tpu.dot_dimension_numbers<[1], [0], [0], [1], [0, 0, 1, 1], [], []>} : vector<248x4xf32>, vector<4x8xf32>, vector<248x8xf32> -> vector<248x8xf32>
    %50 = arith.addf %44, %49 : vector<248x8xf32>
    %c0_62 = arith.constant 0 : index
    %c0_63 = arith.constant 0 : index
    %c56 = arith.constant 56 : index
    %c0_64 = arith.constant 0 : index
    %51 = vector.load %arg2[%c0_62, %c0_63, %c56, %c0_64] : memref<1x1x312x4xf32, #tpu.memory_space<vmem>>, vector<1x1x248x4xf32>
    %52 = vector.shape_cast %51 : vector<1x1x248x4xf32> to vector<248x4xf32>
    %c2_65 = arith.constant 2 : index
    %c2_66 = arith.constant 2 : index
    %c0_67 = arith.constant 0 : index
    %c0_68 = arith.constant 0 : index
    %53 = vector.load %arg4[%c2_65, %c2_66, %c0_67, %c0_68] : memref<3x3x4x8xf32, #tpu.memory_space<vmem>>, vector<1x1x4x8xf32>
    %54 = vector.shape_cast %53 : vector<1x1x4x8xf32> to vector<4x8xf32>
    %cst_69 = arith.constant dense<0.000000e+00> : vector<248x8xf32>
    %55 = tpu.matmul %52, %54, %cst_69 {dimension_numbers = #tpu.dot_dimension_numbers<[1], [0], [0], [1], [0, 0, 1, 1], [], []>} : vector<248x4xf32>, vector<4x8xf32>, vector<248x8xf32> -> vector<248x8xf32>
    %56 = arith.addf %50, %55 : vector<248x8xf32>
    %cst_70 = arith.constant 0.000000e+00 : f32
    %57 = vector.broadcast %cst_70 : f32 to vector<248x8xf32>
    %58 = arith.maximumf %56, %57 : vector<248x8xf32>
    %c0_71 = arith.constant 0 : index
    %c0_72 = arith.constant 0 : index
    %c0_73 = arith.constant 0 : index
    %59 = vector.load %arg3[%c0_71, %c0_72, %c0_73] : memref<1x248x1xf32, #tpu.memory_space<vmem>>, vector<1x248x1xf32>
    %60 = vector.shape_cast %59 : vector<1x248x1xf32> to vector<248x1xf32>
    %61 = vector.broadcast %60 : vector<248x1xf32> to vector<248x8xf32>
    %62 = arith.mulf %58, %61 : vector<248x8xf32>
    %c0_74 = arith.constant 0 : index
    %c0_75 = arith.constant 0 : index
    %63 = vector.load %arg7[%c0_74, %c0_75] : memref<1x8xf32, #tpu.memory_space<vmem>>, vector<1x8xf32>
    %64 = vector.shape_cast %63 : vector<1x8xf32> to vector<1x8xf32>
    %65 = vector.broadcast %64 : vector<1x8xf32> to vector<192x8xf32>
    %66 = vector.extract_strided_slice %62 {offsets = [0, 0], sizes = [192, 8], strides = [1, 1]} : vector<248x8xf32> to vector<192x8xf32>
    %c0_76 = arith.constant 0 : index
    %c0_77 = arith.constant 0 : index
    %c0_78 = arith.constant 0 : index
    %c0_79 = arith.constant 0 : index
    %67 = vector.load %arg6[%c0_76, %c0_77, %c0_78, %c0_79] : memref<3x3x8x8xf32, #tpu.memory_space<vmem>>, vector<1x1x8x8xf32>
    %68 = vector.shape_cast %67 : vector<1x1x8x8xf32> to vector<8x8xf32>
    %cst_80 = arith.constant dense<0.000000e+00> : vector<192x8xf32>
    %69 = tpu.matmul %66, %68, %cst_80 {dimension_numbers = #tpu.dot_dimension_numbers<[1], [0], [0], [1], [0, 0, 1, 1], [], []>} : vector<192x8xf32>, vector<8x8xf32>, vector<192x8xf32> -> vector<192x8xf32>
    %70 = arith.addf %65, %69 : vector<192x8xf32>
    %71 = vector.extract_strided_slice %62 {offsets = [1, 0], sizes = [192, 8], strides = [1, 1]} : vector<248x8xf32> to vector<192x8xf32>
    %c0_81 = arith.constant 0 : index
    %c1_82 = arith.constant 1 : index
    %c0_83 = arith.constant 0 : index
    %c0_84 = arith.constant 0 : index
    %72 = vector.load %arg6[%c0_81, %c1_82, %c0_83, %c0_84] : memref<3x3x8x8xf32, #tpu.memory_space<vmem>>, vector<1x1x8x8xf32>
    %73 = vector.shape_cast %72 : vector<1x1x8x8xf32> to vector<8x8xf32>
    %cst_85 = arith.constant dense<0.000000e+00> : vector<192x8xf32>
    %74 = tpu.matmul %71, %73, %cst_85 {dimension_numbers = #tpu.dot_dimension_numbers<[1], [0], [0], [1], [0, 0, 1, 1], [], []>} : vector<192x8xf32>, vector<8x8xf32>, vector<192x8xf32> -> vector<192x8xf32>
    %75 = arith.addf %70, %74 : vector<192x8xf32>
    %76 = vector.extract_strided_slice %62 {offsets = [2, 0], sizes = [192, 8], strides = [1, 1]} : vector<248x8xf32> to vector<192x8xf32>
    %c0_86 = arith.constant 0 : index
    %c2_87 = arith.constant 2 : index
    %c0_88 = arith.constant 0 : index
    %c0_89 = arith.constant 0 : index
    %77 = vector.load %arg6[%c0_86, %c2_87, %c0_88, %c0_89] : memref<3x3x8x8xf32, #tpu.memory_space<vmem>>, vector<1x1x8x8xf32>
    %78 = vector.shape_cast %77 : vector<1x1x8x8xf32> to vector<8x8xf32>
    %cst_90 = arith.constant dense<0.000000e+00> : vector<192x8xf32>
    %79 = tpu.matmul %76, %78, %cst_90 {dimension_numbers = #tpu.dot_dimension_numbers<[1], [0], [0], [1], [0, 0, 1, 1], [], []>} : vector<192x8xf32>, vector<8x8xf32>, vector<192x8xf32> -> vector<192x8xf32>
    %80 = arith.addf %75, %79 : vector<192x8xf32>
    %81 = vector.extract_strided_slice %62 {offsets = [24, 0], sizes = [192, 8], strides = [1, 1]} : vector<248x8xf32> to vector<192x8xf32>
    %c1_91 = arith.constant 1 : index
    %c0_92 = arith.constant 0 : index
    %c0_93 = arith.constant 0 : index
    %c0_94 = arith.constant 0 : index
    %82 = vector.load %arg6[%c1_91, %c0_92, %c0_93, %c0_94] : memref<3x3x8x8xf32, #tpu.memory_space<vmem>>, vector<1x1x8x8xf32>
    %83 = vector.shape_cast %82 : vector<1x1x8x8xf32> to vector<8x8xf32>
    %cst_95 = arith.constant dense<0.000000e+00> : vector<192x8xf32>
    %84 = tpu.matmul %81, %83, %cst_95 {dimension_numbers = #tpu.dot_dimension_numbers<[1], [0], [0], [1], [0, 0, 1, 1], [], []>} : vector<192x8xf32>, vector<8x8xf32>, vector<192x8xf32> -> vector<192x8xf32>
    %85 = arith.addf %80, %84 : vector<192x8xf32>
    %86 = vector.extract_strided_slice %62 {offsets = [25, 0], sizes = [192, 8], strides = [1, 1]} : vector<248x8xf32> to vector<192x8xf32>
    %c1_96 = arith.constant 1 : index
    %c1_97 = arith.constant 1 : index
    %c0_98 = arith.constant 0 : index
    %c0_99 = arith.constant 0 : index
    %87 = vector.load %arg6[%c1_96, %c1_97, %c0_98, %c0_99] : memref<3x3x8x8xf32, #tpu.memory_space<vmem>>, vector<1x1x8x8xf32>
    %88 = vector.shape_cast %87 : vector<1x1x8x8xf32> to vector<8x8xf32>
    %cst_100 = arith.constant dense<0.000000e+00> : vector<192x8xf32>
    %89 = tpu.matmul %86, %88, %cst_100 {dimension_numbers = #tpu.dot_dimension_numbers<[1], [0], [0], [1], [0, 0, 1, 1], [], []>} : vector<192x8xf32>, vector<8x8xf32>, vector<192x8xf32> -> vector<192x8xf32>
    %90 = arith.addf %85, %89 : vector<192x8xf32>
    %91 = vector.extract_strided_slice %62 {offsets = [26, 0], sizes = [192, 8], strides = [1, 1]} : vector<248x8xf32> to vector<192x8xf32>
    %c1_101 = arith.constant 1 : index
    %c2_102 = arith.constant 2 : index
    %c0_103 = arith.constant 0 : index
    %c0_104 = arith.constant 0 : index
    %92 = vector.load %arg6[%c1_101, %c2_102, %c0_103, %c0_104] : memref<3x3x8x8xf32, #tpu.memory_space<vmem>>, vector<1x1x8x8xf32>
    %93 = vector.shape_cast %92 : vector<1x1x8x8xf32> to vector<8x8xf32>
    %cst_105 = arith.constant dense<0.000000e+00> : vector<192x8xf32>
    %94 = tpu.matmul %91, %93, %cst_105 {dimension_numbers = #tpu.dot_dimension_numbers<[1], [0], [0], [1], [0, 0, 1, 1], [], []>} : vector<192x8xf32>, vector<8x8xf32>, vector<192x8xf32> -> vector<192x8xf32>
    %95 = arith.addf %90, %94 : vector<192x8xf32>
    %96 = vector.extract_strided_slice %62 {offsets = [48, 0], sizes = [192, 8], strides = [1, 1]} : vector<248x8xf32> to vector<192x8xf32>
    %c2_106 = arith.constant 2 : index
    %c0_107 = arith.constant 0 : index
    %c0_108 = arith.constant 0 : index
    %c0_109 = arith.constant 0 : index
    %97 = vector.load %arg6[%c2_106, %c0_107, %c0_108, %c0_109] : memref<3x3x8x8xf32, #tpu.memory_space<vmem>>, vector<1x1x8x8xf32>
    %98 = vector.shape_cast %97 : vector<1x1x8x8xf32> to vector<8x8xf32>
    %cst_110 = arith.constant dense<0.000000e+00> : vector<192x8xf32>
    %99 = tpu.matmul %96, %98, %cst_110 {dimension_numbers = #tpu.dot_dimension_numbers<[1], [0], [0], [1], [0, 0, 1, 1], [], []>} : vector<192x8xf32>, vector<8x8xf32>, vector<192x8xf32> -> vector<192x8xf32>
    %100 = arith.addf %95, %99 : vector<192x8xf32>
    %101 = vector.extract_strided_slice %62 {offsets = [49, 0], sizes = [192, 8], strides = [1, 1]} : vector<248x8xf32> to vector<192x8xf32>
    %c2_111 = arith.constant 2 : index
    %c1_112 = arith.constant 1 : index
    %c0_113 = arith.constant 0 : index
    %c0_114 = arith.constant 0 : index
    %102 = vector.load %arg6[%c2_111, %c1_112, %c0_113, %c0_114] : memref<3x3x8x8xf32, #tpu.memory_space<vmem>>, vector<1x1x8x8xf32>
    %103 = vector.shape_cast %102 : vector<1x1x8x8xf32> to vector<8x8xf32>
    %cst_115 = arith.constant dense<0.000000e+00> : vector<192x8xf32>
    %104 = tpu.matmul %101, %103, %cst_115 {dimension_numbers = #tpu.dot_dimension_numbers<[1], [0], [0], [1], [0, 0, 1, 1], [], []>} : vector<192x8xf32>, vector<8x8xf32>, vector<192x8xf32> -> vector<192x8xf32>
    %105 = arith.addf %100, %104 : vector<192x8xf32>
    %106 = vector.extract_strided_slice %62 {offsets = [50, 0], sizes = [192, 8], strides = [1, 1]} : vector<248x8xf32> to vector<192x8xf32>
    %c2_116 = arith.constant 2 : index
    %c2_117 = arith.constant 2 : index
    %c0_118 = arith.constant 0 : index
    %c0_119 = arith.constant 0 : index
    %107 = vector.load %arg6[%c2_116, %c2_117, %c0_118, %c0_119] : memref<3x3x8x8xf32, #tpu.memory_space<vmem>>, vector<1x1x8x8xf32>
    %108 = vector.shape_cast %107 : vector<1x1x8x8xf32> to vector<8x8xf32>
    %cst_120 = arith.constant dense<0.000000e+00> : vector<192x8xf32>
    %109 = tpu.matmul %106, %108, %cst_120 {dimension_numbers = #tpu.dot_dimension_numbers<[1], [0], [0], [1], [0, 0, 1, 1], [], []>} : vector<192x8xf32>, vector<8x8xf32>, vector<192x8xf32> -> vector<192x8xf32>
    %110 = arith.addf %105, %109 : vector<192x8xf32>
    %cst_121 = arith.constant 0.000000e+00 : f32
    %111 = vector.broadcast %cst_121 : f32 to vector<192x8xf32>
    %112 = arith.maximumf %110, %111 : vector<192x8xf32>
    %c0_122 = arith.constant 0 : index
    %c0_123 = arith.constant 0 : index
    %c0_124 = arith.constant 0 : index
    %c0_125 = arith.constant 0 : index
    %113 = vector.load %arg8[%c0_122, %c0_123, %c0_124, %c0_125] : memref<1x1x192x8xf32, #tpu.memory_space<vmem>>, vector<1x1x192x8xf32>
    %114 = vector.shape_cast %113 : vector<1x1x192x8xf32> to vector<192x8xf32>
    %115 = vector.shape_cast %112 : vector<192x8xf32> to vector<1x1x192x8xf32>
    tpu.vector_store %arg8[%c0_122, %c0_123, %c0_124, %c0_125], %115 {strides = array<i32>} : memref<1x1x192x8xf32, #tpu.memory_space<vmem>>, vector<1x1x192x8xf32>,
    return
  }
  func.func @transform_0(%arg0: i32, %arg1: i32) -> (i32, i32, i32, i32) {
    %c0_i32 = arith.constant 0 : i32
    %c0_i32_0 = arith.constant 0 : i32
    %c0_i32_1 = arith.constant 0 : i32
    return %arg0, %arg1, %c0_i32, %c0_i32_0 : i32, i32, i32, i32
  }
  func.func @transform_1(%arg0: i32, %arg1: i32) -> (i32, i32, i32) {
    %c0_i32 = arith.constant 0 : i32
    %c0_i32_0 = arith.constant 0 : i32
    %c0_i32_1 = arith.constant 0 : i32
    return %arg1, %c0_i32, %c0_i32_0 : i32, i32, i32
  }
  func.func @transform_2(%arg0: i32, %arg1: i32) -> (i32, i32, i32, i32) {
    %c0_i32 = arith.constant 0 : i32
    %c0_i32_0 = arith.constant 0 : i32
    %c0_i32_1 = arith.constant 0 : i32
    %c0_i32_2 = arith.constant 0 : i32
    %c0_i32_3 = arith.constant 0 : i32
    return %c0_i32, %c0_i32_0, %c0_i32_1, %c0_i32_2 : i32, i32, i32, i32
  }
  func.func @transform_3(%arg0: i32, %arg1: i32) -> (i32, i32) {
    %c0_i32 = arith.constant 0 : i32
    %c0_i32_0 = arith.constant 0 : i32
    %c0_i32_1 = arith.constant 0 : i32
    return %c0_i32, %c0_i32_0 : i32, i32
  }
  func.func @transform_4(%arg0: i32, %arg1: i32) -> (i32, i32, i32, i32) {
    %c0_i32 = arith.constant 0 : i32
    %c0_i32_0 = arith.constant 0 : i32
    %c0_i32_1 = arith.constant 0 : i32
    %c0_i32_2 = arith.constant 0 : i32
    %c0_i32_3 = arith.constant 0 : i32
    return %c0_i32, %c0_i32_0, %c0_i32_1, %c0_i32_2 : i32, i32, i32, i32
  }
  func.func @transform_5(%arg0: i32, %arg1: i32) -> (i32, i32) {
    %c0_i32 = arith.constant 0 : i32
    %c0_i32_0 = arith.constant 0 : i32
    %c0_i32_1 = arith.constant 0 : i32
    return %c0_i32, %c0_i32_0 : i32, i32
  }
  func.func @transform_6(%arg0: i32, %arg1: i32) -> (i32, i32, i32, i32) {
    %c0_i32 = arith.constant 0 : i32
    %c0_i32_0 = arith.constant 0 : i32
    %c0_i32_1 = arith.constant 0 : i32
    return %arg0, %arg1, %c0_i32, %c0_i32_0 : i32, i32, i32, i32
  }
}

</mosaic_0001>

<bundles_post_ra>
// kernel: tpu_custom_call.1
= control target key start
LH: loop header
LB: loop body
LE: loop exit
PB: predicated region body
PF: predicated region fallthrough
CT: control target
= control target key end

     0   :  { %s5182_s21 = smov 0   ;;  %s5184_s22 = smov 0   ;;  %s7802_s0 = inlined_call_operand.vmem [shape: f32[2,2,312,4], index: 0, kind: input, shape index: {}]   ;;  %s7803_s1 = inlined_call_operand.vmem [shape: f32[2,248,1], index: 1, kind: input, shape index: {}]   ;;  %s7804_s2 = inlined_call_operand.vmem [shape: f32[3,3,4,8], index: 2, kind: input, shape index: {}]   ;;  %s7805_s3 = inlined_call_operand.vmem [shape: f32[1,8], index: 3, kind: input, shape index: {}]   ;;  %s7806_s4 = inlined_call_operand.vmem [shape: f32[3,3,8,8], index: 4, kind: input, shape index: {}]   ;;  %s7807_s5 = inlined_call_operand.vmem [shape: f32[1,8], index: 5, kind: input, shape index: {}]   ;;  %s7808_s6 = inlined_call_operand.vmem [shape: f32[2,2,192,8], index: 6, kind: output, shape index: {}]  }
   0x1   :  { %s5186_s23 = smov 0   ;;  %s5188_s24 = smov 0  }
   0x2   :  { %s5190_s25 = smov 0  }
   0x3 LB: > { %s25_s26 = sadd.s32 1, %s5136_s23  ;;  %s28_s27 = sadd.s32 1, %s5140_s24  ;;  %s5144_s25 = sphi %s5190_s25, %s16_s25   ;;  %s5140_s24 = sphi %s5188_s24, %s8247_s24   ;;  %s5136_s23 = sphi %s5186_s23, %s8246_s23   ;;  %s5132_s22 = sphi %s5184_s22, %s8245_s22   ;;  %s5128_s21 = sphi %s5182_s21, %s8244_s21  }
   0x4   : > { %p26_p0 = scmp.ge.s32.totalorder %s25_s26, 2  ;;  %p4524_p1 = scmp.ge.s32.totalorder %s5144_s25, 1 }
   0x5   : > { %p242_p2 = scmp.lt.s32.totalorder %s5144_s25, 5 }
   0x6   : > { %s8249_s26 = smov (%p26_p0, %s25_s26), 0  ;;  %s8251_s27 = smov (!%p26_p0, %s28_s27), %s5140_s24 }
   0x7   : > { %p243_p3 = pnand %p4524_p1, %p242_p2  ;;  %p30_p4 = scmp.ge.s32.totalorder %s8251_s27, 2 }
   0x9   : > { %s8253_s27 = smov (%p30_p4, %s8251_s27), 0  ;;  %246 = sbr.rel (%p243_p3) target bundleno = 1424 (0x590), region = 44 }
   0xe   : > { %v343_v0 = vld [vmem:[%s7804_s2] sm:$0xf]  ;;  %vm438_vm0 = vcmask 1043456   ;;  %p285_p5 = scmp.lt.s32.totalorder %s5132_s22, 1  ;;  %p287_p6 = scmp.lt.s32.totalorder %s5128_s21, 1  ;;  %vm344_vm1 = vcmask 31744  }
   0xf   : > { %4528 = vmatpush.msk.msra.mxu0 %vm438_vm0, %v343_v0  ;;  %5050 = vmatpush.msk.msra.mxu3 %vm438_vm0, %v343_v0  ;;  %v4593_v1 = vld [vmem:[%s7804_s2 + $0x8] sm:$0xf]  ;;  %v4560_v2 = vld [vmem:[%s7804_s2 + $0x4] sm:$0xf]  ;;  %v4626_v37 = vld [vmem:[%s7804_s2 + $0xc] sm:$0xf] }
  0x10   : > { %s8255_s22 = smov (!%p285_p5, %s5132_s22), 1  ;;  %4561 = vmatpush.msk.msra.mxu1 %vm438_vm0, %v4560_v2  ;;  %s8257_s21 = smov (!%p287_p6, %s5128_s21), 1  ;;  %5052 = vmatpush.msk.msra.mxu2 %vm438_vm0, %v4593_v1  ;;  %vm2996_vm2 = vcmask 64512   ;;  %vm3185_vm3 = vcmask 1046528   ;;  %vm3398_vm4 = vcmask 1045504  }
  0x11   : > { %4594 = vmatpush.msk.msrb.mxu0 %vm438_vm0, %v4593_v1  ;;  %5051 = vmatpush.msk.msrb.mxu3 %vm438_vm0, %v4560_v2  ;;  %s5054_s10 = smul.u32 78, %s8255_s22 }
  0x12   : > { %s5053_s11 = smul.u32 39, %s8257_s21 }
  0x13   : > { %s5055_s19 = smul.u32 248, %s8257_s21 }
  0x14   : > { %s291_s12 = sadd.s32 %s5054_s10, %s5053_s11  ;;  %s5056_s9 = smul.u32 24, %s8257_s21 }
  0x15   : > { %s4525_s13 = sshll.u32 %s291_s12, 3  ;;  %s6147_s29 = scalar_lea.vmem %s7803_s1, %s5055_s19 }
  0x16   : > { %s5236_s16 = scalar_lea.vmem %s7802_s0, %s4525_s13  ;;  %s5057_s10 = smul.u32 48, %s8255_s22 }
  0x17   : > { %v312_v3 = vld [vmem:[%s5236_s16 + $0x6] sm:$0xff]  ;;  %v313_v6 = vld [vmem:[%s5236_s16 + $0xe] sm:$0xff]  ;;  %v314_v9 = vld [vmem:[%s5236_s16 + $0x16] sm:$0xff] }
  0x18   : > { %v5240_v4 = vld [vmem:[%s5236_s16 + $0xe6] sm:$0xff]  ;;  %4529 = vmatmul.msk.f32.vlgmr.msra.gmra.mxu0 %vm344_vm1, %v312_v3  ;;  %v5249_v7 = vld [vmem:[%s5236_s16 + $0xee] sm:$0xff]  ;;  %v5258_v10 = vld [vmem:[%s5236_s16 + $0xf6] sm:$0xff]  ;;  %s305_s11 = sadd.s32 %s5057_s10, %s5056_s9 }
  0x19   : > { %v583_v5 = vld [vmem:[%s5236_s16 + $0x7] sm:$0xff]  ;;  %4557 = vmatmul.msk.f32.vlgmr.msra.gmra.mxu3 %vm344_vm1, %v5240_v4  ;;  %v584_v8 = vld [vmem:[%s5236_s16 + $0xf] sm:$0xff]  ;;  %v585_v11 = vld [vmem:[%s5236_s16 + $0x17] sm:$0xff]  ;;  %s4527_s21 = sshll.u32 %s305_s11, 3 }
  0x1a   : > { %4562 = vmatmul.msk.f32.vlgmr.msra.gmra.mxu1 %vm344_vm1, %v583_v5  ;;  %v5266_v12 = vld [vmem:[%s5236_s16 + $0x58] sm:$0xff]  ;;  %v604_v14 = vld [vmem:[%s5236_s16 + $0xaf] sm:$0xff]  ;;  %v5283_v16 = vld [vmem:[%s5236_s16 + $0x60] sm:$0xff]  ;;  %4627 = vmatpush.msk.msra.mxu3 %vm438_vm0, %v4626_v37  ;;  %s7660_s13 = scalar_lea.vmem %s7808_s6, %s4527_s21 }
  0x1b   : > { %4605 = vmatmul.msk.f32.vlgmr.msra.gmra.mxu2 %vm344_vm1, %v5266_v12  ;;  %v5271_v13 = vld [vmem:[%s5236_s16 + $0x1e] sm:$0xff]  ;;  %v5288_v17 = vld [vmem:[%s5236_s16 + $0x26] sm:$0xff]  ;;  %v5305_v21 = vld [vmem:[%s5236_s16 + $0x2e] sm:$0xff] }
  0x1c   : > { %v5275_v15 = vld [vmem:[%s5236_s16 + $0x1f] sm:$0xff]  ;;  %v605_v18 = vld [vmem:[%s5236_s16 + $0xb7] sm:$0xff]  ;;  %v5292_v19 = vld [vmem:[%s5236_s16 + $0x27] sm:$0xff] }
  0x1d   : > { %v5300_v20 = vld [vmem:[%s5236_s16 + $0x68] sm:$0xff]  ;;  %v606_v22 = vld [vmem:[%s5236_s16 + $0xbf] sm:$0xff]  ;;  %v5317_v24 = vld [vmem:[%s5236_s16 + $0x70] sm:$0xff] }
  0x1e   : > { %v5309_v23 = vld [vmem:[%s5236_s16 + $0x2f] sm:$0xff]  ;;  %v607_v26 = vld [vmem:[%s5236_s16 + $0xc7] sm:$0xff]  ;;  %v5326_v27 = vld [vmem:[%s5236_s16 + $0x37] sm:$0xff] }
  0x1f   : > { %v5322_v25 = vld [vmem:[%s5236_s16 + $0x36] sm:$0xff]  ;;  %v5339_v29 = vld [vmem:[%s5236_s16 + $0x3e] sm:$0xff]  ;;  %v5356_v33 = vld [vmem:[%s5236_s16 + $0x46] sm:$0xff] }
  0x20   : > { %4530 = vmatmul.msk.f32.gmra.mxu0 %vm344_vm1, %v313_v6  ;;  %v5334_v28 = vld [vmem:[%s5236_s16 + $0x78] sm:$0xff]  ;;  %v608_v30 = vld [vmem:[%s5236_s16 + $0xcf] sm:$0xff]  ;;  %v5351_v32 = vld [vmem:[%s5236_s16 + $0x80] sm:$0xff] }
  0x21   : > { %4558 = vmatmul.msk.f32.gmra.mxu3 %vm344_vm1, %v5249_v7  ;;  %v5343_v31 = vld [vmem:[%s5236_s16 + $0x3f] sm:$0xff]  ;;  %v609_v34 = vld [vmem:[%s5236_s16 + $0xd7] sm:$0xff]  ;;  %v5360_v35 = vld [vmem:[%s5236_s16 + $0x47] sm:$0xff] }
  0x22   : > { %4563 = vmatmul.msk.f32.gmra.mxu1 %vm344_vm1, %v584_v8  ;;  %v5368_v36 = vld [vmem:[%s5236_s16 + $0x88] sm:$0xff]  ;;  %v610_v39 = vld [vmem:[%s5236_s16 + $0xdf] sm:$0xff]  ;;  %v5389_v41 = vld [vmem:[%s5236_s16 + $0x90] sm:$0xff] }
  0x23   : > { %4606 = vmatmul.msk.f32.gmra.mxu2 %vm344_vm1, %v5283_v16  ;;  %v5377_v38 = vld [vmem:[%s5236_s16 + $0x4e] sm:$0xff]  ;;  %v5394_v42 = vld [vmem:[%s5236_s16 + $0x56] sm:$0xff]  ;;  %v5411_v46 = vld [vmem:[%s5236_s16 + $0x5e] sm:$0xff] }
  0x24   : > { %v5381_v40 = vld [vmem:[%s5236_s16 + $0x4f] sm:$0xff]  ;;  %v611_v43 = vld [vmem:[%s5236_s16 + $0xe7] sm:$0xff]  ;;  %v5398_v44 = vld [vmem:[%s5236_s16 + $0x57] sm:$0xff] }
  0x25   : > { %v5406_v45 = vld [vmem:[%s5236_s16 + $0x98] sm:$0xff]  ;;  %v612_v47 = vld [vmem:[%s5236_s16 + $0xef] sm:$0xff]  ;;  %v5423_v49 = vld [vmem:[%s5236_s16 + $0xa0] sm:$0xff] }
  0x26   : > { %v5415_v48 = vld [vmem:[%s5236_s16 + $0x5f] sm:$0xff]  ;;  %v613_v51 = vld [vmem:[%s5236_s16 + $0xf7] sm:$0xff]  ;;  %v5432_v52 = vld [vmem:[%s5236_s16 + $0x67] sm:$0xff] }
  0x27   : > { %v5428_v50 = vld [vmem:[%s5236_s16 + $0x66] sm:$0xff]  ;;  %v5445_v54 = vld [vmem:[%s5236_s16 + $0x6e] sm:$0xff]  ;;  %v5462_v57 = vld [vmem:[%s5236_s16 + $0x76] sm:$0xff] }
  0x28   : > { %4531 = vmatmul.msk.f32.gmra.mxu0 %vm344_vm1, %v314_v9  ;;  %v5440_v53 = vld [vmem:[%s5236_s16 + $0xa8] sm:$0xff]  ;;  %v5457_v56 = vld [vmem:[%s5236_s16 + $0xb0] sm:$0xff]  ;;  %v5474_v59 = vld [vmem:[%s5236_s16 + $0xb8] sm:$0xff] }
  0x29   : > { %4559 = vmatmul.msk.f32.gmra.mxu3 %vm344_vm1, %v5258_v10  ;;  %v5448_v55 = vld [vmem:[%s5236_s16 + $0x6f] sm:$0xff]  ;;  %v5465_v58 = vld [vmem:[%s5236_s16 + $0x77] sm:$0xff]  ;;  %v5482_v61 = vld [vmem:[%s5236_s16 + $0x7f] sm:$0xff] }
  0x2a   : > { %4564 = vmatmul.msk.f32.gmra.mxu1 %vm344_vm1, %v585_v11  ;;  %v5479_v60 = vld [vmem:[%s5236_s16 + $0x7e] sm:$0xff]  ;;  %v5495_v0 = vld [vmem:[%s5236_s16 + $0x86] sm:$0xff]  ;;  %v5513_v6 = vld [vmem:[%s5236_s16 + $0x8e] sm:$0xff] }
  0x2b   : > { %4607 = vmatmul.msk.f32.gmra.mxu2 %vm344_vm1, %v5300_v20  ;;  %v876_v62 = vld [vmem:[%s5236_s16 + $0xc0] sm:$0xff]  ;;  %v877_v3 = vld [vmem:[%s5236_s16 + $0xc8] sm:$0xff]  ;;  %v878_v11 = vld [vmem:[%s5236_s16 + $0xd0] sm:$0xff] }
  0x2c   : > { %v5498_v1 = vld [vmem:[%s5236_s16 + $0x87] sm:$0xff]  ;;  %v5516_v8 = vld [vmem:[%s5236_s16 + $0x8f] sm:$0xff] }
  0x2d   : > { %7867 = vst [vmem:[#allocation4_spill] sm:$0xff] %v5516_v8  ;;  %v880_v37 = vld [vmem:[%s5236_s16 + $0xe0] sm:$0xff] }
  0x30   : > { %4532 = vmatmul.msk.f32.gmra.mxu0 %vm344_vm1, %v5271_v13 }
  0x31   : > { %4583 = vmatmul.msk.f32.vlgmr.msrb.gmra.mxu3 %vm344_vm1, %v604_v14  ;;  %v5531_v14 = vld [vmem:[%s5236_s16 + $0x96] sm:$0xff] }
  0x32   : > { %4565 = vmatmul.msk.f32.gmra.mxu1 %vm344_vm1, %v5275_v15 }
  0x33   : > { %4608 = vmatmul.msk.f32.gmra.mxu2 %vm344_vm1, %v5317_v24 }
  0x38   : > { %4533 = vmatmul.msk.f32.gmra.mxu0 %vm344_vm1, %v5288_v17 }
  0x39   : > { %4584 = vmatmul.msk.f32.gmra.mxu3 %vm344_vm1, %v605_v18 }
  0x3a   : > { %4566 = vmatmul.msk.f32.gmra.mxu1 %vm344_vm1, %v5292_v19 }
  0x3b   : > { %4609 = vmatmul.msk.f32.gmra.mxu2 %vm344_vm1, %v5334_v28 }
  0x40   : > { %4534 = vmatmul.msk.f32.gmra.mxu0 %vm344_vm1, %v5305_v21 }
  0x41   : > { %4585 = vmatmul.msk.f32.gmra.mxu3 %vm344_vm1, %v606_v22 }
  0x42   : > { %4567 = vmatmul.msk.f32.gmra.mxu1 %vm344_vm1, %v5309_v23 }
  0x43   : > { %4610 = vmatmul.msk.f32.gmra.mxu2 %vm344_vm1, %v5351_v32 }
  0x48   : > { %4535 = vmatmul.msk.f32.gmra.mxu0 %vm344_vm1, %v5322_v25 }
  0x49   : > { %4586 = vmatmul.msk.f32.gmra.mxu3 %vm344_vm1, %v607_v26  ;;  %v5549_v26 = vld [vmem:[%s5236_s16 + $0x9e] sm:$0xff] }
  0x4a   : > { %4568 = vmatmul.msk.f32.gmra.mxu1 %vm344_vm1, %v5326_v27 }
  0x4b   : > { %4611 = vmatmul.msk.f32.gmra.mxu2 %vm344_vm1, %v5368_v36 }
  0x50   : > { %4536 = vmatmul.msk.f32.gmra.mxu0 %vm344_vm1, %v5339_v29 }
  0x51   : > { %4587 = vmatmul.msk.f32.gmra.mxu3 %vm344_vm1, %v608_v30  ;;  %v5552_v30 = vld [vmem:[%s5236_s16 + $0x9f] sm:$0xff] }
  0x52   : > { %4569 = vmatmul.msk.f32.gmra.mxu1 %vm344_vm1, %v5343_v31  ;;  %7871 = vst [vmem:[#allocation8_spill] sm:$0xff] %v5552_v30 }
  0x53   : > { %4612 = vmatmul.msk.f32.gmra.mxu2 %vm344_vm1, %v5389_v41 }
  0x58   : > { %4537 = vmatmul.msk.f32.gmra.mxu0 %vm344_vm1, %v5356_v33 }
  0x59   : > { %4588 = vmatmul.msk.f32.gmra.mxu3 %vm344_vm1, %v609_v34 }
  0x5a   : > { %4570 = vmatmul.msk.f32.gmra.mxu1 %vm344_vm1, %v5360_v35 }
  0x5b   : > { %4613 = vmatmul.msk.f32.gmra.mxu2 %vm344_vm1, %v5406_v45 }
  0x60   : > { %4538 = vmatmul.msk.f32.gmra.mxu0 %vm344_vm1, %v5377_v38 }
  0x61   : > { %4589 = vmatmul.msk.f32.gmra.mxu3 %vm344_vm1, %v610_v39 }
  0x62   : > { %4571 = vmatmul.msk.f32.gmra.mxu1 %vm344_vm1, %v5381_v40 }
  0x63   : > { %4614 = vmatmul.msk.f32.gmra.mxu2 %vm344_vm1, %v5423_v49 }
  0x68   : > { %4539 = vmatmul.msk.f32.gmra.mxu0 %vm344_vm1, %v5394_v42 }
  0x69   : > { %4590 = vmatmul.msk.f32.gmra.mxu3 %vm344_vm1, %v611_v43  ;;  %v5567_v43 = vld [vmem:[%s5236_s16 + $0xa6] sm:$0xff] }
  0x6a   : > { %4572 = vmatmul.msk.f32.gmra.mxu1 %vm344_vm1, %v5398_v44 }
  0x6b   : > { %4615 = vmatmul.msk.f32.gmra.mxu2 %vm344_vm1, %v5440_v53 }
  0x70   : > { %4540 = vmatmul.msk.f32.gmra.mxu0 %vm344_vm1, %v5411_v46 }
  0x71   : > { %4591 = vmatmul.msk.f32.gmra.mxu3 %vm344_vm1, %v612_v47  ;;  %v5570_v47 = vld [vmem:[%s5236_s16 + $0xa7] sm:$0xff] }
  0x72   : > { %4573 = vmatmul.msk.f32.gmra.mxu1 %vm344_vm1, %v5415_v48  ;;  %7874 = vst [vmem:[#allocation11_spill] sm:$0xff] %v5570_v47 }
  0x73   : > { %4616 = vmatmul.msk.f32.gmra.mxu2 %vm344_vm1, %v5457_v56 }
  0x78   : > { %4541 = vmatmul.msk.f32.gmra.mxu0 %vm344_vm1, %v5428_v50 }
  0x79   : > { %4592 = vmatmul.msk.f32.gmra.mxu3 %vm344_vm1, %v613_v51 }
  0x7a   : > { %4574 = vmatmul.msk.f32.gmra.mxu1 %vm344_vm1, %v5432_v52 }
  0x7b   : > { %4617 = vmatmul.msk.f32.gmra.mxu2 %vm344_vm1, %v5474_v59 }
  0x80   : > { %4542 = vmatmul.msk.f32.gmra.mxu0 %vm344_vm1, %v5445_v54 }
  0x81   : > { %4628 = vmatmul.msk.f32.vlgmr.msra.gmra.mxu3 %vm344_vm1, %v5271_v13 }
  0x82   : > { %4575 = vmatmul.msk.f32.gmra.mxu1 %vm344_vm1, %v5448_v55 }
  0x83   : > { %4618 = vmatmul.msk.f32.gmra.mxu2 %vm344_vm1, %v876_v62  ;;  %v881_v62 = vld [vmem:[%s5236_s16 + $0xe8] sm:$0xff] }
  0x88   : > { %4543 = vmatmul.msk.f32.gmra.mxu0 %vm344_vm1, %v5462_v57 }
  0x89   : > { %4629 = vmatmul.msk.f32.gmra.mxu3 %vm344_vm1, %v5288_v17  ;;  %v5534_v17 = vld [vmem:[%s5236_s16 + $0x97] sm:$0xff] }
  0x8a   : > { %4576 = vmatmul.msk.f32.gmra.mxu1 %vm344_vm1, %v5465_v58  ;;  %7869 = vst [vmem:[#allocation6_spill] sm:$0xff] %v5534_v17 }
  0x8b   : > { %4619 = vmatmul.msk.f32.gmra.mxu2 %vm344_vm1, %v877_v3 }
  0x90   : > { %4544 = vmatmul.msk.f32.gmra.mxu0 %vm344_vm1, %v5479_v60 }
  0x91   : > { %4630 = vmatmul.msk.f32.gmra.mxu3 %vm344_vm1, %v5305_v21  ;;  %v879_v21 = vld [vmem:[%s5236_s16 + $0xd8] sm:$0xff] }
  0x92   : > { %4577 = vmatmul.msk.f32.gmra.mxu1 %vm344_vm1, %v5482_v61 }
  0x93   : > { %4620 = vmatmul.msk.f32.gmra.mxu2 %vm344_vm1, %v878_v11  ;;  %v5585_v11 = vld [vmem:[%s5236_s16 + $0xae] sm:$0xff] }
  0x95   : > { %v5492_v63 = vpop.f32.mrf.mxu0 }
  0x96   : > { %7865 = vst [vmem:[#allocation2_spill] sm:$0xff] %v5492_v63 }
  0x98   : > { %4545 = vmatmul.msk.f32.gmra.mxu0 %vm344_vm1, %v5495_v0 }
  0x99   : > { %4631 = vmatmul.msk.f32.gmra.mxu3 %vm344_vm1, %v5322_v25 }
  0x9a   : > { %4578 = vmatmul.msk.f32.gmra.mxu1 %vm344_vm1, %v5498_v1 }
  0x9b   : > { %4621 = vmatmul.msk.f32.gmra.mxu2 %vm344_vm1, %v879_v21 }
  0x9c   : > { %v5506_v2 = vpop.f32.mrf.mxu3 }
  0x9d   : > { %v5510_v5 = vpop.f32.mrf.mxu0 }
  0x9e   : > { %7866 = vst [vmem:[#allocation3_spill] sm:$0xff] %v5510_v5 }
  0xa0   : > { %4546 = vmatmul.msk.f32.gmra.mxu0 %vm344_vm1, %v5513_v6 }
  0xa1   : > { %4632 = vmatmul.msk.f32.gmra.mxu3 %vm344_vm1, %v5339_v29 }
  0xa2   : > { %4579 = vmatmul.msk.f32.gmra.mxu1 %vm344_vm1, %v5516_v8 }
  0xa3   : > { %4622 = vmatmul.msk.f32.gmra.mxu2 %vm344_vm1, %v880_v37  ;;  %v882_v37 = vld [vmem:[%s5236_s16 + $0xf0] sm:$0xff] }
  0xa4   : > { %v5524_v9 = vpop.f32.mrf.mxu3 }
  0xa5   : > { %v5528_v13 = vpop.f32.mrf.mxu0 }
  0xa6   : > { %7868 = vst [vmem:[#allocation5_spill] sm:$0xff] %v5528_v13  ;;  %v5648_v13 = vld [vmem:[%s5236_s16 + $0xd6] sm:$0xff] }
  0xa8   : > { %4547 = vmatmul.msk.f32.gmra.mxu0 %vm344_vm1, %v5531_v14 }
  0xa9   : > { %4633 = vmatmul.msk.f32.gmra.mxu3 %vm344_vm1, %v5356_v33 }
  0xaa   : > { %4580 = vmatmul.msk.f32.gmra.mxu1 %vm344_vm1, %v5534_v17  ;;  %v5670_v17 = vld [vmem:[%s5236_s16 + $0xde] sm:$0xff] }
  0xab   : > { %4623 = vmatmul.msk.f32.gmra.mxu2 %vm344_vm1, %v881_v62  ;;  %v5598_v62 = vld [vmem:[%s5236_s16 + $0xb6] sm:$0xff] }
  0xac   : > { %v5542_v18 = vpop.f32.mrf.mxu3 }
  0xad   : > { %v5546_v22 = vpop.f32.mrf.mxu0 }
  0xae   : > { %7870 = vst [vmem:[#allocation7_spill] sm:$0xff] %v5546_v22 }
  0xb0   : > { %4548 = vmatmul.msk.f32.gmra.mxu0 %vm344_vm1, %v5549_v26 }
  0xb1   : > { %4634 = vmatmul.msk.f32.gmra.mxu3 %vm344_vm1, %v5377_v38 }
  0xb2   : > { %4581 = vmatmul.msk.f32.gmra.mxu1 %vm344_vm1, %v5552_v30 }
  0xb3   : > { %4624 = vmatmul.msk.f32.gmra.mxu2 %vm344_vm1, %v882_v37 }
  0xb4   : > { %v5560_v34 = vpop.f32.mrf.mxu3 }
  0xb5   : > { %7872 = vst [vmem:[#allocation9_spill] sm:$0xff] %v5560_v34  ;;  %v5564_v39 = vpop.f32.mrf.mxu0 }
  0xb6   : > { %7873 = vst [vmem:[#allocation10_spill] sm:$0xff] %v5564_v39  ;;  %v5611_v39 = vld [vmem:[%s5236_s16 + $0xbe] sm:$0xff] }
  0xb8   : > { %4549 = vmatmul.msk.f32.gmra.mxu0 %vm344_vm1, %v5567_v43 }
  0xb9   : > { %4635 = vmatmul.msk.f32.gmra.mxu3 %vm344_vm1, %v5394_v42 }
  0xba   : > { %4582 = vmatmul.msk.f32.gmra.mxu1 %vm344_vm1, %v5570_v47 }
  0xbc   : > { %v5578_v51 = vpop.f32.mrf.mxu3 }
  0xbd   : > { %7875 = vst [vmem:[#allocation12_spill] sm:$0xff] %v5578_v51  ;;  %v5582_v3 = vpop.f32.mrf.mxu0 }
  0xbe   : > { %7876 = vst [vmem:[#allocation13_spill] sm:$0xff] %v5582_v3  ;;  %v883_v3 = vld [vmem:[%s5236_s16 + $0xf8] sm:$0xff] }
  0xbf   : > { %4625 = vmatmul.msk.f32.gmra.mxu2 %vm344_vm1, %v883_v3  ;;  %v4659_v3 = vld [vmem:[%s7804_s2 + $0x10] sm:$0xf] }
  0xc0   : > { %4550 = vmatmul.msk.f32.gmra.mxu0 %vm344_vm1, %v5585_v11 }
  0xc1   : > { %4636 = vmatmul.msk.f32.gmra.mxu3 %vm344_vm1, %v5411_v46  ;;  %4660 = vmatpush.msk.msra.mxu0 %vm438_vm0, %v4659_v3  ;;  %v5653_v3 = vld [vmem:[%s7805_s3] ss:$0 sm:$0xff] }
  0xc4   : > { %v5591_v21 = vpop.f32.mrf.mxu3 }
  0xc5   : > { %7877 = vst [vmem:[#allocation14_spill] sm:$0xff] %v5591_v21  ;;  %v5595_v51 = vpop.f32.mrf.mxu0 }
  0xc6   : > { %7878 = vst [vmem:[#allocation15_spill] sm:$0xff] %v5595_v51 }
  0xc8   : > { %4551 = vmatmul.msk.f32.gmra.mxu0 %vm344_vm1, %v5598_v62 }
  0xc9   : > { %4637 = vmatmul.msk.f32.gmra.mxu3 %vm344_vm1, %v5428_v50 }
  0xcc   : > { %v5604_v34 = vpop.f32.mrf.mxu3 }
  0xcd   : > { %7879 = vst [vmem:[#allocation16_spill] sm:$0xff] %v5604_v34  ;;  %v5608_v21 = vpop.f32.mrf.mxu0  ;;  %v5622_v34 = vld [vmem:[%s5236_s16 + $0xc6] sm:$0xff] }
  0xce   : > { %7880 = vst [vmem:[#allocation17_spill] sm:$0xff] %v5608_v21 }
  0xd0   : > { %4552 = vmatmul.msk.f32.gmra.mxu0 %vm344_vm1, %v5611_v39 }
  0xd1   : > { %4638 = vmatmul.msk.f32.gmra.mxu3 %vm344_vm1, %v5445_v54 }
  0xd4   : > { %v5617_v37 = vpop.f32.mrf.mxu3 }
  0xd5   : > { %7881 = vst [vmem:[#allocation18_spill] sm:$0xff] %v5617_v37  ;;  %v5619_v51 = vpop.f32.mrf.mxu0  ;;  %v5637_v37 = vld [vmem:[%s5236_s16 + $0xce] sm:$0xff] }
  0xd6   : > { %7882 = vst [vmem:[#allocation19_spill] sm:$0xff] %v5619_v51 }
  0xd8   : > { %4553 = vmatmul.msk.f32.gmra.mxu0 %vm344_vm1, %v5622_v34 }
  0xd9   : > { %4639 = vmatmul.msk.f32.gmra.mxu3 %vm344_vm1, %v5462_v57 }
  0xdc   : > { %v5632_v21 = vpop.f32.mrf.mxu3 }
  0xdd   : > { %7883 = vst [vmem:[#allocation20_spill] sm:$0xff] %v5632_v21  ;;  %v5634_v22 = vpop.f32.mrf.mxu0  ;;  %v580_v21 = vadd.f32 %v5653_v3, %v5506_v2  ;;  %v581_v2 = vadd.f32 %v5653_v3, %v5524_v9  ;;  %v582_v9 = vadd.f32 %v5653_v3, %v5542_v18 }
  0xde   : > { %7884 = vst [vmem:[#allocation21_spill] sm:$0xff] %v5634_v22 }
  0xe0   : > { %4554 = vmatmul.msk.f32.gmra.mxu0 %vm344_vm1, %v5637_v37 }
  0xe1   : > { %4640 = vmatmul.msk.f32.gmra.mxu3 %vm344_vm1, %v5479_v60 }
  0xe4   : > { %v5643_v51 = vpop.f32.mrf.mxu3 }
  0xe5   : > { %7885 = vst [vmem:[#allocation22_spill] sm:$0xff] %v5643_v51  ;;  %v5645_v47 = vpop.f32.mrf.mxu0  ;;  %v5661_v51 = vpop.f32.mrf.mxu1 }
  0xe6   : > { %7886 = vst [vmem:[#allocation23_spill] sm:$0xff] %v5645_v47  ;;  %v5663_v47 = vpop.f32.mrf.mxu2 }
  0xe7   : > { %7887 = vst [vmem:[#allocation24_spill] sm:$0xff] %v5661_v51 }
  0xe8   : > { %4555 = vmatmul.msk.f32.gmra.mxu0 %vm344_vm1, %v5648_v13  ;;  %7888 = vst [vmem:[#allocation25_spill] sm:$0xff] %v5663_v47 }
  0xe9   : > { %4641 = vmatmul.msk.f32.gmra.mxu3 %vm344_vm1, %v5495_v0 }
  0xec   : > { %v813_v22 = vpop.f32.mrf.mxu3 }
  0xed   : > { %v5665_v30 = vadd.f32 %v813_v22, %v580_v21  ;;  %v5667_v5 = vpop.f32.mrf.mxu0  ;;  %v5678_v51 = vpop.f32.mrf.mxu1 }
  0xee   : > { %7890 = vst [vmem:[#allocation27_spill] sm:$0xff] %v5667_v5  ;;  %v5682_v22 = vpop.f32.mrf.mxu2  ;;  %v853_v5 = vld [vmem:[%s5236_s16 + $0x8] sm:$0xff] }
  0xef   : > { %7889 = vst [vmem:[#allocation26_spill] sm:$0xff] %v5665_v30 }
  0xf0   : > { %4556 = vmatmul.msk.f32.gmra.mxu0 %vm344_vm1, %v5670_v17  ;;  %7892 = vst [vmem:[#allocation29_spill] sm:$0xff] %v5682_v22  ;;  %v854_v22 = vld [vmem:[%s5236_s16 + $0x10] sm:$0xff] }
  0xf1   : > { %4642 = vmatmul.msk.f32.gmra.mxu3 %vm344_vm1, %v5513_v6 }
  0xf4   : > { %v816_v47 = vpop.f32.mrf.mxu3 }
  0xf5   : > { %v5680_v63 = vadd.f32 %v816_v47, %v581_v2  ;;  %v5684_v21 = vpop.f32.mrf.mxu0  ;;  %v5694_v47 = vpop.f32.mrf.mxu1 }
  0xf6   : > { %7893 = vst [vmem:[#allocation30_spill] sm:$0xff] %v5684_v21  ;;  %v855_v21 = vld [vmem:[%s5236_s16 + $0x18] sm:$0xff] }
  0xf7   : > { %7891 = vst [vmem:[#allocation28_spill] sm:$0xff] %v5680_v63  ;;  %v5699_v63 = vpop.f32.mrf.mxu2 }
  0xf8   : > { %4595 = vmatmul.msk.f32.vlgmr.msrb.gmra.mxu0 %vm344_vm1, %v853_v5  ;;  %7895 = vst [vmem:[#allocation32_spill] sm:$0xff] %v5694_v47  ;;  %v857_v47 = vld [vmem:[%s5236_s16 + $0x28] sm:$0xff] }
  0xf9   : > { %4643 = vmatmul.msk.f32.gmra.mxu3 %vm344_vm1, %v5531_v14  ;;  %7897 = vst [vmem:[#allocation34_spill] sm:$0xff] %v5699_v63 }
  0xfc   : > { %v819_v30 = vpop.f32.mrf.mxu3 }
  0xfd   : > { %v5692_v8 = vadd.f32 %v819_v30, %v582_v9  ;;  %v5696_v2 = vpop.f32.mrf.mxu0  ;;  %v5709_v30 = vpop.f32.mrf.mxu1 }
  0xfe   : > { %7896 = vst [vmem:[#allocation33_spill] sm:$0xff] %v5696_v2  ;;  %v856_v2 = vld [vmem:[%s5236_s16 + $0x20] sm:$0xff] }
  0xff   : > { %7894 = vst [vmem:[#allocation31_spill] sm:$0xff] %v5692_v8  ;;  %v5714_v9 = vpop.f32.mrf.mxu2  ;;  %v4692_v8 = vld [vmem:[%s7804_s2 + $0x14] sm:$0xf] }
 0x100   : > { %4596 = vmatmul.msk.f32.gmra.mxu0 %vm344_vm1, %v854_v22  ;;  %7899 = vst [vmem:[#allocation36_spill] sm:$0xff] %v5709_v30  ;;  %4693 = vmatpush.msk.msrb.mxu1 %vm438_vm0, %v4692_v8 }
 0x101   : > { %4644 = vmatmul.msk.f32.gmra.mxu3 %vm344_vm1, %v5549_v26  ;;  %7900 = vst [vmem:[#allocation37_spill] sm:$0xff] %v5714_v9  ;;  %4694 = vmatmul.msk.f32.vlgmr.msrb.gmra.mxu1 %vm344_vm1, %v856_v2 }
 0x104   : > { %v5704_v5 = vpop.f32.mrf.mxu3 }
 0x105   : > { %v5706_v18 = vpop.f32.mrf.mxu0 }
 0x106   : > { %7898 = vst [vmem:[#allocation35_spill] sm:$0xff] %v5706_v18  ;;  %v5727_v18 = vpop.f32.mrf.mxu1 }
 0x107   : > { %v5732_v9 = vpop.f32.mrf.mxu2 }
 0x108   : > { %4597 = vmatmul.msk.f32.gmra.mxu0 %vm344_vm1, %v855_v21  ;;  %v4725_v21 = vld [vmem:[%s7804_s2 + $0x18] sm:$0xf]  ;;  %7902 = vst [vmem:[#allocation39_spill] sm:$0xff] %v5732_v9 }
 0x109   : > { %4645 = vmatmul.msk.f32.gmra.mxu3 %vm344_vm1, %v5567_v43  ;;  %4726 = vmatpush.msk.msrb.mxu2 %vm438_vm0, %v4725_v21 }
 0x10a   : > { %4727 = vmatmul.msk.f32.vlgmr.msrb.gmra.mxu2 %vm344_vm1, %v5322_v25  ;;  %4695 = vmatmul.msk.f32.gmra.mxu1 %vm344_vm1, %v857_v47 }
 0x10c   : > { %v5716_v63 = vpop.f32.mrf.mxu3 }
 0x10d   : > { %v5718_v22 = vpop.f32.mrf.mxu0 }
 0x10e   : > { %7901 = vst [vmem:[#allocation38_spill] sm:$0xff] %v5718_v22  ;;  %v5749_v25 = vpop.f32.mrf.mxu1 }
 0x10f   : > { %7904 = vst [vmem:[#allocation41_spill] sm:$0xff] %v5749_v25  ;;  %v5753_v9 = vpop.f32.mrf.mxu2 }
 0x110   : > { %4598 = vmatmul.msk.f32.gmra.mxu0 %vm344_vm1, %v856_v2  ;;  %7905 = vst [vmem:[#allocation42_spill] sm:$0xff] %v5753_v9  ;;  %v859_v9 = vld [vmem:[%s5236_s16 + $0x38] sm:$0xff] }
 0x111   : > { %4646 = vmatmul.msk.f32.gmra.mxu3 %vm344_vm1, %v5585_v11 }
 0x112   : > { %4728 = vmatmul.msk.f32.gmra.mxu2 %vm344_vm1, %v5339_v29  ;;  %v4758_v29 = vld [vmem:[%s7804_s2 + $0x1c] sm:$0xf] }
 0x113   : > { %4759 = vmatpush.msk.msrb.mxu3 %vm438_vm0, %v4758_v29 }
 0x114   : > { %v5734_v22 = vpop.f32.mrf.mxu3 }
 0x115   : > { %v5740_v30 = vpop.f32.mrf.mxu0 }
 0x116   : > { %7903 = vst [vmem:[#allocation40_spill] sm:$0xff] %v5740_v30  ;;  %v858_v30 = vld [vmem:[%s5236_s16 + $0x30] sm:$0xff] }
 0x117   : > { %4696 = vmatmul.msk.f32.gmra.mxu1 %vm344_vm1, %v858_v30  ;;  %v5776_v25 = vpop.f32.mrf.mxu2 }
 0x118   : > { %4599 = vmatmul.msk.f32.gmra.mxu0 %vm344_vm1, %v857_v47  ;;  %7909 = vst [vmem:[#allocation46_spill] sm:$0xff] %v5776_v25 }
 0x119   : > { %4647 = vmatmul.msk.f32.gmra.mxu3 %vm344_vm1, %v5598_v62 }
 0x11a   : > { %4729 = vmatmul.msk.f32.gmra.mxu2 %vm344_vm1, %v5356_v33  ;;  %v4791_v33 = vld [vmem:[%s7804_s2 + $0x20] sm:$0xf] }
 0x11b   : > { %4792 = vmatpush.msk.msrb.mxu0 %vm438_vm0, %v4791_v33 }
 0x11c   : > { %v5751_v21 = vpop.f32.mrf.mxu3 }
 0x11d   : > { %v5755_v8 = vpop.f32.mrf.mxu0 }
 0x11e   : > { %7906 = vst [vmem:[#allocation43_spill] sm:$0xff] %v5755_v8  ;;  %v5770_v8 = vpop.f32.mrf.mxu1 }
 0x11f   : > { %7907 = vst [vmem:[#allocation44_spill] sm:$0xff] %v5770_v8  ;;  %4697 = vmatmul.msk.f32.gmra.mxu1 %vm344_vm1, %v859_v9  ;;  %v5798_v8 = vpop.f32.mrf.mxu2 }
 0x120   : > { %4600 = vmatmul.msk.f32.gmra.mxu0 %vm344_vm1, %v858_v30  ;;  %7912 = vst [vmem:[#allocation49_spill] sm:$0xff] %v5798_v8 }
 0x121   : > { %4648 = vmatmul.msk.f32.gmra.mxu3 %vm344_vm1, %v5611_v39 }
 0x122   : > { %4730 = vmatmul.msk.f32.gmra.mxu2 %vm344_vm1, %v5377_v38 }
 0x124   : > { %v5768_v2 = vpop.f32.mrf.mxu3 }
 0x125   : > { %v5772_v47 = vpop.f32.mrf.mxu0 }
 0x126   : > { %7908 = vst [vmem:[#allocation45_spill] sm:$0xff] %v5772_v47  ;;  %v860_v47 = vld [vmem:[%s5236_s16 + $0x40] sm:$0xff]  ;;  %v5793_v25 = vpop.f32.mrf.mxu1 }
 0x127   : > { %7911 = vst [vmem:[#allocation48_spill] sm:$0xff] %v5793_v25  ;;  %4698 = vmatmul.msk.f32.gmra.mxu1 %vm344_vm1, %v860_v47  ;;  %v5815_v8 = vpop.f32.mrf.mxu2 }
 0x128   : > { %4601 = vmatmul.msk.f32.gmra.mxu0 %vm344_vm1, %v859_v9  ;;  %7915 = vst [vmem:[#allocation52_spill] sm:$0xff] %v5815_v8 }
 0x129   : > { %4649 = vmatmul.msk.f32.gmra.mxu3 %vm344_vm1, %v5622_v34 }
 0x12a   : > { %4731 = vmatmul.msk.f32.gmra.mxu2 %vm344_vm1, %v5394_v42 }
 0x12c   : > { %v5787_v29 = vpop.f32.mrf.mxu3 }
 0x12d   : > { %v5789_v30 = vpop.f32.mrf.mxu0 }
 0x12e   : > { %7910 = vst [vmem:[#allocation47_spill] sm:$0xff] %v5789_v30  ;;  %v861_v30 = vld [vmem:[%s5236_s16 + $0x48] sm:$0xff]  ;;  %v5811_v9 = vpop.f32.mrf.mxu1 }
 0x12f   : > { %7914 = vst [vmem:[#allocation51_spill] sm:$0xff] %v5811_v9  ;;  %4699 = vmatmul.msk.f32.gmra.mxu1 %vm344_vm1, %v861_v30  ;;  %v5832_v8 = vpop.f32.mrf.mxu2 }
 0x130   : > { %4602 = vmatmul.msk.f32.gmra.mxu0 %vm344_vm1, %v860_v47  ;;  %7917 = vst [vmem:[#allocation54_spill] sm:$0xff] %v5832_v8 }
 0x131   : > { %4650 = vmatmul.msk.f32.gmra.mxu3 %vm344_vm1, %v5637_v37 }
 0x132   : > { %4732 = vmatmul.msk.f32.gmra.mxu2 %vm344_vm1, %v5411_v46 }
 0x134   : > { %v5802_v38 = vpop.f32.mrf.mxu3 }
 0x135   : > { %v5804_v33 = vpop.f32.mrf.mxu0 }
 0x136   : > { %7913 = vst [vmem:[#allocation50_spill] sm:$0xff] %v5804_v33  ;;  %v862_v33 = vld [vmem:[%s5236_s16 + $0x50] sm:$0xff]  ;;  %v5828_v47 = vpop.f32.mrf.mxu1 }
 0x137   : > { %4700 = vmatmul.msk.f32.gmra.mxu1 %vm344_vm1, %v862_v33 }
 0x138   : > { %4603 = vmatmul.msk.f32.gmra.mxu0 %vm344_vm1, %v861_v30 }
 0x139   : > { %4651 = vmatmul.msk.f32.gmra.mxu3 %vm344_vm1, %v5648_v13 }
 0x13a   : > { %4733 = vmatmul.msk.f32.gmra.mxu2 %vm344_vm1, %v5428_v50 }
 0x13c   : > { %v5817_v42 = vpop.f32.mrf.mxu3 }
 0x13d   : > { %v5819_v25 = vpop.f32.mrf.mxu0 }
 0x13e   : > { %7916 = vst [vmem:[#allocation53_spill] sm:$0xff] %v5819_v25  ;;  %v5845_v30 = vpop.f32.mrf.mxu1 }
 0x13f   : > { %4701 = vmatmul.msk.f32.gmra.mxu1 %vm344_vm1, %v5266_v12 }
 0x140   : > { %4604 = vmatmul.msk.f32.gmra.mxu0 %vm344_vm1, %v862_v33  ;;  %v5851_v33 = vpop.f32.mrf.mxu2 }
 0x141   : > { %4652 = vmatmul.msk.f32.gmra.mxu3 %vm344_vm1, %v5670_v17  ;;  %7920 = vst [vmem:[#allocation57_spill] sm:$0xff] %v5851_v33  ;;  %v7952_v33 = vld [vmem:[#allocation24_spill] sm:$0xff] }
 0x142   : > { %4734 = vmatmul.msk.f32.gmra.mxu2 %vm344_vm1, %v5445_v54 }
 0x144   : > { %v5830_v46 = vpop.f32.mrf.mxu3 }
 0x145   : > { %v5834_v9 = vpop.f32.mrf.mxu0 }
 0x146   : > { %7918 = vst [vmem:[#allocation55_spill] sm:$0xff] %v5834_v9  ;;  %v5865_v54 = vpop.f32.mrf.mxu1 }
 0x147   : > { %4702 = vmatmul.msk.f32.gmra.mxu1 %vm344_vm1, %v5283_v16 }
 0x148   : > { %4661 = vmatmul.msk.f32.vlgmr.msra.gmra.mxu0 %vm344_vm1, %v5275_v15 }
 0x149   : > { %4653 = vmatmul.msk.f32.gmra.mxu3 %vm344_vm1, %v5240_v4 }
 0x14a   : > { %4735 = vmatmul.msk.f32.gmra.mxu2 %vm344_vm1, %v5462_v57  ;;  %v5880_v57 = vld [vmem:[%s5236_s16 + $0xfe] sm:$0xff] }
 0x14c   : > { %v5843_v50 = vpop.f32.mrf.mxu3 }
 0x14d   : > { %v5847_v25 = vpop.f32.mrf.mxu0 }
 0x14e   : > { %7919 = vst [vmem:[#allocation56_spill] sm:$0xff] %v5847_v25 }
 0x14f   : > { %4703 = vmatmul.msk.f32.gmra.mxu1 %vm344_vm1, %v5300_v20 }
 0x150   : > { %4662 = vmatmul.msk.f32.gmra.mxu0 %vm344_vm1, %v5292_v19 }
 0x151   : > { %4654 = vmatmul.msk.f32.gmra.mxu3 %vm344_vm1, %v5249_v7  ;;  %v5871_v7 = vpop.f32.mrf.mxu2 }
 0x152   : > { %7922 = vst [vmem:[#allocation59_spill] sm:$0xff] %v5871_v7  ;;  %4736 = vmatmul.msk.f32.gmra.mxu2 %vm344_vm1, %v5479_v60  ;;  %v7950_v7 = vld [vmem:[#allocation2_spill] sm:$0xff] }
 0x154   : > { %v5859_v4 = vpop.f32.mrf.mxu3 }
 0x155   : > { %v5861_v15 = vpop.f32.mrf.mxu0 }
 0x156   : > { %7921 = vst [vmem:[#allocation58_spill] sm:$0xff] %v5861_v15 }
 0x157   : > { %4704 = vmatmul.msk.f32.gmra.mxu1 %vm344_vm1, %v5317_v24 }
 0x158   : > { %4663 = vmatmul.msk.f32.gmra.mxu0 %vm344_vm1, %v5309_v23 }
 0x159   : > { %4655 = vmatmul.msk.f32.gmra.mxu3 %vm344_vm1, %v5258_v10  ;;  %v5888_v10 = vpop.f32.mrf.mxu1  ;;  %v5892_v16 = vpop.f32.mrf.mxu2 }
 0x15a   : > { %4737 = vmatmul.msk.f32.gmra.mxu2 %vm344_vm1, %v5495_v0  ;;  %7924 = vst [vmem:[#allocation61_spill] sm:$0xff] %v5892_v16  ;;  %v5918_v16 = vld [vmem:[%s5236_s16 + $0x10e] sm:$0xff] }
 0x15c   : > { %v5875_v12 = vpop.f32.mrf.mxu3 }
 0x15d   : > { %v5877_v19 = vpop.f32.mrf.mxu0 }
 0x15e   : > { %7923 = vst [vmem:[#allocation60_spill] sm:$0xff] %v5877_v19  ;;  %v5899_v19 = vld [vmem:[%s5236_s16 + $0x106] sm:$0xff] }
 0x15f   : > { %4705 = vmatmul.msk.f32.gmra.mxu1 %vm344_vm1, %v5334_v28 }
 0x160   : > { %4664 = vmatmul.msk.f32.gmra.mxu0 %vm344_vm1, %v5326_v27 }
 0x161   : > { %4656 = vmatmul.msk.f32.gmra.mxu3 %vm344_vm1, %v5880_v57  ;;  %v5909_v20 = vpop.f32.mrf.mxu1  ;;  %v5913_v15 = vpop.f32.mrf.mxu2 }
 0x162   : > { %4738 = vmatmul.msk.f32.gmra.mxu2 %vm344_vm1, %v5513_v6  ;;  %7927 = vst [vmem:[#allocation64_spill] sm:$0xff] %v5913_v15 }
 0x164   : > { %v5894_v23 = vpop.f32.mrf.mxu3 }
 0x165   : > { %v5896_v60 = vpop.f32.mrf.mxu0 }
 0x166   : > { %7925 = vst [vmem:[#allocation62_spill] sm:$0xff] %v5896_v60 }
 0x167   : > { %4706 = vmatmul.msk.f32.gmra.mxu1 %vm344_vm1, %v5351_v32 }
 0x168   : > { %4665 = vmatmul.msk.f32.gmra.mxu0 %vm344_vm1, %v5343_v31 }
 0x169   : > { %4657 = vmatmul.msk.f32.gmra.mxu3 %vm344_vm1, %v5899_v19  ;;  %v5930_v6 = vpop.f32.mrf.mxu1 }
 0x16a   : > { %4739 = vmatmul.msk.f32.gmra.mxu2 %vm344_vm1, %v5531_v14  ;;  %7930 = vst [vmem:[#allocation67_spill] sm:$0xff] %v5930_v6 }
 0x16c   : > { %v5911_v0 = vpop.f32.mrf.mxu3 }
 0x16d   : > { %7926 = vst [vmem:[#allocation63_spill] sm:$0xff] %v5911_v0  ;;  %v5915_v60 = vpop.f32.mrf.mxu0 }
 0x16e   : > { %7928 = vst [vmem:[#allocation65_spill] sm:$0xff] %v5915_v60  ;;  %v5936_v60 = vpop.f32.mrf.mxu2 }
 0x16f   : > { %7931 = vst [vmem:[#allocation68_spill] sm:$0xff] %v5936_v60  ;;  %4707 = vmatmul.msk.f32.gmra.mxu1 %vm344_vm1, %v5368_v36 }
 0x170   : > { %4666 = vmatmul.msk.f32.gmra.mxu0 %vm344_vm1, %v5360_v35 }
 0x171   : > { %4658 = vmatmul.msk.f32.gmra.mxu3 %vm344_vm1, %v5918_v16  ;;  %v5950_v25 = vpop.f32.mrf.mxu1 }
 0x172   : > { %4740 = vmatmul.msk.f32.gmra.mxu2 %vm344_vm1, %v5549_v26  ;;  %7933 = vst [vmem:[#allocation70_spill] sm:$0xff] %v5950_v25 }
 0x174   : > { %v5928_v24 = vpop.f32.mrf.mxu3 }
 0x175   : > { %7929 = vst [vmem:[#allocation66_spill] sm:$0xff] %v5928_v24  ;;  %v5932_v15 = vpop.f32.mrf.mxu0  ;;  %v2484_v24 = vld [vmem:[%s5236_s16 + $0x90] sm:$0xff] }
 0x176   : > { %v5956_v32 = vpop.f32.mrf.mxu2 }
 0x177   : > { %7934 = vst [vmem:[#allocation71_spill] sm:$0xff] %v5956_v32  ;;  %4708 = vmatmul.msk.f32.gmra.mxu1 %vm344_vm1, %v5389_v41 }
 0x178   : > { %4667 = vmatmul.msk.f32.gmra.mxu0 %vm344_vm1, %v5381_v40 }
 0x179   : > { %4760 = vmatmul.msk.f32.vlgmr.msrb.gmra.mxu3 %vm344_vm1, %v5326_v27  ;;  %v5970_v36 = vpop.f32.mrf.mxu1 }
 0x17a   : > { %4741 = vmatmul.msk.f32.gmra.mxu2 %vm344_vm1, %v5567_v43  ;;  %7936 = vst [vmem:[#allocation73_spill] sm:$0xff] %v5970_v36  ;;  %v2482_v36 = vld [vmem:[%s5236_s16 + $0x80] sm:$0xff] }
 0x17c   : > { %v5944_v28 = vpop.f32.mrf.mxu3 }
 0x17d   : > { %7932 = vst [vmem:[#allocation69_spill] sm:$0xff] %v5944_v28  ;;  %v5946_v14 = vpop.f32.mrf.mxu0 }
 0x17f   : > { %4709 = vmatmul.msk.f32.gmra.mxu1 %vm344_vm1, %v5406_v45 }
 0x180   : > { %4668 = vmatmul.msk.f32.gmra.mxu0 %vm344_vm1, %v5398_v44 }
 0x181   : > { %4761 = vmatmul.msk.f32.gmra.mxu3 %vm344_vm1, %v5343_v31  ;;  %v5974_v31 = vpop.f32.mrf.mxu2 }
 0x182   : > { %4742 = vmatmul.msk.f32.gmra.mxu2 %vm344_vm1, %v5585_v11  ;;  %7937 = vst [vmem:[#allocation74_spill] sm:$0xff] %v5974_v31 }
 0x184   : > { %v5960_v27 = vpop.f32.mrf.mxu3 }
 0x185   : > { %7935 = vst [vmem:[#allocation72_spill] sm:$0xff] %v5960_v27  ;;  %v5962_v26 = vpop.f32.mrf.mxu0 }
 0x187   : > { %4710 = vmatmul.msk.f32.gmra.mxu1 %vm344_vm1, %v5423_v49 }
 0x188   : > { %4669 = vmatmul.msk.f32.gmra.mxu0 %vm344_vm1, %v5415_v48 }
 0x189   : > { %4762 = vmatmul.msk.f32.gmra.mxu3 %vm344_vm1, %v5360_v35  ;;  %v5988_v35 = vpop.f32.mrf.mxu1  ;;  %v5992_v11 = vpop.f32.mrf.mxu2 }
 0x18a   : > { %4743 = vmatmul.msk.f32.gmra.mxu2 %vm344_vm1, %v5598_v62  ;;  %7939 = vst [vmem:[#allocation76_spill] sm:$0xff] %v5988_v35  ;;  %v2481_v35 = vld [vmem:[%s5236_s16 + $0x78] sm:$0xff] }
 0x18b   : > { %7941 = vst [vmem:[#allocation78_spill] sm:$0xff] %v5992_v11 }
 0x18c   : > { %v5976_v43 = vpop.f32.mrf.mxu3 }
 0x18d   : > { %7938 = vst [vmem:[#allocation75_spill] sm:$0xff] %v5976_v43  ;;  %v5978_v32 = vpop.f32.mrf.mxu0 }
 0x18f   : > { %4711 = vmatmul.msk.f32.gmra.mxu1 %vm344_vm1, %v5440_v53 }
 0x190   : > { %4670 = vmatmul.msk.f32.gmra.mxu0 %vm344_vm1, %v5432_v52 }
 0x191   : > { %4763 = vmatmul.msk.f32.gmra.mxu3 %vm344_vm1, %v5381_v40  ;;  %v6006_v45 = vpop.f32.mrf.mxu1  ;;  %v6012_v11 = vpop.f32.mrf.mxu2 }
 0x192   : > { %4744 = vmatmul.msk.f32.gmra.mxu2 %vm344_vm1, %v5611_v39  ;;  %7943 = vst [vmem:[#allocation80_spill] sm:$0xff] %v6006_v45  ;;  %v7956_v45 = vld [vmem:[#allocation8_spill] sm:$0xff] }
 0x194   : > { %v5990_v41 = vpop.f32.mrf.mxu3 }
 0x195   : > { %7940 = vst [vmem:[#allocation77_spill] sm:$0xff] %v5990_v41  ;;  %v5994_v31 = vpop.f32.mrf.mxu0 }
 0x197   : > { %4712 = vmatmul.msk.f32.gmra.mxu1 %vm344_vm1, %v5457_v56 }
 0x198   : > { %4671 = vmatmul.msk.f32.gmra.mxu0 %vm344_vm1, %v5448_v55 }
 0x199   : > { %4764 = vmatmul.msk.f32.gmra.mxu3 %vm344_vm1, %v5398_v44  ;;  %v6026_v39 = vpop.f32.mrf.mxu1  ;;  %v6032_v53 = vpop.f32.mrf.mxu2 }
 0x19a   : > { %4745 = vmatmul.msk.f32.gmra.mxu2 %vm344_vm1, %v5622_v34  ;;  %7945 = vst [vmem:[#allocation82_spill] sm:$0xff] %v6026_v39 }
 0x19c   : > { %v6004_v40 = vpop.f32.mrf.mxu3 }
 0x19d   : > { %7942 = vst [vmem:[#allocation79_spill] sm:$0xff] %v6004_v40  ;;  %v6008_v62 = vpop.f32.mrf.mxu0  ;;  %v7953_v40 = vld [vmem:[#allocation6_spill] sm:$0xff] }
 0x19f   : > { %4713 = vmatmul.msk.f32.gmra.mxu1 %vm344_vm1, %v5474_v59 }
 0x1a0   : > { %4672 = vmatmul.msk.f32.gmra.mxu0 %vm344_vm1, %v5465_v58 }
 0x1a1   : > { %4765 = vmatmul.msk.f32.gmra.mxu3 %vm344_vm1, %v5415_v48  ;;  %v6046_v56 = vpop.f32.mrf.mxu1 }
 0x1a2   : > { %4746 = vmatmul.msk.f32.gmra.mxu2 %vm344_vm1, %v5637_v37  ;;  %7947 = vst [vmem:[#allocation84_spill] sm:$0xff] %v6046_v56 }
 0x1a4   : > { %v6020_v44 = vpop.f32.mrf.mxu3 }
 0x1a5   : > { %7944 = vst [vmem:[#allocation81_spill] sm:$0xff] %v6020_v44  ;;  %v6022_v49 = vpop.f32.mrf.mxu0  ;;  %v2995_v44 = vld [vmem:[%s7806_s4] sm:$0xff] }
 0x1a6   : > { %3084 = vmatpush.msra.mxu1 %v2995_v44 }
 0x1a8   : > { %4673 = vmatmul.msk.f32.gmra.mxu0 %vm344_vm1, %v5482_v61 }
 0x1a9   : > { %4766 = vmatmul.msk.f32.gmra.mxu3 %vm344_vm1, %v5432_v52  ;;  %v6050_v52 = vpop.f32.mrf.mxu2  ;;  %v1809_v59 = vpop.f32.mrf.mxu1 }
 0x1aa   : > { %4747 = vmatmul.msk.f32.gmra.mxu2 %vm344_vm1, %v5648_v13  ;;  %v552_v13 = vadd.f32 %v5653_v3, %v7950_v7 }
 0x1ac   : > { %v6036_v48 = vpop.f32.mrf.mxu3  ;;  %v822_v56 = vadd.f32 %v7952_v33, %v552_v13 }
 0x1ad   : > { %7946 = vst [vmem:[#allocation83_spill] sm:$0xff] %v6036_v48  ;;  %v6038_v34 = vpop.f32.mrf.mxu0  ;;  %v7949_v48 = vld [vmem:[#allocation4_spill] sm:$0xff] }
 0x1b0   : > { %4674 = vmatmul.msk.f32.gmra.mxu0 %vm344_vm1, %v5498_v1 }
 0x1b1   : > { %4767 = vmatmul.msk.f32.gmra.mxu3 %vm344_vm1, %v5448_v55  ;;  %v4848_v55 = vld [vmem:[%s7806_s4 + $0x8] sm:$0xff]  ;;  %v2079_v9 = vpop.f32.mrf.mxu2  ;;  %v1812_v8 = vpop.f32.mrf.mxu1 }
 0x1b2   : > { %3298 = vmatpush.msra.mxu2 %v4848_v55  ;;  %v1092_v55 = vadd.f32 %v5932_v15, %v822_v56 }
 0x1b3   : > { %4748 = vmatmul.msk.f32.gmra.mxu2 %vm344_vm1, %v5670_v17  ;;  %v7954_v17 = vld [vmem:[#allocation3_spill] sm:$0xff] }
 0x1b4   : > { %v6052_v37 = vpop.f32.mrf.mxu3  ;;  %v553_v7 = vadd.f32 %v5653_v3, %v7954_v17  ;;  %v1362_v39 = vadd.f32 %v5704_v5, %v1092_v55  ;;  %v7957_v17 = vld [vmem:[#allocation5_spill] sm:$0xff] }
 0x1b5   : > { %7948 = vst [vmem:[#allocation85_spill] sm:$0xff] %v6052_v37  ;;  %v6054_v60 = vpop.f32.mrf.mxu0  ;;  %v554_v5 = vadd.f32 %v5653_v3, %v7957_v17 }
 0x1b6   : > { %v823_v33 = vadd.f32 %v5678_v51, %v553_v7  ;;  %v7959_v7 = vld [vmem:[#allocation32_spill] sm:$0xff] }
 0x1b8   : > { %4675 = vmatmul.msk.f32.gmra.mxu0 %vm344_vm1, %v7949_v48  ;;  %v1093_v15 = vadd.f32 %v5946_v14, %v823_v33 }
 0x1b9   : > { %4768 = vmatmul.msk.f32.gmra.mxu3 %vm344_vm1, %v5465_v58  ;;  %v2082_v41 = vpop.f32.mrf.mxu2 }
 0x1ba   : > { %v1363_v14 = vadd.f32 %v5716_v63, %v1093_v15  ;;  %v7961_v63 = vld [vmem:[#allocation7_spill] sm:$0xff] }
 0x1bb   : > { %v555_v15 = vadd.f32 %v5653_v3, %v7961_v63  ;;  %v7964_v63 = vld [vmem:[#allocation10_spill] sm:$0xff] }
 0x1bc   : > { %v6067_v37 = vpop.f32.mrf.mxu3 }
 0x1bd   : > { %7951 = vst [vmem:[#allocation4_spill] sm:$0xff] %v6067_v37  ;;  %v6072_v58 = vpop.f32.mrf.mxu0 }
 0x1c0   : > { %4676 = vmatmul.msk.f32.gmra.mxu0 %vm344_vm1, %v7953_v40 }
 0x1c1   : > { %4769 = vmatmul.msk.f32.gmra.mxu3 %vm344_vm1, %v5482_v61  ;;  %v6092_v61 = vld [vmem:[%s5236_s16 + $0xc0] sm:$0xff]  ;;  %v2085_v33 = vpop.f32.mrf.mxu2 }
 0x1c2   : > { %4714 = vmatmul.msk.f32.gmra.mxu1 %vm344_vm1, %v6092_v61 }
 0x1c4   : > { %v6082_v37 = vpop.f32.mrf.mxu3 }
 0x1c5   : > { %7955 = vst [vmem:[#allocation2_spill] sm:$0xff] %v6082_v37  ;;  %v1539_v44 = vpop.f32.mrf.mxu0  ;;  %v2478_v37 = vld [vmem:[%s5236_s16 + $0x60] sm:$0xff] }
 0x1c6   : > { %v1632_v13 = vadd.f32 %v1539_v44, %v1362_v39 }
 0x1c8   : > { %v1902_v56 = vadd.f32 %v1809_v59, %v1632_v13  ;;  %4677 = vmatmul.msk.f32.gmra.mxu0 %vm344_vm1, %v7956_v45  ;;  %v1815_v59 = vpop.f32.mrf.mxu1 }
 0x1c9   : > { %4770 = vmatmul.msk.f32.gmra.mxu3 %vm344_vm1, %v5498_v1  ;;  %v824_v1 = vadd.f32 %v7959_v7, %v554_v5 }
 0x1ca   : > { %v6096_v55 = vadd.f32 %v2079_v9, %v1902_v56  ;;  %v7960_v9 = vld [vmem:[#allocation11_spill] sm:$0xff] }
 0x1cb   : > { %v1094_v13 = vadd.f32 %v5962_v26, %v824_v1  ;;  %v6110_v56 = vld [vmem:[%s5236_s16 + $0xc8] sm:$0xff] }
 0x1cc   : > { %v6100_v51 = vpop.f32.mrf.mxu3  ;;  %4715 = vmatmul.msk.f32.gmra.mxu1 %vm344_vm1, %v6110_v56 }
 0x1cd   : > { %7958 = vst [vmem:[#allocation24_spill] sm:$0xff] %v6100_v51  ;;  %v1542_v39 = vpop.f32.mrf.mxu0 }
 0x1ce   : > { %v1633_v44 = vadd.f32 %v1542_v39, %v1363_v14  ;;  %v6122_v14 = vld [vmem:[%s5236_s16 + $0xaf] sm:$0xff]  ;;  %v1955_v39 = vld [vmem:[%s5236_s16 + $0xe6] sm:$0xff] }
 0x1cf   : > { %4749 = vmatmul.msk.f32.gmra.mxu2 %vm344_vm1, %v1955_v39  ;;  %v1956_v39 = vld [vmem:[%s5236_s16 + $0xee] sm:$0xff] }
 0x1d0   : > { %v1903_v17 = vadd.f32 %v1812_v8, %v1633_v44  ;;  %4678 = vmatmul.msk.f32.gmra.mxu0 %vm344_vm1, %v7960_v9  ;;  %v1364_v8 = vadd.f32 %v5734_v22, %v1094_v13  ;;  %v2088_v22 = vpop.f32.mrf.mxu2  ;;  %v6134_v13 = vld [vmem:[%s5236_s16 + $0xd0] sm:$0xff] }
 0x1d1   : > { %4771 = vmatmul.msk.f32.gmra.mxu3 %vm344_vm1, %v7949_v48  ;;  %v7963_v48 = vld [vmem:[#allocation36_spill] sm:$0xff] }
 0x1d2   : > { %v6114_v51 = vadd.f32 %v2082_v41, %v1903_v17  ;;  %v825_v7 = vadd.f32 %v7963_v48, %v555_v15  ;;  %v1818_v41 = vpop.f32.mrf.mxu1  ;;  %v556_v15 = vadd.f32 %v5653_v3, %v7964_v63 }
 0x1d4   : > { %v6118_v26 = vpop.f32.mrf.mxu3  ;;  %v1095_v44 = vadd.f32 %v5978_v32, %v825_v7  ;;  %4716 = vmatmul.msk.f32.gmra.mxu1 %vm344_vm1, %v6134_v13  ;;  %v5146_v7 = vmov 0  }
 0x1d5   : > { %7962 = vst [vmem:[#allocation6_spill] sm:$0xff] %v6118_v26  ;;  %v1545_v5 = vpop.f32.mrf.mxu0  ;;  %5099 = vset.pattern.permute.xlu0 %v5146_v7  ;;  %5100 = vset.pattern.permute.xlu1 %v5146_v7 }
 0x1d6   : > { %v1634_v1 = vadd.f32 %v1545_v5, %v1364_v8  ;;  %v1365_v32 = vadd.f32 %v5751_v21, %v1095_v44  ;;  %v6163_v21 = vld [vmem:[%s5236_s16 + $0xd8] sm:$0xff]  ;;  %5101 = vset.pattern.permute.xlu2 %v5146_v7 }
 0x1d7   : > { %4750 = vmatmul.msk.f32.gmra.mxu2 %vm344_vm1, %v1956_v39  ;;  %v7966_v44 = vld [vmem:[#allocation13_spill] sm:$0xff] }
 0x1d8   : > { %v1904_v17 = vadd.f32 %v1815_v59, %v1634_v1  ;;  %4679 = vmatmul.msk.f32.gmra.mxu0 %vm344_vm1, %v6122_v14  ;;  %v6151_v59 = vld [vmem:[%s5236_s16 + $0xb7] sm:$0xff]  ;;  %v2774_v1 = vld [vmem:[%s6147_s29] sm:$0xff]  ;;  %v2091_v39 = vpop.f32.mrf.mxu2 }
 0x1d9   : > { %4772 = vmatmul.msk.f32.gmra.mxu3 %vm344_vm1, %v7953_v40  ;;  %2807 = vperm.xlu0 %5099, %v2774_v1   ;;  %v6177_v7 = vld [vmem:[%s5236_s16 + $0xbf] sm:$0xff]  ;;  %v1957_v1 = vld [vmem:[%s5236_s16 + $0xf6] sm:$0xff] }
 0x1da   : > { %v6138_v8 = vadd.f32 %v2085_v33, %v1904_v17  ;;  %v826_v33 = vadd.f32 %v5727_v18, %v556_v15  ;;  %v1821_v18 = vpop.f32.mrf.mxu1  ;;  %v557_v15 = vadd.f32 %v5653_v3, %v7966_v44  ;;  %v7969_v44 = vld [vmem:[#allocation41_spill] sm:$0xff] }
 0x1dc   : > { %v6142_v5 = vpop.f32.mrf.mxu3  ;;  %v1096_v17 = vadd.f32 %v5994_v31, %v826_v33  ;;  %4717 = vmatmul.msk.f32.gmra.mxu1 %vm344_vm1, %v6163_v21 }
 0x1dd   : > { %7965 = vst [vmem:[#allocation3_spill] sm:$0xff] %v6142_v5  ;;  %v1548_v40 = vpop.f32.mrf.mxu0  ;;  %v827_v5 = vadd.f32 %v7969_v44, %v557_v15 }
 0x1de   : > { %v1635_v48 = vadd.f32 %v1548_v40, %v1365_v32  ;;  %v7967_v32 = vld [vmem:[#allocation26_spill] sm:$0xff]  ;;  %v1366_v33 = vadd.f32 %v5768_v2, %v1096_v17  ;;  %v7970_v17 = vld [vmem:[#allocation15_spill] sm:$0xff] }
 0x1df   : > { %v1120_v31 = vadd.f32 %v6012_v11, %v7967_v32  ;;  %4751 = vmatmul.msk.f32.gmra.mxu2 %vm344_vm1, %v1957_v1  ;;  %v2775_v11 = vld [vmem:[%s6147_s29 + $0x8] sm:$0xff]  ;;  %v6189_v2 = vld [vmem:[%s5236_s16 + $0xe0] sm:$0xff]  ;;  %v558_v15 = vadd.f32 %v5653_v3, %v7970_v17  ;;  %v7971_v32 = vld [vmem:[#allocation28_spill] sm:$0xff] }
 0x1e0   : > { %v1905_v63 = vadd.f32 %v1818_v41, %v1635_v48  ;;  %4680 = vmatmul.msk.f32.gmra.mxu0 %vm344_vm1, %v6151_v59  ;;  %v7973_v1 = vld [vmem:[#allocation44_spill] sm:$0xff] }
 0x1e1   : > { %4773 = vmatmul.msk.f32.gmra.mxu3 %vm344_vm1, %v7956_v45  ;;  %2812 = vperm.xlu0 %5099, %v2775_v11   ;;  %v828_v3 = vadd.f32 %v7973_v1, %v558_v15 }
 0x1e2   : > { %v6169_v40 = vadd.f32 %v2088_v22, %v1905_v63  ;;  %v1097_v22 = vadd.f32 %v6008_v62, %v827_v5 }
 0x1e4   : > { %v1353_v41 = vpop.f32.mrf.mxu3  ;;  %4718 = vmatmul.msk.f32.gmra.mxu1 %vm344_vm1, %v6189_v2 }
 0x1e5   : > { %v6173_v45 = vadd.f32 %v1353_v41, %v1120_v31  ;;  %v1551_v48 = vpop.f32.mrf.mxu0  ;;  %v1121_v31 = vadd.f32 %v6032_v53, %v7971_v32  ;;  %v2780_v53 = vld [vmem:[%s6147_s29 + $0x30] sm:$0xff] }
 0x1e6   : > { %v1636_v26 = vadd.f32 %v1551_v48, %v1366_v33  ;;  %v1414_v33 = vld [vmem:[%s5236_s16 + $0xc7] sm:$0xff]  ;;  %v2094_v48 = vpop.f32.mrf.mxu2 }
 0x1e7   : > { %7968 = vst [vmem:[#allocation8_spill] sm:$0xff] %v6173_v45  ;;  %4752 = vmatmul.msk.f32.gmra.mxu2 %vm344_vm1, %v5880_v57 }
 0x1e8   : > { %v1906_v63 = vadd.f32 %v1821_v18, %v1636_v26  ;;  %4681 = vmatmul.msk.f32.gmra.mxu0 %vm344_vm1, %v6177_v7  ;;  %v1824_v26 = vpop.f32.mrf.mxu1 }
 0x1e9   : > { %4774 = vmatmul.msk.f32.gmra.mxu3 %vm344_vm1, %v7960_v9  ;;  %v1367_v9 = vadd.f32 %v5787_v29, %v1097_v22  ;;  %2837 = vperm.xlu0 %5099, %v2780_v53   ;;  %v6212_v29 = vld [vmem:[%s5236_s16 + $0xe8] sm:$0xff]  ;;  %v2786_v53 = vld [vmem:[%s6147_s29 + $0x60] sm:$0xff] }
 0x1ea   : > { %v6195_v41 = vadd.f32 %v2091_v39, %v1906_v63  ;;  %v1098_v39 = vadd.f32 %v6022_v49, %v828_v3  ;;  %v7974_v22 = vld [vmem:[#allocation31_spill] sm:$0xff] }
 0x1eb   : > { %v1122_v63 = vadd.f32 %v6050_v52, %v7974_v22  ;;  %v2776_v52 = vld [vmem:[%s6147_s29 + $0x10] sm:$0xff]  ;;  %v1417_v22 = vld [vmem:[%s5236_s16 + $0xdf] sm:$0xff] }
 0x1ec   : > { %v1356_v62 = vpop.f32.mrf.mxu3  ;;  %4719 = vmatmul.msk.f32.gmra.mxu1 %vm344_vm1, %v6212_v29  ;;  %v1368_v15 = vadd.f32 %v5802_v38, %v1098_v39  ;;  %2817 = vperm.xlu1 %5100, %v2776_v52   ;;  %v6232_v38 = vld [vmem:[%s5236_s16 + $0xf0] sm:$0xff]  ;;  %v1962_v52 = vld [vmem:[%s5236_s16 + $0x11e] sm:$0xff] }
 0x1ed   : > { %v6199_v5 = vadd.f32 %v1356_v62, %v1121_v31  ;;  %v1554_v18 = vpop.f32.mrf.mxu0  ;;  %v1415_v62 = vld [vmem:[%s5236_s16 + $0xcf] sm:$0xff] }
 0x1ee   : > { %v1637_v44 = vadd.f32 %v1554_v18, %v1367_v9  ;;  %v2097_v9 = vpop.f32.mrf.mxu2 }
 0x1ef   : > { %7972 = vst [vmem:[#allocation5_spill] sm:$0xff] %v6199_v5  ;;  %4753 = vmatmul.msk.f32.gmra.mxu2 %vm344_vm1, %v5899_v19  ;;  %v2800_v5 = vld [vmem:[%s6147_s29 + $0xd0] sm:$0xff] }
 0x1f0   : > { %v1907_v11 = vadd.f32 %v1824_v26, %v1637_v44  ;;  %4682 = vmatmul.msk.f32.gmra.mxu0 %vm344_vm1, %v1414_v33  ;;  %v1827_v31 = vpop.f32.mrf.mxu1  ;;  %v2783_v26 = vld [vmem:[%s6147_s29 + $0x48] sm:$0xff]  ;;  %v1416_v44 = vld [vmem:[%s5236_s16 + $0xd7] sm:$0xff] }
 0x1f1   : > { %4775 = vmatmul.msk.f32.gmra.mxu3 %vm344_vm1, %v6122_v14  ;;  %2852 = vperm.xlu0 %5099, %v2783_v26   ;;  %v2792_v26 = vld [vmem:[%s6147_s29 + $0x90] sm:$0xff] }
 0x1f2   : > { %v6216_v17 = vadd.f32 %v2094_v48, %v1907_v11 }
 0x1f4   : > { %v1359_v57 = vpop.f32.mrf.mxu3  ;;  %4720 = vmatmul.msk.f32.gmra.mxu1 %vm344_vm1, %v6232_v38 }
 0x1f5   : > { %v6220_v49 = vadd.f32 %v1359_v57, %v1122_v63  ;;  %v1557_v32 = vpop.f32.mrf.mxu0  ;;  %v1961_v63 = vld [vmem:[%s5236_s16 + $0x116] sm:$0xff] }
 0x1f6   : > { %v1638_v14 = vadd.f32 %v1557_v32, %v1368_v15  ;;  %v2789_v57 = vld [vmem:[%s6147_s29 + $0x78] sm:$0xff]  ;;  %v6384_v45 = vpop.f32.mrf.mxu2 }
 0x1f7   : > { %7975 = vst [vmem:[#allocation32_spill] sm:$0xff] %v6220_v49  ;;  %4754 = vmatmul.msk.f32.gmra.mxu2 %vm344_vm1, %v5918_v16  ;;  %v2477_v49 = vld [vmem:[%s5236_s16 + $0x58] sm:$0xff] }
 0x1f8   : > { %v1908_v18 = vadd.f32 %v1827_v31, %v1638_v14  ;;  %4683 = vmatmul.msk.f32.gmra.mxu0 %vm344_vm1, %v1415_v62  ;;  %v1418_v14 = vld [vmem:[%s5236_s16 + $0xe7] sm:$0xff] }
 0x1f9   : > { %4776 = vmatmul.msk.f32.gmra.mxu3 %vm344_vm1, %v6151_v59  ;;  %v2777_v59 = vld [vmem:[%s6147_s29 + $0x18] sm:$0xff]  ;;  %2867 = vperm.xlu0 %5099, %v2786_v53   ;;  %v1963_v53 = vld [vmem:[%s5236_s16 + $0x126] sm:$0xff] }
 0x1fa   : > { %v6234_v48 = vadd.f32 %v2097_v9, %v1908_v18  ;;  %2822 = vperm.xlu1 %5100, %v2777_v59   ;;  %v1419_v59 = vld [vmem:[%s5236_s16 + $0xef] sm:$0xff] }
 0x1fc   : > { %v2349_v19 = vpop.f32.mrf.mxu3 }
 0x1fd   : > { %v6239_v1 = vadd.f32 %v2349_v19, %v6096_v55  ;;  %v6241_v3 = vpop.f32.mrf.mxu0  ;;  %v6252_v55 = vld [vmem:[%s5236_s16 + $0xf8] sm:$0xff] }
 0x1fe   : > { %4721 = vmatmul.msk.f32.gmra.mxu1 %vm344_vm1, %v6252_v55 }
 0x1ff   : > { %4755 = vmatmul.msk.f32.gmra.mxu2 %vm344_vm1, %v1961_v63 }
 0x200   : > { %4684 = vmatmul.msk.f32.gmra.mxu0 %vm344_vm1, %v1416_v44 }
 0x201   : > { %4777 = vmatmul.msk.f32.gmra.mxu3 %vm344_vm1, %v6177_v7  ;;  %v2781_v7 = vld [vmem:[%s6147_s29 + $0x38] sm:$0xff]  ;;  %2882 = vperm.xlu0 %5099, %v2789_v57  }
 0x202   : > { %2842 = vperm.xlu1 %5100, %v2781_v7  }
 0x204   : > { %v2352_v39 = vpop.f32.mrf.mxu3 }
 0x205   : > { %v6257_v11 = vadd.f32 %v2352_v39, %v6114_v51  ;;  %v6259_v16 = vpop.f32.mrf.mxu0  ;;  %v6269_v51 = vld [vmem:[%s5236_s16 + $0x100] sm:$0xff]  ;;  %v2795_v39 = vld [vmem:[%s6147_s29 + $0xa8] sm:$0xff] }
 0x206   : > { %4722 = vmatmul.msk.f32.gmra.mxu1 %vm344_vm1, %v6269_v51 }
 0x207   : > { %4756 = vmatmul.msk.f32.gmra.mxu2 %vm344_vm1, %v1962_v52  ;;  %v2778_v52 = vld [vmem:[%s6147_s29 + $0x20] sm:$0xff] }
 0x208   : > { %4685 = vmatmul.msk.f32.gmra.mxu0 %vm344_vm1, %v1417_v22  ;;  %2827 = vperm.xlu2 %5101, %v2778_v52  }
 0x209   : > { %4778 = vmatmul.msk.f32.gmra.mxu3 %vm344_vm1, %v1414_v33  ;;  %v2784_v33 = vld [vmem:[%s6147_s29 + $0x50] sm:$0xff]  ;;  %2897 = vperm.xlu0 %5099, %v2792_v26   ;;  %v2798_v26 = vld [vmem:[%s6147_s29 + $0xc0] sm:$0xff] }
 0x20a   : > { %2857 = vperm.xlu1 %5100, %v2784_v33   ;;  %v2790_v33 = vld [vmem:[%s6147_s29 + $0x80] sm:$0xff] }
 0x20c   : > { %v2355_v15 = vpop.f32.mrf.mxu3 }
 0x20d   : > { %v6274_v32 = vadd.f32 %v2355_v15, %v6138_v8  ;;  %v6276_v31 = vpop.f32.mrf.mxu0  ;;  %v6286_v8 = vld [vmem:[%s5236_s16 + $0x108] sm:$0xff]  ;;  %v1420_v15 = vld [vmem:[%s5236_s16 + $0xf7] sm:$0xff] }
 0x20e   : > { %4723 = vmatmul.msk.f32.gmra.mxu1 %vm344_vm1, %v6286_v8 }
 0x20f   : > { %4757 = vmatmul.msk.f32.gmra.mxu2 %vm344_vm1, %v1963_v53  ;;  %v1421_v53 = vld [vmem:[%s5236_s16 + $0xff] sm:$0xff] }
 0x210   : > { %4686 = vmatmul.msk.f32.gmra.mxu0 %vm344_vm1, %v1418_v14 }
 0x211   : > { %4779 = vmatmul.msk.f32.gmra.mxu3 %vm344_vm1, %v1415_v62  ;;  %v2787_v62 = vld [vmem:[%s6147_s29 + $0x68] sm:$0xff]  ;;  %2912 = vperm.xlu0 %5099, %v2795_v39   ;;  %v2793_v39 = vld [vmem:[%s6147_s29 + $0x98] sm:$0xff] }
 0x212   : > { %2872 = vperm.xlu1 %5100, %v2787_v62   ;;  %v2779_v62 = vld [vmem:[%s6147_s29 + $0x28] sm:$0xff] }
 0x213   : > { %2832 = vperm.xlu2 %5101, %v2779_v62   ;;  %v2804_v62 = vld [vmem:[%s6147_s29 + $0xf0] sm:$0xff] }
 0x214   : > { %v2358_v9 = vpop.f32.mrf.mxu3 }
 0x215   : > { %v6291_v18 = vadd.f32 %v2358_v9, %v6169_v40  ;;  %v6293_v19 = vpop.f32.mrf.mxu0  ;;  %v6303_v40 = vld [vmem:[%s5236_s16 + $0x110] sm:$0xff] }
 0x216   : > { %7976 = vst [vmem:[#allocation11_spill] sm:$0xff] %v6303_v40  ;;  %4724 = vmatmul.msk.f32.gmra.mxu1 %vm344_vm1, %v6303_v40 }
 0x218   : > { %4687 = vmatmul.msk.f32.gmra.mxu0 %vm344_vm1, %v1419_v59 }
 0x219   : > { %4780 = vmatmul.msk.f32.gmra.mxu3 %vm344_vm1, %v1416_v44  ;;  %2927 = vperm.xlu0 %5099, %v2798_v26   ;;  %v2782_v26 = vld [vmem:[%s6147_s29 + $0x40] sm:$0xff] }
 0x21a   : > { %2887 = vperm.xlu1 %5100, %v2790_v33   ;;  %v1422_v33 = vld [vmem:[%s5236_s16 + $0x107] sm:$0xff] }
 0x21b   : > { %2847 = vperm.xlu2 %5101, %v2782_v26   ;;  %v2473_v26 = vld [vmem:[%s5236_s16 + $0x38] sm:$0xff] }
 0x21c   : > { %v2361_v63 = vpop.f32.mrf.mxu3 }
 0x21d   : > { %v6308_v7 = vadd.f32 %v2361_v63, %v6195_v41  ;;  %v6310_v57 = vpop.f32.mrf.mxu0  ;;  %v2801_v63 = vld [vmem:[%s6147_s29 + $0xd8] sm:$0xff] }
 0x220   : > { %4688 = vmatmul.msk.f32.gmra.mxu0 %vm344_vm1, %v1420_v15 }
 0x221   : > { %4781 = vmatmul.msk.f32.gmra.mxu3 %vm344_vm1, %v1417_v22  ;;  %2942 = vperm.xlu0 %5099, %v2801_v63   ;;  %v2799_v63 = vld [vmem:[%s6147_s29 + $0xc8] sm:$0xff] }
 0x222   : > { %2902 = vperm.xlu1 %5100, %v2793_v39   ;;  %v2785_v39 = vld [vmem:[%s6147_s29 + $0x58] sm:$0xff] }
 0x223   : > { %2862 = vperm.xlu2 %5101, %v2785_v39   ;;  %v2474_v39 = vld [vmem:[%s5236_s16 + $0x40] sm:$0xff] }
 0x224   : > { %v2364_v44 = vpop.f32.mrf.mxu3 }
 0x225   : > { %v6319_v41 = vadd.f32 %v2364_v44, %v6216_v17  ;;  %v6321_v9 = vpop.f32.mrf.mxu0  ;;  %v2796_v44 = vld [vmem:[%s6147_s29 + $0xb0] sm:$0xff] }
 0x228   : > { %4689 = vmatmul.msk.f32.gmra.mxu0 %vm344_vm1, %v1421_v53 }
 0x229   : > { %4782 = vmatmul.msk.f32.gmra.mxu3 %vm344_vm1, %v1418_v14  ;;  %2957 = vperm.xlu0 %5099, %v2804_v62  }
 0x22a   : > { %2917 = vperm.xlu1 %5100, %v2796_v44   ;;  %v2802_v44 = vld [vmem:[%s6147_s29 + $0xe0] sm:$0xff] }
 0x22c   : > { %v2367_v17 = vpop.f32.mrf.mxu3 }
 0x22d   : > { %v6330_v22 = vadd.f32 %v2367_v17, %v6234_v48  ;;  %v6332_v52 = vpop.f32.mrf.mxu0  ;;  %v1423_v48 = vld [vmem:[%s5236_s16 + $0x10f] sm:$0xff] }
 0x22e   : > { %7977 = vst [vmem:[#allocation7_spill] sm:$0xff] %v6332_v52 }
 0x230   : > { %4690 = vmatmul.msk.f32.gmra.mxu0 %vm344_vm1, %v1422_v33 }
 0x231   : > { %4783 = vmatmul.msk.f32.gmra.mxu3 %vm344_vm1, %v1419_v59  ;;  %v2788_v59 = vld [vmem:[%s6147_s29 + $0x70] sm:$0xff] }
 0x232   : > { %2932 = vperm.xlu1 %5100, %v2799_v63   ;;  %2877 = vperm.xlu2 %5101, %v2788_v59   ;;  %v2475_v59 = vld [vmem:[%s5236_s16 + $0x48] sm:$0xff] }
 0x235   : > { %v6340_v14 = vpop.f32.mrf.mxu0 }
 0x236   : > { %7978 = vst [vmem:[#allocation36_spill] sm:$0xff] %v6340_v14  ;;  %v2483_v14 = vld [vmem:[%s5236_s16 + $0x88] sm:$0xff] }
 0x238   : > { %4691 = vmatmul.msk.f32.gmra.mxu0 %vm344_vm1, %v1423_v48 }
 0x239   : > { %4784 = vmatmul.msk.f32.gmra.mxu3 %vm344_vm1, %v1420_v15  ;;  %v2791_v15 = vld [vmem:[%s6147_s29 + $0x88] sm:$0xff] }
 0x23a   : > { %2947 = vperm.xlu1 %5100, %v2802_v44   ;;  %2892 = vperm.xlu2 %5101, %v2791_v15   ;;  %v2231_v15 = vld [vmem:[%s5236_s16 + $0x117] sm:$0xff] }
 0x23d   : > { %v6347_v17 = vpop.f32.mrf.mxu0 }
 0x23e   : > { %7979 = vst [vmem:[#allocation10_spill] sm:$0xff] %v6347_v17 }
 0x240   : > { %4793 = vmatmul.msk.f32.vlgmr.msrb.gmra.mxu0 %vm344_vm1, %v2473_v26  ;;  %v6366_v26 = vpop.f32.mrf.mxu1 }
 0x241   : > { %4785 = vmatmul.msk.f32.gmra.mxu3 %vm344_vm1, %v1421_v53  ;;  %v2794_v53 = vld [vmem:[%s6147_s29 + $0xa0] sm:$0xff] }
 0x242   : > { %2907 = vperm.xlu2 %5101, %v2794_v53  }
 0x245   : > { %v6354_v62 = vpop.f32.mrf.mxu0 }
 0x246   : > { %7980 = vst [vmem:[#allocation13_spill] sm:$0xff] %v6354_v62 }
 0x248   : > { %4794 = vmatmul.msk.f32.gmra.mxu0 %vm344_vm1, %v2474_v39  ;;  %v2797_v39 = vld [vmem:[%s6147_s29 + $0xb8] sm:$0xff]  ;;  %v6375_v53 = vpop.f32.mrf.mxu1 }
 0x249   : > { %4786 = vmatmul.msk.f32.gmra.mxu3 %vm344_vm1, %v1422_v33  ;;  %v2476_v33 = vld [vmem:[%s5236_s16 + $0x50] sm:$0xff] }
 0x24a   : > { %2922 = vperm.xlu2 %5101, %v2797_v39   ;;  %v6386_v39 = vpop.f32.mrf.mxu3 }
 0x24d   : > { %v6360_v63 = vpop.f32.mrf.mxu0 }
 0x24e   : > { %7981 = vst [vmem:[#allocation26_spill] sm:$0xff] %v6360_v63 }
 0x250   : > { %4795 = vmatmul.msk.f32.gmra.mxu0 %vm344_vm1, %v2475_v59  ;;  %v2232_v59 = vld [vmem:[%s5236_s16 + $0x11f] sm:$0xff] }
 0x251   : > { %4787 = vmatmul.msk.f32.gmra.mxu3 %vm344_vm1, %v1423_v48 }
 0x252   : > { %2937 = vperm.xlu2 %5101, %v2800_v5   ;;  %v6402_v63 = vpop.f32.mrf.mxu3 }
 0x255   : > { %v6368_v44 = vpop.f32.mrf.mxu0 }
 0x256   : > { %7982 = vst [vmem:[#allocation41_spill] sm:$0xff] %v6368_v44  ;;  %v2803_v44 = vld [vmem:[%s6147_s29 + $0xe8] sm:$0xff] }
 0x258   : > { %4796 = vmatmul.msk.f32.gmra.mxu0 %vm344_vm1, %v2476_v33  ;;  %v2233_v33 = vld [vmem:[%s5236_s16 + $0x127] sm:$0xff] }
 0x259   : > { %4788 = vmatmul.msk.f32.gmra.mxu3 %vm344_vm1, %v2231_v15 }
 0x25a   : > { %2952 = vperm.xlu2 %5101, %v2803_v44   ;;  %v4873_v44 = vld [vmem:[%s7806_s4 + $0x10] sm:$0xff] }
 0x25b   : > { %3511 = vmatpush.msra.mxu3 %v4873_v44 }
 0x25d   : > { %v6377_v48 = vpop.f32.mrf.mxu0 }
 0x25e   : > { %7983 = vst [vmem:[#allocation15_spill] sm:$0xff] %v6377_v48  ;;  %v6393_v48 = vpop.f32.mrf.mxu1 }
 0x260   : > { %4797 = vmatmul.msk.f32.gmra.mxu0 %vm344_vm1, %v2477_v49  ;;  %v2479_v49 = vld [vmem:[%s5236_s16 + $0x68] sm:$0xff] }
 0x261   : > { %4789 = vmatmul.msk.f32.gmra.mxu3 %vm344_vm1, %v2232_v59  ;;  %v6400_v59 = vpop.f32.mrf.mxu2 }
 0x265   : > { %v6388_v15 = vpop.f32.mrf.mxu0 }
 0x266   : > { %7984 = vst [vmem:[#allocation28_spill] sm:$0xff] %v6388_v15  ;;  %v6405_v15 = vpop.f32.mrf.mxu1 }
 0x268   : > { %4798 = vmatmul.msk.f32.gmra.mxu0 %vm344_vm1, %v2478_v37  ;;  %v2480_v37 = vld [vmem:[%s5236_s16 + $0x70] sm:$0xff] }
 0x269   : > { %4790 = vmatmul.msk.f32.gmra.mxu3 %vm344_vm1, %v2233_v33  ;;  %v6413_v43 = vpop.f32.mrf.mxu2 }
 0x26d   : > { %v6397_v5 = vpop.f32.mrf.mxu0 }
 0x26e   : > { %7985 = vst [vmem:[#allocation44_spill] sm:$0xff] %v6397_v5  ;;  %v6415_v5 = vpop.f32.mrf.mxu3  ;;  %v6418_v62 = vpop.f32.mrf.mxu1 }
 0x270   : > { %4799 = vmatmul.msk.f32.gmra.mxu0 %vm344_vm1, %v2479_v49 }
 0x271   : > { %v6424_v27 = vpop.f32.mrf.mxu2 }
 0x275   : > { %v6410_v33 = vpop.f32.mrf.mxu0 }
 0x276   : > { %7986 = vst [vmem:[#allocation31_spill] sm:$0xff] %v6410_v33  ;;  %v6426_v44 = vpop.f32.mrf.mxu3  ;;  %v6428_v33 = vpop.f32.mrf.mxu1 }
 0x277   : > { %7988 = vst [vmem:[#allocation87_spill] sm:$0xff] %v6428_v33 }
 0x278   : > { %4800 = vmatmul.msk.f32.gmra.mxu0 %vm344_vm1, %v2480_v37 }
 0x279   : > { %v6434_v37 = vpop.f32.mrf.mxu2 }
 0x27d   : > { %v6420_v49 = vpop.f32.mrf.mxu0 }
 0x27e   : > { %7987 = vst [vmem:[#allocation86_spill] sm:$0xff] %v6420_v49  ;;  %v6436_v28 = vpop.f32.mrf.mxu3 }
 0x280   : > { %4801 = vmatmul.msk.f32.gmra.mxu0 %vm344_vm1, %v2481_v35  ;;  %v6441_v35 = vpop.f32.mrf.mxu1 }
 0x281   : > { %7991 = vst [vmem:[#allocation90_spill] sm:$0xff] %v6441_v35 }
 0x285   : > { %v6430_v17 = vpop.f32.mrf.mxu0 }
 0x286   : > { %7989 = vst [vmem:[#allocation88_spill] sm:$0xff] %v6430_v17  ;;  %v6447_v17 = vpop.f32.mrf.mxu2  ;;  %v6449_v52 = vpop.f32.mrf.mxu3 }
 0x287   : > { %7993 = vst [vmem:[#allocation92_spill] sm:$0xff] %v6447_v17 }
 0x288   : > { %4802 = vmatmul.msk.f32.gmra.mxu0 %vm344_vm1, %v2482_v36  ;;  %7994 = vst [vmem:[#allocation93_spill] sm:$0xff] %v6449_v52  ;;  %v6452_v36 = vpop.f32.mrf.mxu1  ;;  %v2486_v52 = vld [vmem:[%s5236_s16 + $0xa0] sm:$0xff] }
 0x289   : > { %7995 = vst [vmem:[#allocation94_spill] sm:$0xff] %v6452_v36 }
 0x28d   : > { %v6438_v49 = vpop.f32.mrf.mxu0 }
 0x28e   : > { %7990 = vst [vmem:[#allocation89_spill] sm:$0xff] %v6438_v49  ;;  %v2485_v49 = vld [vmem:[%s5236_s16 + $0x98] sm:$0xff]  ;;  %v6457_v40 = vpop.f32.mrf.mxu2  ;;  %v6459_v35 = vpop.f32.mrf.mxu3 }
 0x28f   : > { %7997 = vst [vmem:[#allocation96_spill] sm:$0xff] %v6457_v40 }
 0x290   : > { %4803 = vmatmul.msk.f32.gmra.mxu0 %vm344_vm1, %v2483_v14  ;;  %7998 = vst [vmem:[#allocation97_spill] sm:$0xff] %v6459_v35  ;;  %v6462_v14 = vpop.f32.mrf.mxu1  ;;  %v2487_v35 = vld [vmem:[%s5236_s16 + $0xa8] sm:$0xff] }
 0x291   : > { %7999 = vst [vmem:[#allocation98_spill] sm:$0xff] %v6462_v14  ;;  %v4898_v14 = vld [vmem:[%s7806_s4 + $0x18] sm:$0xff] }
 0x292   : > { %3634 = vmatpush.msrb.mxu1 %v4898_v14 }
 0x295   : > { %v6444_v25 = vpop.f32.mrf.mxu0 }
 0x296   : > { %7992 = vst [vmem:[#allocation91_spill] sm:$0xff] %v6444_v25  ;;  %v6470_v36 = vpop.f32.mrf.mxu3 }
 0x297   : > { %8002 = vst [vmem:[#allocation101_spill] sm:$0xff] %v6470_v36 }
 0x298   : > { %4804 = vmatmul.msk.f32.gmra.mxu0 %vm344_vm1, %v2484_v24  ;;  %v6468_v24 = vpop.f32.mrf.mxu2 }
 0x299   : > { %8001 = vst [vmem:[#allocation100_spill] sm:$0xff] %v6468_v24  ;;  %v2489_v24 = vld [vmem:[%s5236_s16 + $0xb8] sm:$0xff] }
 0x29d   : > { %v6454_v6 = vpop.f32.mrf.mxu0 }
 0x29e   : > { %7996 = vst [vmem:[#allocation95_spill] sm:$0xff] %v6454_v6  ;;  %v6472_v6 = vpop.f32.mrf.mxu1 }
 0x29f   : > { %8003 = vst [vmem:[#allocation102_spill] sm:$0xff] %v6472_v6  ;;  %v2488_v6 = vld [vmem:[%s5236_s16 + $0xb0] sm:$0xff] }
 0x2a0   : > { %4805 = vmatmul.msk.f32.gmra.mxu0 %vm344_vm1, %v2485_v49  ;;  %v4923_v49 = vld [vmem:[%s7806_s4 + $0x20] sm:$0xff] }
 0x2a1   : > { %3762 = vmatpush.msrb.mxu2 %v4923_v49 }
 0x2a5   : > { %v6464_v25 = vpop.f32.mrf.mxu0 }
 0x2a6   : > { %8000 = vst [vmem:[#allocation99_spill] sm:$0xff] %v6464_v25  ;;  %v6481_v25 = vpop.f32.mrf.mxu2 }
 0x2a7   : > { %8005 = vst [vmem:[#allocation104_spill] sm:$0xff] %v6481_v25  ;;  %v2808_v25 = vpop.permute.xlu0 %2807 }
 0x2a8   : > { %4806 = vmatmul.msk.f32.gmra.mxu0 %vm344_vm1, %v2486_v52  ;;  %v6483_v52 = vpop.f32.mrf.mxu3 }
 0x2a9   : > { %8006 = vst [vmem:[#allocation105_spill] sm:$0xff] %v6483_v52 }
 0x2ad   : > { %v6474_v40 = vpop.f32.mrf.mxu0 }
 0x2ae   : > { %8004 = vst [vmem:[#allocation103_spill] sm:$0xff] %v6474_v40  ;;  %v6491_v40 = vpop.f32.mrf.mxu1  ;;  %v6495_v17 = vpop.f32.mrf.mxu2 }
 0x2af   : > { %8008 = vst [vmem:[#allocation107_spill] sm:$0xff] %v6491_v40 }
 0x2b0   : > { %4807 = vmatmul.msk.f32.gmra.mxu0 %vm344_vm1, %v2487_v35  ;;  %8009 = vst [vmem:[#allocation108_spill] sm:$0xff] %v6495_v17  ;;  %v6497_v49 = vpop.f32.mrf.mxu3 }
 0x2b1   : > { %8010 = vst [vmem:[#allocation109_spill] sm:$0xff] %v6497_v49 }
 0x2b5   : > { %v6488_v36 = vpop.f32.mrf.mxu0 }
 0x2b6   : > { %8007 = vst [vmem:[#allocation106_spill] sm:$0xff] %v6488_v36  ;;  %v6501_v33 = vpop.f32.mrf.mxu1  ;;  %v6505_v40 = vpop.f32.mrf.mxu2 }
 0x2b7   : > { %8011 = vst [vmem:[#allocation110_spill] sm:$0xff] %v6501_v33 }
 0x2b8   : > { %4808 = vmatmul.msk.f32.gmra.mxu0 %vm344_vm1, %v2488_v6  ;;  %v6507_v17 = vpop.f32.mrf.mxu3 }
 0x2b9   : > { %8012 = vst [vmem:[#allocation111_spill] sm:$0xff] %v6507_v17 }
 0x2bd   : > { %v2619_v35 = vpop.f32.mrf.mxu0 }
 0x2be   : > { %v2712_v52 = vadd.f32 %v2619_v35, %v6239_v1  ;;  %v2813_v1 = vpop.permute.xlu0 %2812 }
 0x2c0   : > { %v2743_v0 = vmax.f32 %v2712_v52, 0.0  ;;  %4809 = vmatmul.msk.f32.gmra.mxu0 %vm344_vm1, %v2489_v24  ;;  %v6511_v24 = vpop.f32.mrf.mxu1 }
 0x2c1   : > { %8013 = vst [vmem:[#allocation112_spill] sm:$0xff] %v6511_v24 }
 0x2c2   : > { %v2960_v14 = vmul.f32 %v2808_v25, %v2743_v0 }
 0x2c4   : > { %4824 = vmatmul.msk.f32.vlgmr.msra.gmra.mxu1 %vm2996_vm2, %v2960_v14  ;;  %v3186_v25 = vrot.slane %v2960_v14, 1  ;;  %v3399_v0 = vrot.slane %v2960_v14, 2  ;;  %v6521_v14 = vpop.f32.mrf.mxu2 }
 0x2c5   : > { %v2622_v36 = vpop.f32.mrf.mxu0 }
 0x2c6   : > { %v2713_v6 = vadd.f32 %v2622_v36, %v6257_v11 }
 0x2c8   : > { %v2744_v49 = vmax.f32 %v2713_v6, 0.0  ;;  %4810 = vmatmul.msk.f32.gmra.mxu0 %vm344_vm1, %v6092_v61  ;;  %v2818_v61 = vpop.permute.xlu1 %2817 }
 0x2ca   : > { %v2961_v52 = vmul.f32 %v2813_v1, %v2744_v49  ;;  %v6523_v1 = vpop.f32.mrf.mxu3 }
 0x2cc   : > { %v3187_v35 = vrot.slane %v2961_v52, 1  ;;  %v3400_v33 = vrot.slane %v2961_v52, 2  ;;  %4825 = vmatmul.msk.f32.gmra.mxu1 %vm2996_vm2, %v2961_v52 }
 0x2cd   : > { %v2625_v11 = vpop.f32.mrf.mxu0 }
 0x2ce   : > { %v2714_v36 = vadd.f32 %v2625_v11, %v6274_v32  ;;  %v3188_v6 = vsel %vm3185_vm3, %v3186_v25, %v3187_v35  ;;  %v3401_v17 = vsel %vm3398_vm4, %v3399_v0, %v3400_v33  ;;  %v6526_v11 = vpop.f32.mrf.mxu1 }
 0x2cf   : > { %4849 = vmatmul.msk.f32.vlgmr.msra.gmra.mxu2 %vm2996_vm2, %v3188_v6  ;;  %4874 = vmatmul.msk.f32.vlgmr.msra.gmra.mxu3 %vm2996_vm2, %v3401_v17  ;;  %8014 = vst [vmem:[#allocation113_spill] sm:$0xff] %v6526_v11 }
 0x2d0   : > { %v2745_v49 = vmax.f32 %v2714_v36, 0.0  ;;  %4811 = vmatmul.msk.f32.gmra.mxu0 %vm344_vm1, %v6110_v56 }
 0x2d2   : > { %v2962_v52 = vmul.f32 %v2818_v61, %v2745_v49  ;;  %v2823_v61 = vpop.permute.xlu1 %2822  ;;  %v6539_v11 = vpop.f32.mrf.mxu3 }
 0x2d3   : > { %8017 = vst [vmem:[#allocation116_spill] sm:$0xff] %v6539_v11  ;;  %v2828_v11 = vpop.permute.xlu2 %2827 }
 0x2d4   : > { %4826 = vmatmul.msk.f32.gmra.mxu1 %vm2996_vm2, %v2962_v52  ;;  %v3189_v32 = vrot.slane %v2962_v52, 1  ;;  %v3402_v25 = vrot.slane %v2962_v52, 2  ;;  %v6537_v52 = vpop.f32.mrf.mxu2 }
 0x2d5   : > { %v2628_v0 = vpop.f32.mrf.mxu0  ;;  %8016 = vst [vmem:[#allocation115_spill] sm:$0xff] %v6537_v52  ;;  %v8019_v52 = vld [vmem:[#allocation48_spill] sm:$0xff] }
 0x2d6   : > { %v2715_v6 = vadd.f32 %v2628_v0, %v6291_v18  ;;  %v3190_v17 = vsel %vm3185_vm3, %v3187_v35, %v3189_v32  ;;  %v3403_v36 = vsel %vm3398_vm4, %v3400_v33, %v3402_v25  ;;  %v6548_v0 = vld [vmem:[%s7805_s3] ss:$0 sm:$0xff] }
 0x2d7   : > { %4850 = vmatmul.msk.f32.gmra.mxu2 %vm2996_vm2, %v3190_v17  ;;  %4875 = vmatmul.msk.f32.gmra.mxu3 %vm2996_vm2, %v3403_v36 }
 0x2d8   : > { %v2746_v56 = vmax.f32 %v2715_v6, 0.0  ;;  %4812 = vmatmul.msk.f32.gmra.mxu0 %vm344_vm1, %v6134_v13  ;;  %v8018_v13 = vld [vmem:[#allocation17_spill] sm:$0xff] }
 0x2d9   : > { %v559_v6 = vadd.f32 %v6548_v0, %v8018_v13 }
 0x2da   : > { %v6535_v49 = vmul.f32 %v2823_v61, %v2746_v56  ;;  %v6555_v61 = vpop.f32.mrf.mxu1 }
 0x2db   : > { %v829_v24 = vadd.f32 %v8019_v52, %v559_v6 }
 0x2dc   : > { %8015 = vst [vmem:[#allocation114_spill] sm:$0xff] %v6535_v49  ;;  %4827 = vmatmul.msk.f32.gmra.mxu1 %vm2996_vm2, %v6535_v49  ;;  %v3191_v18 = vrot.slane %v6535_v49, 1  ;;  %v3404_v33 = vrot.slane %v6535_v49, 2 }
 0x2dd   : > { %v2631_v35 = vpop.f32.mrf.mxu0 }
 0x2de   : > { %v2716_v17 = vadd.f32 %v2631_v35, %v6308_v7  ;;  %v3192_v36 = vsel %vm3185_vm3, %v3189_v32, %v3191_v18  ;;  %v3405_v56 = vsel %vm3398_vm4, %v3402_v25, %v3404_v33  ;;  %v1099_v7 = vadd.f32 %v6038_v34, %v829_v24 }
 0x2df   : > { %4851 = vmatmul.msk.f32.gmra.mxu2 %vm2996_vm2, %v3192_v36  ;;  %4876 = vmatmul.msk.f32.gmra.mxu3 %vm2996_vm2, %v3405_v56  ;;  %v8021_v36 = vld [vmem:[#allocation19_spill] sm:$0xff]  ;;  %v6571_v56 = vpop.f32.mrf.mxu2 }
 0x2e0   : > { %v2747_v49 = vmax.f32 %v2716_v17, 0.0  ;;  %4813 = vmatmul.msk.f32.gmra.mxu0 %vm344_vm1, %v6163_v21  ;;  %v560_v17 = vadd.f32 %v6548_v0, %v8021_v36  ;;  %v6573_v21 = vpop.f32.mrf.mxu3  ;;  %v1369_v24 = vadd.f32 %v5817_v42, %v1099_v7 }
 0x2e2   : > { %v6562_v13 = vmul.f32 %v2828_v11, %v2747_v49  ;;  %v6589_v6 = vpop.f32.mrf.mxu1 }
 0x2e4   : > { %8020 = vst [vmem:[#allocation17_spill] sm:$0xff] %v6562_v13  ;;  %4828 = vmatmul.msk.f32.gmra.mxu1 %vm2996_vm2, %v6562_v13  ;;  %v3193_v32 = vrot.slane %v6562_v13, 1  ;;  %v3406_v25 = vrot.slane %v6562_v13, 2 }
 0x2e5   : > { %v2634_v35 = vpop.f32.mrf.mxu0 }
 0x2e6   : > { %v2717_v11 = vadd.f32 %v2634_v35, %v6319_v41  ;;  %v6577_v49 = vsel %vm3185_vm3, %v3191_v18, %v3193_v32  ;;  %v6580_v34 = vsel %vm3398_vm4, %v3404_v33, %v3406_v25  ;;  %v2833_v41 = vpop.permute.xlu2 %2832  ;;  %v8024_v18 = vld [vmem:[#allocation51_spill] sm:$0xff]  ;;  %v1639_v33 = vadd.f32 %v6241_v3, %v1369_v24 }
 0x2e7   : > { %8022 = vst [vmem:[#allocation48_spill] sm:$0xff] %v6577_v49  ;;  %4852 = vmatmul.msk.f32.gmra.mxu2 %vm2996_vm2, %v6577_v49  ;;  %4877 = vmatmul.msk.f32.gmra.mxu3 %vm2996_vm2, %v6580_v34  ;;  %v830_v35 = vadd.f32 %v8024_v18, %v560_v17 }
 0x2e8   : > { %8023 = vst [vmem:[#allocation19_spill] sm:$0xff] %v6580_v34  ;;  %v2748_v52 = vmax.f32 %v2717_v11, 0.0  ;;  %4814 = vmatmul.msk.f32.gmra.mxu0 %vm344_vm1, %v6189_v2  ;;  %v8025_v11 = vld [vmem:[#allocation21_spill] sm:$0xff]  ;;  %v1909_v13 = vadd.f32 %v6366_v26, %v1639_v33 }
 0x2e9   : > { %v1100_v49 = vadd.f32 %v6054_v60, %v830_v35  ;;  %v561_v2 = vadd.f32 %v6548_v0, %v8025_v11 }
 0x2ea   : > { %v6593_v36 = vmul.f32 %v2833_v41, %v2748_v52  ;;  %v6615_v52 = vpop.f32.mrf.mxu2  ;;  %v6617_v41 = vpop.f32.mrf.mxu3 }
 0x2eb   : > { %v1370_v24 = vadd.f32 %v5830_v46, %v1100_v49  ;;  %v6626_v35 = vpop.f32.mrf.mxu1 }
 0x2ec   : > { %4829 = vmatmul.msk.f32.gmra.mxu1 %vm2996_vm2, %v6593_v36  ;;  %v3195_v42 = vrot.slane %v6593_v36, 1  ;;  %v3408_v7 = vrot.slane %v6593_v36, 2 }
 0x2ed   : > { %v2637_v34 = vpop.f32.mrf.mxu0 }
 0x2ee   : > { %v2718_v17 = vadd.f32 %v2637_v34, %v6330_v22  ;;  %v6605_v3 = vsel %vm3185_vm3, %v3193_v32, %v3195_v42  ;;  %v6608_v60 = vsel %vm3398_vm4, %v3406_v25, %v3408_v7  ;;  %v2838_v22 = vpop.permute.xlu0 %2837  ;;  %v831_v32 = vadd.f32 %v5828_v47, %v561_v2  ;;  %v8026_v47 = vld [vmem:[#allocation23_spill] sm:$0xff] }
 0x2ef   : > { %4853 = vmatmul.msk.f32.gmra.mxu2 %vm2996_vm2, %v6605_v3  ;;  %4878 = vmatmul.msk.f32.gmra.mxu3 %vm2996_vm2, %v6608_v60  ;;  %v2179_v25 = vadd.f32 %v6384_v45, %v1909_v13  ;;  %v1640_v34 = vadd.f32 %v6259_v16, %v1370_v24  ;;  %v562_v45 = vadd.f32 %v6548_v0, %v8026_v47  ;;  %v2843_v24 = vpop.permute.xlu1 %2842 }
 0x2f0   : > { %v2749_v26 = vmax.f32 %v2718_v17, 0.0  ;;  %4815 = vmatmul.msk.f32.gmra.mxu0 %vm344_vm1, %v6212_v29  ;;  %v1101_v46 = vadd.f32 %v6072_v58, %v831_v32 }
 0x2f1   : > { %v2449_v49 = vadd.f32 %v6386_v39, %v2179_v25  ;;  %v1910_v16 = vadd.f32 %v6375_v53, %v1640_v34  ;;  %v832_v53 = vadd.f32 %v5845_v30, %v562_v45  ;;  %v8028_v34 = vld [vmem:[#allocation25_spill] sm:$0xff] }
 0x2f2   : > { %v6624_v18 = vmul.f32 %v2838_v22, %v2749_v26  ;;  %v1371_v39 = vadd.f32 %v5843_v50, %v1101_v46  ;;  %v6653_v26 = vpop.f32.mrf.mxu2  ;;  %v6655_v22 = vpop.f32.mrf.mxu3 }
 0x2f3   : > { %v6667_v46 = vpop.f32.mrf.mxu1 }
 0x2f4   : > { %4830 = vmatmul.msk.f32.gmra.mxu1 %vm2996_vm2, %v6624_v18  ;;  %v3197_v29 = vrot.slane %v6624_v18, 1  ;;  %v3410_v33 = vrot.slane %v6624_v18, 2 }
 0x2f5   : > { %v2640_v13 = vpop.f32.mrf.mxu0 }
 0x2f6   : > { %v2719_v11 = vadd.f32 %v2640_v13, %v2449_v49  ;;  %v6638_v2 = vsel %vm3185_vm3, %v3195_v42, %v3197_v29  ;;  %v6641_v58 = vsel %vm3398_vm4, %v3408_v7, %v3410_v33  ;;  %v2180_v42 = vadd.f32 %v6400_v59, %v1910_v16 }
 0x2f7   : > { %4854 = vmatmul.msk.f32.gmra.mxu2 %vm2996_vm2, %v6638_v2  ;;  %4879 = vmatmul.msk.f32.gmra.mxu3 %vm2996_vm2, %v6641_v58  ;;  %v1641_v7 = vadd.f32 %v6276_v31, %v1371_v39  ;;  %v1102_v31 = vadd.f32 %v8028_v34, %v832_v53  ;;  %v2848_v39 = vpop.permute.xlu2 %2847 }
 0x2f8   : > { %v2750_v17 = vmax.f32 %v2719_v11, 0.0  ;;  %4816 = vmatmul.msk.f32.gmra.mxu0 %vm344_vm1, %v6232_v38  ;;  %v2450_v25 = vadd.f32 %v6402_v63, %v2180_v42  ;;  %v8027_v38 = vld [vmem:[#allocation27_spill] sm:$0xff] }
 0x2f9   : > { %v563_v59 = vadd.f32 %v6548_v0, %v8027_v38  ;;  %v1911_v47 = vadd.f32 %v6393_v48, %v1641_v7  ;;  %v1372_v16 = vadd.f32 %v5859_v4, %v1102_v31  ;;  %v8030_v7 = vld [vmem:[#allocation29_spill] sm:$0xff] }
 0x2fa   : > { %v6657_v32 = vmul.f32 %v2843_v24, %v2750_v17  ;;  %v6689_v24 = vpop.f32.mrf.mxu2  ;;  %v6691_v42 = vpop.f32.mrf.mxu3 }
 0x2fb   : > { %v833_v48 = vadd.f32 %v5865_v54, %v563_v59  ;;  %v6707_v31 = vpop.f32.mrf.mxu1 }
 0x2fc   : > { %4831 = vmatmul.msk.f32.gmra.mxu1 %vm2996_vm2, %v6657_v32  ;;  %v3199_v50 = vrot.slane %v6657_v32, 1  ;;  %v3412_v30 = vrot.slane %v6657_v32, 2 }
 0x2fd   : > { %v2643_v49 = vpop.f32.mrf.mxu0 }
 0x2fe   : > { %v2720_v45 = vadd.f32 %v2643_v49, %v2450_v25  ;;  %v6671_v63 = vsel %vm3185_vm3, %v3197_v29, %v3199_v50  ;;  %v6674_v13 = vsel %vm3398_vm4, %v3410_v33, %v3412_v30  ;;  %v2181_v29 = vadd.f32 %v6413_v43, %v1911_v47 }
 0x2ff   : > { %4855 = vmatmul.msk.f32.gmra.mxu2 %vm2996_vm2, %v6671_v63  ;;  %4880 = vmatmul.msk.f32.gmra.mxu3 %vm2996_vm2, %v6674_v13  ;;  %v1642_v33 = vadd.f32 %v6293_v19, %v1372_v16  ;;  %v1103_v19 = vadd.f32 %v8030_v7, %v833_v48 }
 0x300   : > { %v2751_v11 = vmax.f32 %v2720_v45, 0.0  ;;  %4817 = vmatmul.msk.f32.gmra.mxu0 %vm344_vm1, %v6252_v55  ;;  %v2451_v53 = vadd.f32 %v6415_v5, %v2181_v29  ;;  %v8029_v55 = vld [vmem:[#allocation30_spill] sm:$0xff] }
 0x301   : > { %v564_v43 = vadd.f32 %v6548_v0, %v8029_v55  ;;  %v1912_v38 = vadd.f32 %v6405_v15, %v1642_v33  ;;  %v1373_v49 = vadd.f32 %v5875_v12, %v1103_v19 }
 0x302   : > { %v6686_v17 = vmul.f32 %v2848_v39, %v2751_v11  ;;  %v8031_v39 = vld [vmem:[#allocation33_spill] sm:$0xff] }
 0x303   : > { %v834_v15 = vadd.f32 %v5888_v10, %v564_v43  ;;  %v1643_v45 = vadd.f32 %v6310_v57, %v1373_v49  ;;  %v8032_v10 = vld [vmem:[#allocation34_spill] sm:$0xff]  ;;  %v6730_v57 = vpop.f32.mrf.mxu2 }
 0x304   : > { %4832 = vmatmul.msk.f32.gmra.mxu1 %vm2996_vm2, %v6686_v17  ;;  %v3201_v4 = vrot.slane %v6686_v17, 1  ;;  %v3414_v54 = vrot.slane %v6686_v17, 2 }
 0x305   : > { %v2646_v25 = vpop.f32.mrf.mxu0  ;;  %v1104_v29 = vadd.f32 %v8032_v10, %v834_v15  ;;  %v8036_v15 = vld [vmem:[#allocation37_spill] sm:$0xff] }
 0x306   : > { %v2721_v5 = vadd.f32 %v2646_v25, %v2451_v53  ;;  %v6702_v59 = vsel %vm3185_vm3, %v3199_v50, %v3201_v4  ;;  %v6705_v34 = vsel %vm3398_vm4, %v3412_v30, %v3414_v54  ;;  %v2853_v50 = vpop.permute.xlu0 %2852  ;;  %v2182_v30 = vadd.f32 %v6424_v27, %v1912_v38  ;;  %v6732_v53 = vpop.f32.mrf.mxu3 }
 0x307   : > { %4856 = vmatmul.msk.f32.gmra.mxu2 %vm2996_vm2, %v6702_v59  ;;  %4881 = vmatmul.msk.f32.gmra.mxu3 %vm2996_vm2, %v6705_v34  ;;  %v1913_v27 = vadd.f32 %v6418_v62, %v1643_v45  ;;  %v1374_v7 = vadd.f32 %v5894_v23, %v1104_v29  ;;  %v6748_v25 = vpop.f32.mrf.mxu1 }
 0x308   : > { %v2752_v47 = vmax.f32 %v2721_v5, 0.0  ;;  %4818 = vmatmul.msk.f32.gmra.mxu0 %vm344_vm1, %v6269_v51  ;;  %v2452_v11 = vadd.f32 %v6426_v44, %v2182_v30  ;;  %v565_v51 = vadd.f32 %v6548_v0, %v8031_v39  ;;  %8034 = vst [vmem:[#allocation21_spill] sm:$0xff] %v6748_v25  ;;  %v4973_v39 = vld [vmem:[%s7806_s4 + $0x30] sm:$0xff] }
 0x309   : > { %v1644_v38 = vadd.f32 %v6321_v9, %v1374_v7  ;;  %v2863_v7 = vpop.permute.xlu2 %2862  ;;  %4012 = vmatpush.msra.mxu0 %v4973_v39 }
 0x30a   : > { %v6719_v16 = vmul.f32 %v2853_v50, %v2752_v47  ;;  %v835_v19 = vadd.f32 %v5909_v20, %v565_v51  ;;  %v8035_v47 = vld [vmem:[#allocation35_spill] sm:$0xff] }
 0x30b   : > { %v566_v20 = vadd.f32 %v6548_v0, %v8035_v47  ;;  %v8040_v51 = vld [vmem:[#allocation63_spill] sm:$0xff]  ;;  %v6777_v29 = vpop.f32.mrf.mxu2  ;;  %v8048_v47 = vld [vmem:[#allocation93_spill] sm:$0xff] }
 0x30c   : > { %4833 = vmatmul.msk.f32.gmra.mxu1 %vm2996_vm2, %v6719_v16  ;;  %v3203_v12 = vrot.slane %v6719_v16, 1  ;;  %v3416_v48 = vrot.slane %v6719_v16, 2  ;;  %v1105_v50 = vadd.f32 %v8036_v15, %v835_v19  ;;  %8041 = vst [vmem:[#allocation25_spill] sm:$0xff] %v6777_v29 }
 0x30d   : > { %v2649_v33 = vpop.f32.mrf.mxu0 }
 0x30e   : > { %v2722_v44 = vadd.f32 %v2649_v33, %v2452_v11  ;;  %v6735_v55 = vsel %vm3185_vm3, %v3201_v4, %v3203_v12  ;;  %v6738_v43 = vsel %vm3398_vm4, %v3414_v54, %v3416_v48  ;;  %v2858_v4 = vpop.permute.xlu1 %2857  ;;  %v2183_v54 = vadd.f32 %v6434_v37, %v1913_v27  ;;  %v8037_v37 = vld [vmem:[#allocation87_spill] sm:$0xff]  ;;  %v6779_v33 = vpop.f32.mrf.mxu3 }
 0x30f   : > { %8033 = vst [vmem:[#allocation51_spill] sm:$0xff] %v6738_v43  ;;  %4857 = vmatmul.msk.f32.gmra.mxu2 %vm2996_vm2, %v6735_v55  ;;  %4882 = vmatmul.msk.f32.gmra.mxu3 %vm2996_vm2, %v6738_v43  ;;  %v1914_v45 = vadd.f32 %v8037_v37, %v1644_v38  ;;  %v1375_v10 = vadd.f32 %v8040_v51, %v1105_v50  ;;  %v8043_v27 = vld [vmem:[#allocation11_spill] sm:$0xff]  ;;  %v2501_v51 = vld [vmem:[%s5236_s16 + $0x118] sm:$0xff] }
 0x310   : > { %v2753_v62 = vmax.f32 %v2722_v44, 0.0  ;;  %4819 = vmatmul.msk.f32.gmra.mxu0 %vm344_vm1, %v6286_v8  ;;  %v2453_v49 = vadd.f32 %v6436_v28, %v2183_v54  ;;  %8042 = vst [vmem:[#allocation30_spill] sm:$0xff] %v6779_v33 }
 0x312   : > { %v6752_v5 = vmul.f32 %v2858_v4, %v2753_v62  ;;  %v8045_v62 = vld [vmem:[#allocation92_spill] sm:$0xff]  ;;  %v8046_v4 = vld [vmem:[#allocation7_spill] sm:$0xff] }
 0x313   : > { %v2184_v19 = vadd.f32 %v8045_v62, %v1914_v45  ;;  %v1645_v54 = vadd.f32 %v8046_v4, %v1375_v10  ;;  %v8051_v10 = vld [vmem:[#allocation90_spill] sm:$0xff] }
 0x314   : > { %4834 = vmatmul.msk.f32.gmra.mxu1 %vm2996_vm2, %v6752_v5  ;;  %v3205_v23 = vrot.slane %v6752_v5, 1  ;;  %v3418_v8 = vrot.slane %v6752_v5, 2  ;;  %v8054_v62 = vld [vmem:[#allocation66_spill] sm:$0xff] }
 0x315   : > { %v2652_v30 = vpop.f32.mrf.mxu0  ;;  %v2454_v15 = vadd.f32 %v8048_v47, %v2184_v19  ;;  %v8055_v4 = vld [vmem:[#allocation70_spill] sm:$0xff]  ;;  %v2868_v47 = vpop.permute.xlu0 %2867 }
 0x316   : > { %v2723_v9 = vadd.f32 %v2652_v30, %v2453_v49  ;;  %v6764_v11 = vsel %vm3185_vm3, %v3203_v12, %v3205_v23  ;;  %v6767_v28 = vsel %vm3398_vm4, %v3416_v48, %v3418_v8  ;;  %v8044_v48 = vld [vmem:[#allocation67_spill] sm:$0xff]  ;;  %v6788_v49 = vpop.f32.mrf.mxu1 }
 0x317   : > { %8038 = vst [vmem:[#allocation23_spill] sm:$0xff] %v6764_v11  ;;  %4858 = vmatmul.msk.f32.gmra.mxu2 %vm2996_vm2, %v6764_v11  ;;  %4883 = vmatmul.msk.f32.gmra.mxu3 %vm2996_vm2, %v6767_v28  ;;  %v836_v44 = vadd.f32 %v8044_v48, %v566_v20  ;;  %v8049_v20 = vld [vmem:[#allocation38_spill] sm:$0xff] }
 0x318   : > { %8039 = vst [vmem:[#allocation27_spill] sm:$0xff] %v6767_v28  ;;  %v2754_v12 = vmax.f32 %v2723_v9, 0.0  ;;  %4820 = vmatmul.msk.f32.gmra.mxu0 %vm344_vm1, %v8043_v27  ;;  %v567_v37 = vadd.f32 %v6548_v0, %v8049_v20  ;;  %v8050_v9 = vld [vmem:[#allocation39_spill] sm:$0xff]  ;;  %v8057_v20 = vld [vmem:[#allocation36_spill] sm:$0xff] }
 0x319   : > { %8047 = vst [vmem:[#allocation29_spill] sm:$0xff] %v6788_v49  ;;  %v1106_v45 = vadd.f32 %v8050_v9, %v836_v44  ;;  %v6815_v9 = vpop.f32.mrf.mxu2  ;;  %v8060_v49 = vld [vmem:[#allocation97_spill] sm:$0xff] }
 0x31a   : > { %v6786_v38 = vmul.f32 %v2863_v7, %v2754_v12  ;;  %v1915_v12 = vadd.f32 %v8051_v10, %v1645_v54  ;;  %v837_v54 = vadd.f32 %v8055_v4, %v567_v37  ;;  %8058 = vst [vmem:[#allocation35_spill] sm:$0xff] %v6815_v9  ;;  %v8071_v9 = vld [vmem:[#allocation101_spill] sm:$0xff] }
 0x31b   : > { %v1376_v19 = vadd.f32 %v8054_v62, %v1106_v45 }
 0x31c   : > { %4835 = vmatmul.msk.f32.gmra.mxu1 %vm2996_vm2, %v6786_v38  ;;  %v3207_v50 = vrot.slane %v6786_v38, 1  ;;  %v3420_v30 = vrot.slane %v6786_v38, 2 }
 0x31d   : > { %v2655_v39 = vpop.f32.mrf.mxu0 }
 0x31e   : > { %v2724_v27 = vadd.f32 %v2655_v39, %v2454_v15  ;;  %v6801_v48 = vsel %vm3185_vm3, %v3205_v23, %v3207_v50  ;;  %v6804_v7 = vsel %vm3398_vm4, %v3418_v8, %v3420_v30  ;;  %v8056_v23 = vld [vmem:[#allocation96_spill] sm:$0xff]  ;;  %v1646_v8 = vadd.f32 %v8057_v20, %v1376_v19  ;;  %v6817_v39 = vpop.f32.mrf.mxu3  ;;  %v6829_v19 = vpop.f32.mrf.mxu1 }
 0x31f   : > { %8052 = vst [vmem:[#allocation33_spill] sm:$0xff] %v6801_v48  ;;  %4859 = vmatmul.msk.f32.gmra.mxu2 %vm2996_vm2, %v6801_v48  ;;  %4884 = vmatmul.msk.f32.gmra.mxu3 %vm2996_vm2, %v6804_v7  ;;  %v2185_v15 = vadd.f32 %v8056_v23, %v1915_v12  ;;  %v2502_v23 = vld [vmem:[%s5236_s16 + $0x120] sm:$0xff] }
 0x320   : > { %8053 = vst [vmem:[#allocation34_spill] sm:$0xff] %v6804_v7  ;;  %v2755_v44 = vmax.f32 %v2724_v27, 0.0  ;;  %4821 = vmatmul.msk.f32.gmra.mxu0 %vm344_vm1, %v2501_v51  ;;  %v8061_v51 = vld [vmem:[#allocation40_spill] sm:$0xff]  ;;  %v8062_v27 = vld [vmem:[#allocation42_spill] sm:$0xff] }
 0x321   : > { %8059 = vst [vmem:[#allocation37_spill] sm:$0xff] %v6817_v39  ;;  %v2455_v7 = vadd.f32 %v8060_v49, %v2185_v15  ;;  %v568_v12 = vadd.f32 %v6548_v0, %v8061_v51  ;;  %v1107_v62 = vadd.f32 %v8062_v27, %v837_v54  ;;  %v8067_v54 = vld [vmem:[#allocation69_spill] sm:$0xff]  ;;  %v6851_v48 = vpop.f32.mrf.mxu2 }
 0x322   : > { %v6819_v10 = vmul.f32 %v2868_v47, %v2755_v44  ;;  %8063 = vst [vmem:[#allocation87_spill] sm:$0xff] %v6829_v19  ;;  %v8064_v44 = vld [vmem:[#allocation94_spill] sm:$0xff] }
 0x323   : > { %v1916_v47 = vadd.f32 %v8064_v44, %v1646_v8  ;;  %v1377_v51 = vadd.f32 %v8067_v54, %v1107_v62  ;;  %v8068_v8 = vld [vmem:[#allocation73_spill] sm:$0xff]  ;;  %v8070_v19 = vld [vmem:[#allocation10_spill] sm:$0xff]  ;;  %8072 = vst [vmem:[#allocation67_spill] sm:$0xff] %v6851_v48 }
 0x324   : > { %4836 = vmatmul.msk.f32.gmra.mxu1 %vm2996_vm2, %v6819_v10  ;;  %v3209_v45 = vrot.slane %v6819_v10, 1  ;;  %v3422_v37 = vrot.slane %v6819_v10, 2 }
 0x325   : > { %v2658_v4 = vpop.f32.mrf.mxu0 }
 0x326   : > { %v2725_v20 = vadd.f32 %v2658_v4, %v2455_v7  ;;  %v6834_v49 = vsel %vm3185_vm3, %v3207_v50, %v3209_v45  ;;  %v6837_v15 = vsel %vm3398_vm4, %v3420_v30, %v3422_v37  ;;  %v838_v7 = vadd.f32 %v8068_v8, %v568_v12  ;;  %v2873_v4 = vpop.permute.xlu1 %2872  ;;  %v8069_v50 = vld [vmem:[#allocation100_spill] sm:$0xff] }
 0x327   : > { %8065 = vst [vmem:[#allocation63_spill] sm:$0xff] %v6834_v49  ;;  %4860 = vmatmul.msk.f32.gmra.mxu2 %vm2996_vm2, %v6834_v49  ;;  %4885 = vmatmul.msk.f32.gmra.mxu3 %vm2996_vm2, %v6837_v15  ;;  %v2186_v44 = vadd.f32 %v8069_v50, %v1916_v47  ;;  %v1647_v30 = vadd.f32 %v8070_v19, %v1377_v51  ;;  %v2503_v51 = vld [vmem:[%s5236_s16 + $0x128] sm:$0xff] }
 0x328   : > { %8066 = vst [vmem:[#allocation11_spill] sm:$0xff] %v6837_v15  ;;  %v2756_v27 = vmax.f32 %v2725_v20, 0.0  ;;  %4822 = vmatmul.msk.f32.gmra.mxu0 %vm344_vm1, %v2502_v23  ;;  %v6853_v15 = vpop.f32.mrf.mxu3  ;;  %v8074_v23 = vld [vmem:[#allocation43_spill] sm:$0xff]  ;;  %v8075_v20 = vld [vmem:[#allocation46_spill] sm:$0xff] }
 0x329   : > { %v2456_v49 = vadd.f32 %v8071_v9, %v2186_v44  ;;  %8073 = vst [vmem:[#allocation92_spill] sm:$0xff] %v6853_v15  ;;  %v569_v47 = vadd.f32 %v6548_v0, %v8074_v23  ;;  %v1108_v19 = vadd.f32 %v8075_v20, %v838_v7  ;;  %v6870_v44 = vpop.f32.mrf.mxu1  ;;  %v8080_v7 = vld [vmem:[#allocation72_spill] sm:$0xff] }
 0x32a   : > { %v6848_v39 = vmul.f32 %v2873_v4, %v2756_v27  ;;  %v8076_v27 = vld [vmem:[#allocation98_spill] sm:$0xff]  ;;  %8079 = vst [vmem:[#allocation38_spill] sm:$0xff] %v6870_v44  ;;  %v8084_v44 = vld [vmem:[#allocation105_spill] sm:$0xff] }
 0x32b   : > { %v1917_v9 = vadd.f32 %v8076_v27, %v1647_v30  ;;  %v1378_v23 = vadd.f32 %v8080_v7, %v1108_v19 }
 0x32c   : > { %4837 = vmatmul.msk.f32.gmra.mxu1 %vm2996_vm2, %v6848_v39  ;;  %v3211_v62 = vrot.slane %v6848_v39, 1  ;;  %v3424_v12 = vrot.slane %v6848_v39, 2 }
 0x32d   : > { %v2661_v54 = vpop.f32.mrf.mxu0 }
 0x32e   : > { %v2726_v8 = vadd.f32 %v2661_v54, %v2456_v49  ;;  %v6865_v4 = vsel %vm3185_vm3, %v3209_v45, %v3211_v62  ;;  %v6868_v50 = vsel %vm3398_vm4, %v3422_v37, %v3424_v12  ;;  %v8081_v49 = vld [vmem:[#allocation76_spill] sm:$0xff]  ;;  %v2878_v45 = vpop.permute.xlu2 %2877  ;;  %v8083_v37 = vld [vmem:[#allocation13_spill] sm:$0xff] }
 0x32f   : > { %8077 = vst [vmem:[#allocation7_spill] sm:$0xff] %v6865_v4  ;;  %4861 = vmatmul.msk.f32.gmra.mxu2 %vm2996_vm2, %v6865_v4  ;;  %4886 = vmatmul.msk.f32.gmra.mxu3 %vm2996_vm2, %v6868_v50  ;;  %v839_v30 = vadd.f32 %v8081_v49, %v569_v47  ;;  %v8082_v54 = vld [vmem:[#allocation104_spill] sm:$0xff]  ;;  %v1648_v15 = vadd.f32 %v8083_v37, %v1378_v23  ;;  %v8086_v47 = vld [vmem:[#allocation49_spill] sm:$0xff]  ;;  %v6892_v23 = vpop.f32.mrf.mxu2 }
 0x330   : > { %8078 = vst [vmem:[#allocation93_spill] sm:$0xff] %v6868_v50  ;;  %v2757_v20 = vmax.f32 %v2726_v8, 0.0  ;;  %4823 = vmatmul.msk.f32.gmra.mxu0 %vm344_vm1, %v2503_v51  ;;  %v2187_v27 = vadd.f32 %v8082_v54, %v1917_v9  ;;  %v8085_v8 = vld [vmem:[#allocation45_spill] sm:$0xff]  ;;  %v8087_v9 = vld [vmem:[#allocation102_spill] sm:$0xff] }
 0x331   : > { %v570_v51 = vadd.f32 %v6548_v0, %v8085_v8  ;;  %v1109_v7 = vadd.f32 %v8086_v47, %v839_v30  ;;  %v1918_v54 = vadd.f32 %v8087_v9, %v1648_v15  ;;  %8088 = vst [vmem:[#allocation39_spill] sm:$0xff] %v6892_v23  ;;  %v8092_v30 = vld [vmem:[#allocation75_spill] sm:$0xff]  ;;  %v8093_v8 = vld [vmem:[#allocation80_spill] sm:$0xff]  ;;  %v2883_v47 = vpop.permute.xlu0 %2882  ;;  %v8096_v9 = vld [vmem:[#allocation26_spill] sm:$0xff] }
 0x332   : > { %v6881_v48 = vmul.f32 %v2878_v45, %v2757_v20  ;;  %v2457_v25 = vadd.f32 %v8084_v44, %v2187_v27  ;;  %v6894_v20 = vpop.f32.mrf.mxu3 }
 0x333   : > { %8089 = vst [vmem:[#allocation90_spill] sm:$0xff] %v6894_v20  ;;  %v1379_v37 = vadd.f32 %v8092_v30, %v1109_v7  ;;  %v8098_v30 = vld [vmem:[#allocation47_spill] sm:$0xff] }
 0x334   : > { %4838 = vmatmul.msk.f32.gmra.mxu1 %vm2996_vm2, %v6881_v48  ;;  %v3213_v50 = vrot.slane %v6881_v48, 1  ;;  %v3426_v19 = vrot.slane %v6881_v48, 2 }
 0x335   : > { %v2664_v49 = vpop.f32.mrf.mxu0  ;;  %v1649_v20 = vadd.f32 %v8096_v9, %v1379_v37 }
 0x336   : > { %v2727_v44 = vadd.f32 %v2664_v49, %v2457_v25  ;;  %v6897_v45 = vsel %vm3185_vm3, %v3211_v62, %v3213_v50  ;;  %v6900_v27 = vsel %vm3398_vm4, %v3424_v12, %v3426_v19  ;;  %v840_v25 = vadd.f32 %v8093_v8, %v570_v51  ;;  %v6910_v62 = vpop.f32.mrf.mxu1  ;;  %v8095_v49 = vld [vmem:[#allocation108_spill] sm:$0xff] }
 0x337   : > { %8090 = vst [vmem:[#allocation66_spill] sm:$0xff] %v6897_v45  ;;  %4862 = vmatmul.msk.f32.gmra.mxu2 %vm2996_vm2, %v6897_v45  ;;  %4887 = vmatmul.msk.f32.gmra.mxu3 %vm2996_vm2, %v6900_v27  ;;  %v2188_v12 = vadd.f32 %v8095_v49, %v1918_v54  ;;  %v8097_v45 = vld [vmem:[#allocation109_spill] sm:$0xff]  ;;  %v571_v51 = vadd.f32 %v6548_v0, %v8098_v30  ;;  %v8099_v8 = vld [vmem:[#allocation52_spill] sm:$0xff]  ;;  %v8100_v54 = vld [vmem:[#allocation107_spill] sm:$0xff]  ;;  %v6936_v9 = vpop.f32.mrf.mxu2 }
 0x338   : > { %8091 = vst [vmem:[#allocation70_spill] sm:$0xff] %v6900_v27  ;;  %v2758_v15 = vmax.f32 %v2727_v44, 0.0  ;;  %4974 = vmatmul.msk.f32.vlgmr.msra.gmra.mxu0 %vm2996_vm2, %v6624_v18  ;;  %v1919_v49 = vadd.f32 %v8100_v54, %v1649_v20 }
 0x339   : > { %8094 = vst [vmem:[#allocation96_spill] sm:$0xff] %v6910_v62  ;;  %v2458_v4 = vadd.f32 %v8097_v45, %v2188_v12  ;;  %v1110_v62 = vadd.f32 %v8099_v8, %v840_v25  ;;  %v8107_v8 = vld [vmem:[#allocation41_spill] sm:$0xff] }
 0x33a   : > { %v6914_v23 = vmul.f32 %v2883_v47, %v2758_v15  ;;  %v8103_v47 = vld [vmem:[#allocation77_spill] sm:$0xff]  ;;  %8104 = vst [vmem:[#allocation40_spill] sm:$0xff] %v6936_v9  ;;  %v6938_v25 = vpop.f32.mrf.mxu3  ;;  %v2189_v30 = vadd.f32 %v6505_v40, %v1919_v49  ;;  %v8111_v40 = vld [vmem:[#allocation110_spill] sm:$0xff] }
 0x33b   : > { %v1380_v12 = vadd.f32 %v8103_v47, %v1110_v62  ;;  %8105 = vst [vmem:[#allocation42_spill] sm:$0xff] %v6938_v25  ;;  %v8109_v25 = vld [vmem:[#allocation50_spill] sm:$0xff] }
 0x33c   : > { %4839 = vmatmul.msk.f32.gmra.mxu1 %vm2996_vm2, %v6914_v23  ;;  %v3215_v7 = vrot.slane %v6914_v23, 1  ;;  %v3428_v44 = vrot.slane %v6914_v23, 2 }
 0x33d   : > { %v2667_v27 = vpop.f32.mrf.mxu0  ;;  %v1650_v54 = vadd.f32 %v8107_v8, %v1380_v12  ;;  %v2893_v8 = vpop.permute.xlu2 %2892 }
 0x33e   : > { %v2728_v37 = vadd.f32 %v2667_v27, %v2458_v4  ;;  %v6926_v15 = vsel %vm3185_vm3, %v3213_v50, %v3215_v7  ;;  %v6929_v45 = vsel %vm3398_vm4, %v3426_v19, %v3428_v44  ;;  %v8106_v4 = vld [vmem:[#allocation82_spill] sm:$0xff]  ;;  %v2888_v19 = vpop.permute.xlu1 %2887 }
 0x33f   : > { %8101 = vst [vmem:[#allocation36_spill] sm:$0xff] %v6926_v15  ;;  %4863 = vmatmul.msk.f32.gmra.mxu2 %vm2996_vm2, %v6926_v15  ;;  %4888 = vmatmul.msk.f32.gmra.mxu3 %vm2996_vm2, %v6929_v45  ;;  %v841_v50 = vadd.f32 %v8106_v4, %v571_v51  ;;  %v572_v51 = vadd.f32 %v6548_v0, %v8109_v25  ;;  %v8110_v4 = vld [vmem:[#allocation54_spill] sm:$0xff] }
 0x340   : > { %8102 = vst [vmem:[#allocation97_spill] sm:$0xff] %v6929_v45  ;;  %v2759_v20 = vmax.f32 %v2728_v37, 0.0  ;;  %4975 = vmatmul.msk.f32.gmra.mxu0 %vm2996_vm2, %v6657_v32  ;;  %v8108_v45 = vld [vmem:[#allocation111_spill] sm:$0xff]  ;;  %v1920_v49 = vadd.f32 %v8111_v40, %v1650_v54 }
 0x341   : > { %v3086_v27 = vpop.f32.mrf.mxu1  ;;  %v2459_v62 = vadd.f32 %v8108_v45, %v2189_v30  ;;  %v1111_v9 = vadd.f32 %v8110_v4, %v841_v50  ;;  %v8115_v50 = vld [vmem:[#allocation84_spill] sm:$0xff]  ;;  %v6972_v4 = vpop.f32.mrf.mxu2 }
 0x342   : > { %v6945_v15 = vmul.f32 %v2888_v19, %v2759_v20  ;;  %v8114_v19 = vld [vmem:[#allocation79_spill] sm:$0xff]  ;;  %v2190_v54 = vadd.f32 %v6521_v14, %v1920_v49  ;;  %8117 = vst [vmem:[#allocation73_spill] sm:$0xff] %v6972_v4  ;;  %v6974_v40 = vpop.f32.mrf.mxu3  ;;  %v8120_v49 = vld [vmem:[#allocation57_spill] sm:$0xff] }
 0x343   : > { %v1381_v25 = vadd.f32 %v8114_v19, %v1111_v9  ;;  %8118 = vst [vmem:[#allocation100_spill] sm:$0xff] %v6974_v40  ;;  %v8119_v19 = vld [vmem:[#allocation53_spill] sm:$0xff] }
 0x344   : > { %4840 = vmatmul.msk.f32.gmra.mxu1 %vm2996_vm2, %v6945_v15  ;;  %v3217_v37 = vrot.slane %v6945_v15, 1  ;;  %v3430_v47 = vrot.slane %v6945_v15, 2  ;;  %v2460_v9 = vadd.f32 %v6523_v1, %v2190_v54  ;;  %v573_v14 = vadd.f32 %v6548_v0, %v8119_v19 }
 0x345   : > { %v2670_v33 = vpop.f32.mrf.mxu0 }
 0x346   : > { %v2729_v12 = vadd.f32 %v2670_v33, %v2459_v62  ;;  %v6957_v20 = vsel %vm3185_vm3, %v3215_v7, %v3217_v37  ;;  %v6960_v45 = vsel %vm3398_vm4, %v3428_v44, %v3430_v47  ;;  %v842_v33 = vadd.f32 %v8115_v50, %v572_v51  ;;  %v8116_v44 = vld [vmem:[#allocation15_spill] sm:$0xff]  ;;  %v6989_v50 = vld [vmem:[%s7807_s5] ss:$0 sm:$0xff] }
 0x347   : > { %8112 = vst [vmem:[#allocation94_spill] sm:$0xff] %v6957_v20  ;;  %4864 = vmatmul.msk.f32.gmra.mxu2 %vm2996_vm2, %v6957_v20  ;;  %4889 = vmatmul.msk.f32.gmra.mxu3 %vm2996_vm2, %v6960_v45  ;;  %v1651_v62 = vadd.f32 %v8116_v44, %v1381_v25 }
 0x348   : > { %8113 = vst [vmem:[#allocation69_spill] sm:$0xff] %v6960_v45  ;;  %v2760_v30 = vmax.f32 %v2729_v12, 0.0  ;;  %4976 = vmatmul.msk.f32.gmra.mxu0 %vm2996_vm2, %v6686_v17  ;;  %v1112_v25 = vadd.f32 %v8120_v49, %v842_v33  ;;  %v8124_v33 = vld [vmem:[#allocation81_spill] sm:$0xff]  ;;  %v8127_v45 = vld [vmem:[#allocation28_spill] sm:$0xff] }
 0x349   : > { %v3089_v7 = vpop.f32.mrf.mxu1 }
 0x34a   : > { %v6976_v20 = vmul.f32 %v2893_v8, %v2760_v30  ;;  %v8121_v8 = vld [vmem:[#allocation112_spill] sm:$0xff]  ;;  %v1382_v19 = vadd.f32 %v8124_v33, %v1112_v25 }
 0x34b   : > { %v1921_v1 = vadd.f32 %v8121_v8, %v1651_v62  ;;  %v8125_v62 = vld [vmem:[#allocation9_spill] sm:$0xff]  ;;  %v8128_v25 = vld [vmem:[#allocation116_spill] sm:$0xff] }
 0x34c   : > { %4841 = vmatmul.msk.f32.gmra.mxu1 %vm2996_vm2, %v6976_v20  ;;  %v3219_v12 = vrot.slane %v6976_v20, 1  ;;  %v3432_v51 = vrot.slane %v6976_v20, 2  ;;  %v1652_v29 = vadd.f32 %v8127_v45, %v1382_v19 }
 0x34d   : > { %v2673_v30 = vpop.f32.mrf.mxu0 }
 0x34e   : > { %v2730_v54 = vadd.f32 %v2673_v30, %v2460_v9  ;;  %v6993_v44 = vsel %vm3185_vm3, %v3217_v37, %v3219_v12  ;;  %v6996_v40 = vsel %vm3398_vm4, %v3430_v47, %v3432_v51  ;;  %v843_v9 = vadd.f32 %v8125_v62, %v573_v14  ;;  %v2898_v30 = vpop.permute.xlu0 %2897  ;;  %v8126_v47 = vld [vmem:[#allocation115_spill] sm:$0xff] }
 0x34f   : > { %8122 = vst [vmem:[#allocation10_spill] sm:$0xff] %v6993_v44  ;;  %4865 = vmatmul.msk.f32.gmra.mxu2 %vm2996_vm2, %v6993_v44  ;;  %4890 = vmatmul.msk.f32.gmra.mxu3 %vm2996_vm2, %v6996_v40  ;;  %v3158_v37 = vadd.f32 %v6989_v50, %v3086_v27  ;;  %v2191_v4 = vadd.f32 %v8126_v47, %v1921_v1  ;;  %v8129_v27 = vld [vmem:[#allocation55_spill] sm:$0xff] }
 0x350   : > { %8123 = vst [vmem:[#allocation101_spill] sm:$0xff] %v6996_v40  ;;  %v2761_v49 = vmax.f32 %v2730_v54, 0.0  ;;  %4977 = vmatmul.msk.f32.gmra.mxu0 %vm2996_vm2, %v6719_v16  ;;  %v574_v62 = vadd.f32 %v6548_v0, %v8129_v27  ;;  %v8130_v1 = vld [vmem:[#allocation59_spill] sm:$0xff] }
 0x351   : > { %v3092_v8 = vpop.f32.mrf.mxu1  ;;  %v2461_v54 = vadd.f32 %v8128_v25, %v2191_v4  ;;  %v1113_v47 = vadd.f32 %v8130_v1, %v843_v9  ;;  %v8135_v25 = vld [vmem:[#allocation83_spill] sm:$0xff]  ;;  %v8137_v1 = vld [vmem:[#allocation44_spill] sm:$0xff] }
 0x352   : > { %v7009_v44 = vmul.f32 %v2898_v30, %v2761_v49  ;;  %v3300_v28 = vpop.f32.mrf.mxu2  ;;  %v3513_v40 = vpop.f32.mrf.mxu3  ;;  %v8132_v49 = vld [vmem:[#allocation113_spill] sm:$0xff] }
 0x353   : > { %v3372_v11 = vadd.f32 %v3300_v28, %v3158_v37  ;;  %v1922_v30 = vadd.f32 %v8132_v49, %v1652_v29  ;;  %v1383_v9 = vadd.f32 %v8135_v25, %v1113_v47  ;;  %v8136_v29 = vld [vmem:[#allocation12_spill] sm:$0xff] }
 0x354   : > { %4842 = vmatmul.msk.f32.gmra.mxu1 %vm2996_vm2, %v7009_v44  ;;  %v3221_v14 = vrot.slane %v7009_v44, 1  ;;  %v3434_v33 = vrot.slane %v7009_v44, 2 }
 0x355   : > { %v7019_v45 = vadd.f32 %v3513_v40, %v3372_v11  ;;  %v2676_v19 = vpop.f32.mrf.mxu0  ;;  %v844_v40 = vadd.f32 %v8136_v29, %v574_v62 }
 0x356   : > { %v2731_v28 = vadd.f32 %v2676_v19, %v2461_v54  ;;  %v7023_v4 = vsel %vm3185_vm3, %v3219_v12, %v3221_v14  ;;  %v7026_v37 = vsel %vm3398_vm4, %v3432_v51, %v3434_v33  ;;  %v2903_v54 = vpop.permute.xlu1 %2902  ;;  %v3159_v12 = vadd.f32 %v6989_v50, %v3089_v7  ;;  %v8138_v7 = vld [vmem:[#allocation56_spill] sm:$0xff] }
 0x357   : > { %8131 = vst [vmem:[#allocation43_spill] sm:$0xff] %v7019_v45  ;;  %4866 = vmatmul.msk.f32.gmra.mxu2 %vm2996_vm2, %v7023_v4  ;;  %4891 = vmatmul.msk.f32.gmra.mxu3 %vm2996_vm2, %v7026_v37  ;;  %v2192_v51 = vadd.f32 %v6571_v56, %v1922_v30  ;;  %v1653_v19 = vadd.f32 %v8137_v1, %v1383_v9  ;;  %v8139_v56 = vld [vmem:[#allocation61_spill] sm:$0xff] }
 0x358   : > { %8133 = vst [vmem:[#allocation46_spill] sm:$0xff] %v7023_v4  ;;  %v2762_v11 = vmax.f32 %v2731_v28, 0.0  ;;  %4978 = vmatmul.msk.f32.gmra.mxu0 %vm2996_vm2, %v6752_v5  ;;  %v575_v25 = vadd.f32 %v6548_v0, %v8138_v7  ;;  %v1114_v30 = vadd.f32 %v8139_v56, %v844_v40 }
 0x359   : > { %8134 = vst [vmem:[#allocation98_spill] sm:$0xff] %v7026_v37  ;;  %v3095_v27 = vpop.f32.mrf.mxu1  ;;  %v2462_v47 = vadd.f32 %v6573_v21, %v2192_v51  ;;  %v1923_v29 = vadd.f32 %v6555_v61, %v1653_v19  ;;  %v8142_v61 = vld [vmem:[#allocation14_spill] sm:$0xff]  ;;  %v2908_v51 = vpop.permute.xlu2 %2907  ;;  %v8143_v19 = vld [vmem:[#allocation31_spill] sm:$0xff] }
 0x35a   : > { %v7039_v49 = vmul.f32 %v2903_v54, %v2762_v11  ;;  %v3303_v45 = vpop.f32.mrf.mxu2  ;;  %v3516_v37 = vpop.f32.mrf.mxu3 }
 0x35b   : > { %v3373_v4 = vadd.f32 %v3303_v45, %v3159_v12  ;;  %v8141_v12 = vld [vmem:[#allocation85_spill] sm:$0xff] }
 0x35c   : > { %4843 = vmatmul.msk.f32.gmra.mxu1 %vm2996_vm2, %v7039_v49  ;;  %v3223_v62 = vrot.slane %v7039_v49, 1  ;;  %v3436_v28 = vrot.slane %v7039_v49, 2  ;;  %v1384_v40 = vadd.f32 %v8141_v12, %v1114_v30 }
 0x35d   : > { %v7049_v9 = vadd.f32 %v3516_v37, %v3373_v4  ;;  %v2679_v11 = vpop.f32.mrf.mxu0  ;;  %v845_v37 = vadd.f32 %v8142_v61, %v575_v25 }
 0x35e   : > { %v2732_v45 = vadd.f32 %v2679_v11, %v2462_v47  ;;  %v7053_v21 = vsel %vm3185_vm3, %v3221_v14, %v3223_v62  ;;  %v7056_v54 = vsel %vm3398_vm4, %v3434_v33, %v3436_v28  ;;  %v3160_v14 = vadd.f32 %v6989_v50, %v3092_v8  ;;  %v8144_v8 = vld [vmem:[#allocation58_spill] sm:$0xff] }
 0x35f   : > { %8140 = vst [vmem:[#allocation72_spill] sm:$0xff] %v7049_v9  ;;  %4867 = vmatmul.msk.f32.gmra.mxu2 %vm2996_vm2, %v7053_v21  ;;  %4892 = vmatmul.msk.f32.gmra.mxu3 %vm2996_vm2, %v7056_v54  ;;  %v2193_v33 = vadd.f32 %v6615_v52, %v1923_v29  ;;  %v1654_v47 = vadd.f32 %v8143_v19, %v1384_v40  ;;  %v8145_v52 = vld [vmem:[#allocation64_spill] sm:$0xff]  ;;  %v2913_v19 = vpop.permute.xlu0 %2912 }
 0x360   : > { %v2763_v4 = vmax.f32 %v2732_v45, 0.0  ;;  %4979 = vmatmul.msk.f32.gmra.mxu0 %vm2996_vm2, %v6786_v38  ;;  %v576_v12 = vadd.f32 %v6548_v0, %v8144_v8  ;;  %v1115_v29 = vadd.f32 %v8145_v52, %v845_v37  ;;  %v8146_v0 = vld [vmem:[#allocation4_spill] sm:$0xff] }
 0x361   : > { %v3098_v1 = vpop.f32.mrf.mxu1  ;;  %v2463_v30 = vadd.f32 %v6617_v41, %v2193_v33  ;;  %v1924_v61 = vadd.f32 %v6589_v6, %v1654_v47  ;;  %v8147_v6 = vld [vmem:[#allocation16_spill] sm:$0xff] }
 0x362   : > { %v7069_v7 = vmul.f32 %v2908_v51, %v2763_v4  ;;  %v3306_v56 = vpop.f32.mrf.mxu2  ;;  %v3519_v11 = vpop.f32.mrf.mxu3  ;;  %v1385_v37 = vadd.f32 %v8146_v0, %v1115_v29  ;;  %v846_v33 = vadd.f32 %v8147_v6, %v576_v12  ;;  %v4948_v29 = vld [vmem:[%s7806_s4 + $0x28] sm:$0xff] }
 0x363   : > { %v3374_v9 = vadd.f32 %v3306_v56, %v3160_v14  ;;  %v8148_v56 = vld [vmem:[#allocation86_spill] sm:$0xff]  ;;  %3889 = vmatpush.msrb.mxu3 %v4948_v29 }
 0x364   : > { %4844 = vmatmul.msk.f32.gmra.mxu1 %vm2996_vm2, %v7069_v7  ;;  %v3225_v25 = vrot.slane %v7069_v7, 1  ;;  %v3438_v45 = vrot.slane %v7069_v7, 2 }
 0x365   : > { %v7079_v40 = vadd.f32 %v3519_v11, %v3374_v9  ;;  %v2682_v4 = vpop.f32.mrf.mxu0  ;;  %v1655_v11 = vadd.f32 %v8148_v56, %v1385_v37  ;;  %v3162_v56 = vadd.f32 %v6989_v50, %v3098_v1 }
 0x366   : > { %v2733_v51 = vadd.f32 %v2682_v4, %v2463_v30  ;;  %v7083_v41 = vsel %vm3185_vm3, %v3223_v62, %v3225_v25  ;;  %v7086_v14 = vsel %vm3398_vm4, %v3436_v28, %v3438_v45  ;;  %v3161_v62 = vadd.f32 %v6989_v50, %v3095_v27 }
 0x367   : > { %4868 = vmatmul.msk.f32.gmra.mxu2 %vm2996_vm2, %v7083_v41  ;;  %4893 = vmatmul.msk.f32.gmra.mxu3 %vm2996_vm2, %v7086_v14  ;;  %v2194_v28 = vadd.f32 %v6653_v26, %v1924_v61  ;;  %v8149_v61 = vld [vmem:[#allocation68_spill] sm:$0xff] }
 0x368   : > { %v2764_v9 = vmax.f32 %v2733_v51, 0.0  ;;  %4980 = vmatmul.msk.f32.gmra.mxu0 %vm2996_vm2, %v6819_v10  ;;  %v1116_v51 = vadd.f32 %v8149_v61, %v846_v33 }
 0x369   : > { %v3101_v47 = vpop.f32.mrf.mxu1  ;;  %v2464_v12 = vadd.f32 %v6655_v22, %v2194_v28 }
 0x36a   : > { %v7099_v30 = vmul.f32 %v2913_v19, %v2764_v9  ;;  %v3309_v8 = vpop.f32.mrf.mxu2  ;;  %v3522_v52 = vpop.f32.mrf.mxu3  ;;  %v1925_v9 = vadd.f32 %v6626_v35, %v1655_v11 }
 0x36b   : > { %v3375_v4 = vadd.f32 %v3309_v8, %v3161_v62  ;;  %v8150_v62 = vld [vmem:[#allocation2_spill] sm:$0xff]  ;;  %v2918_v35 = vpop.permute.xlu1 %2917 }
 0x36c   : > { %4845 = vmatmul.msk.f32.gmra.mxu1 %vm2996_vm2, %v7099_v30  ;;  %v3227_v27 = vrot.slane %v7099_v30, 1  ;;  %v3440_v26 = vrot.slane %v7099_v30, 2  ;;  %v1386_v33 = vadd.f32 %v8150_v62, %v1116_v51  ;;  %v2195_v11 = vadd.f32 %v6689_v24, %v1925_v9 }
 0x36d   : > { %v7110_v0 = vadd.f32 %v3522_v52, %v3375_v4  ;;  %v2685_v37 = vpop.f32.mrf.mxu0 }
 0x36e   : > { %v2734_v6 = vadd.f32 %v2685_v37, %v2464_v12  ;;  %v7114_v19 = vsel %vm3185_vm3, %v3225_v25, %v3227_v27  ;;  %v7117_v22 = vsel %vm3398_vm4, %v3438_v45, %v3440_v26  ;;  %v8151_v45 = vld [vmem:[#allocation88_spill] sm:$0xff]  ;;  %v5023_v12 = vld [vmem:[%s7806_s4 + $0x40] sm:$0xff]  ;;  %v2465_v51 = vadd.f32 %v6691_v42, %v2195_v11 }
 0x36f   : > { %4869 = vmatmul.msk.f32.gmra.mxu2 %vm2996_vm2, %v7114_v19  ;;  %4894 = vmatmul.msk.f32.gmra.mxu3 %vm2996_vm2, %v7117_v22  ;;  %v1656_v8 = vadd.f32 %v8151_v45, %v1386_v33 }
 0x370   : > { %v2765_v28 = vmax.f32 %v2734_v6, 0.0  ;;  %4981 = vmatmul.msk.f32.gmra.mxu0 %vm2996_vm2, %v6848_v39  ;;  %4267 = vmatpush.msra.mxu2 %v5023_v12  ;;  %v4998_v6 = vld [vmem:[%s7806_s4 + $0x38] sm:$0xff] }
 0x371   : > { %v3104_v25 = vpop.f32.mrf.mxu1  ;;  %v1926_v62 = vadd.f32 %v6667_v46, %v1656_v8  ;;  %4140 = vmatpush.msra.mxu1 %v4998_v6  ;;  %v3163_v46 = vadd.f32 %v6989_v50, %v3101_v47 }
 0x372   : > { %v7129_v52 = vmul.f32 %v2918_v35, %v2765_v28  ;;  %v3312_v29 = vpop.f32.mrf.mxu2  ;;  %v3525_v4 = vpop.f32.mrf.mxu3 }
 0x373   : > { %v3376_v61 = vadd.f32 %v3312_v29, %v3162_v56  ;;  %v2923_v56 = vpop.permute.xlu2 %2922 }
 0x374   : > { %4846 = vmatmul.msk.f32.gmra.mxu1 %vm2996_vm2, %v7129_v52  ;;  %v3229_v1 = vrot.slane %v7129_v52, 1  ;;  %v3442_v24 = vrot.slane %v7129_v52, 2 }
 0x375   : > { %v7139_v37 = vadd.f32 %v3525_v4, %v3376_v61  ;;  %v2688_v9 = vpop.f32.mrf.mxu0 }
 0x376   : > { %v2735_v33 = vadd.f32 %v2688_v9, %v2465_v51  ;;  %v7146_v28 = vsel %vm3185_vm3, %v3227_v27, %v3229_v1  ;;  %v7149_v42 = vsel %vm3398_vm4, %v3440_v26, %v3442_v24  ;;  %v2196_v27 = vadd.f32 %v6730_v57, %v1926_v62  ;;  %v2928_v62 = vpop.permute.xlu0 %2927 }
 0x377   : > { %4870 = vmatmul.msk.f32.gmra.mxu2 %vm2996_vm2, %v7146_v28  ;;  %4895 = vmatmul.msk.f32.gmra.mxu3 %vm2996_vm2, %v7149_v42 }
 0x378   : > { %v2766_v35 = vmax.f32 %v2735_v33, 0.0  ;;  %4982 = vmatmul.msk.f32.gmra.mxu0 %vm2996_vm2, %v6881_v48  ;;  %v2466_v4 = vadd.f32 %v6732_v53, %v2196_v27  ;;  %v3164_v33 = vadd.f32 %v6989_v50, %v3104_v25  ;;  %v8152_v27 = vld [vmem:[#allocation114_spill] sm:$0xff] }
 0x379   : > { %v3107_v11 = vpop.f32.mrf.mxu1 }
 0x37a   : > { %v7159_v45 = vmul.f32 %v2923_v56, %v2766_v35  ;;  %v3315_v26 = vpop.f32.mrf.mxu2  ;;  %v3528_v8 = vpop.f32.mrf.mxu3 }
 0x37b   : > { %v3377_v29 = vadd.f32 %v3315_v26, %v3163_v46 }
 0x37c   : > { %4847 = vmatmul.msk.f32.gmra.mxu1 %vm2996_vm2, %v7159_v45  ;;  %v3231_v12 = vrot.slane %v7159_v45, 1  ;;  %v3444_v61 = vrot.slane %v7159_v45, 2 }
 0x37d   : > { %v7166_v51 = vadd.f32 %v3528_v8, %v3377_v29  ;;  %v2691_v47 = vpop.f32.mrf.mxu0 }
 0x37e   : > { %v2736_v9 = vadd.f32 %v2691_v47, %v2466_v4  ;;  %v7169_v57 = vsel %vm3185_vm3, %v3229_v1, %v3231_v12  ;;  %v7172_v6 = vsel %vm3398_vm4, %v3442_v24, %v3444_v61  ;;  %v3165_v47 = vadd.f32 %v6989_v50, %v3107_v11 }
 0x37f   : > { %4871 = vmatmul.msk.f32.gmra.mxu2 %vm2996_vm2, %v7169_v57  ;;  %4896 = vmatmul.msk.f32.gmra.mxu3 %vm2996_vm2, %v7172_v6 }
 0x380   : > { %v2767_v53 = vmax.f32 %v2736_v9, 0.0  ;;  %4983 = vmatmul.msk.f32.gmra.mxu0 %vm2996_vm2, %v6914_v23 }
 0x381   : > { %v3110_v35 = vpop.f32.mrf.mxu1 }
 0x382   : > { %v7181_v56 = vmul.f32 %v2928_v62, %v2767_v53  ;;  %v3318_v1 = vpop.f32.mrf.mxu2  ;;  %v3531_v46 = vpop.f32.mrf.mxu3  ;;  %v3166_v11 = vadd.f32 %v6989_v50, %v3110_v35 }
 0x383   : > { %v3378_v24 = vadd.f32 %v3318_v1, %v3164_v33  ;;  %v8153_v33 = vld [vmem:[#allocation17_spill] sm:$0xff]  ;;  %v8154_v1 = vld [vmem:[#allocation48_spill] sm:$0xff] }
 0x384   : > { %4899 = vmatmul.msk.f32.vlgmr.msrb.gmra.mxu1 %vm2996_vm2, %v8152_v27  ;;  %v7859_v26 = vrot.slane %v7181_v56, 1  ;;  %v7858_v8 = vrot.slane %v7181_v56, 2 }
 0x385   : > { %v7187_v29 = vadd.f32 %v3531_v46, %v3378_v24  ;;  %v8155_v46 = vld [vmem:[#allocation19_spill] sm:$0xff] }
 0x386   : > { %v7192_v4 = vsel %vm3185_vm3, %v3231_v12, %v7859_v26  ;;  %v7197_v25 = vsel %vm3398_vm4, %v3444_v61, %v7858_v8 }
 0x387   : > { %4872 = vmatmul.msk.f32.gmra.mxu2 %vm2996_vm2, %v7192_v4  ;;  %4897 = vmatmul.msk.f32.gmra.mxu3 %vm2996_vm2, %v7197_v25 }
 0x388   : > { %4984 = vmatmul.msk.f32.gmra.mxu0 %vm2996_vm2, %v6945_v15 }
 0x389   : > { %v3113_v9 = vpop.f32.mrf.mxu1 }
 0x38a   : > { %v3321_v53 = vpop.f32.mrf.mxu2  ;;  %v3534_v12 = vpop.f32.mrf.mxu3  ;;  %v3167_v35 = vadd.f32 %v6989_v50, %v3113_v9 }
 0x38b   : > { %v3379_v62 = vadd.f32 %v3321_v53, %v3165_v47 }
 0x38c   : > { %4900 = vmatmul.msk.f32.gmra.mxu1 %vm2996_vm2, %v8153_v33 }
 0x38d   : > { %v7208_v61 = vadd.f32 %v3534_v12, %v3379_v62 }
 0x38f   : > { %4924 = vmatmul.msk.f32.vlgmr.msrb.gmra.mxu2 %vm2996_vm2, %v8154_v1  ;;  %4949 = vmatmul.msk.f32.vlgmr.msrb.gmra.mxu3 %vm2996_vm2, %v8155_v46 }
 0x390   : > { %4985 = vmatmul.msk.f32.gmra.mxu0 %vm2996_vm2, %v6976_v20 }
 0x391   : > { %v3116_v24 = vpop.f32.mrf.mxu1 }
 0x392   : > { %v3324_v27 = vpop.f32.mrf.mxu2  ;;  %v3537_v8 = vpop.f32.mrf.mxu3 }
 0x393   : > { %v3380_v47 = vadd.f32 %v3324_v27, %v3166_v11 }
 0x394   : > { %4901 = vmatmul.msk.f32.gmra.mxu1 %vm2996_vm2, %v6593_v36 }
 0x395   : > { %v7219_v53 = vadd.f32 %v3537_v8, %v3380_v47  ;;  %v5105_v47 = vld [vmem:[%s7805_s3] ss:$0 sm:$0xff] }
 0x397   : > { %4925 = vmatmul.msk.f32.gmra.mxu2 %vm2996_vm2, %v6605_v3  ;;  %4950 = vmatmul.msk.f32.gmra.mxu3 %vm2996_vm2, %v6608_v60  ;;  %v3168_v3 = vadd.f32 %v6989_v50, %v3116_v24 }
 0x398   : > { %4986 = vmatmul.msk.f32.gmra.mxu0 %vm2996_vm2, %v7009_v44 }
 0x399   : > { %v3119_v12 = vpop.f32.mrf.mxu1 }
 0x39a   : > { %v3327_v62 = vpop.f32.mrf.mxu2  ;;  %v3540_v33 = vpop.f32.mrf.mxu3 }
 0x39b   : > { %v3381_v1 = vadd.f32 %v3327_v62, %v3167_v35  ;;  %v8158_v35 = vld [vmem:[#allocation60_spill] sm:$0xff] }
 0x39c   : > { %4902 = vmatmul.msk.f32.gmra.mxu1 %vm2996_vm2, %v6624_v18  ;;  %v577_v62 = vadd.f32 %v5105_v47, %v8158_v35 }
 0x39d   : > { %v7230_v36 = vadd.f32 %v3540_v33, %v3381_v1  ;;  %v8159_v33 = vld [vmem:[#allocation18_spill] sm:$0xff] }
 0x39e   : > { %v847_v1 = vadd.f32 %v8159_v33, %v577_v62 }
 0x39f   : > { %4926 = vmatmul.msk.f32.gmra.mxu2 %vm2996_vm2, %v6638_v2  ;;  %4951 = vmatmul.msk.f32.gmra.mxu3 %vm2996_vm2, %v6641_v58  ;;  %v3169_v2 = vadd.f32 %v6989_v50, %v3119_v12 }
 0x3a0   : > { %4987 = vmatmul.msk.f32.gmra.mxu0 %vm2996_vm2, %v7039_v49 }
 0x3a1   : > { %v3122_v60 = vpop.f32.mrf.mxu1 }
 0x3a2   : > { %v3330_v8 = vpop.f32.mrf.mxu2  ;;  %v3543_v9 = vpop.f32.mrf.mxu3  ;;  %v3170_v12 = vadd.f32 %v6989_v50, %v3122_v60  ;;  %v8163_v60 = vld [vmem:[#allocation24_spill] sm:$0xff] }
 0x3a3   : > { %v3382_v46 = vadd.f32 %v3330_v8, %v3168_v3 }
 0x3a4   : > { %4903 = vmatmul.msk.f32.gmra.mxu1 %vm2996_vm2, %v6657_v32 }
 0x3a5   : > { %v7241_v18 = vadd.f32 %v3543_v9, %v3382_v46 }
 0x3a7   : > { %8156 = vst [vmem:[#allocation76_spill] sm:$0xff] %v7241_v18  ;;  %4927 = vmatmul.msk.f32.gmra.mxu2 %vm2996_vm2, %v6671_v63  ;;  %4952 = vmatmul.msk.f32.gmra.mxu3 %vm2996_vm2, %v6674_v13  ;;  %v8169_v18 = vld [vmem:[#allocation23_spill] sm:$0xff] }
 0x3a8   : > { %4988 = vmatmul.msk.f32.gmra.mxu0 %vm2996_vm2, %v7069_v7 }
 0x3a9   : > { %v3125_v58 = vpop.f32.mrf.mxu1 }
 0x3aa   : > { %v3333_v11 = vpop.f32.mrf.mxu2  ;;  %v3546_v24 = vpop.f32.mrf.mxu3  ;;  %v3171_v62 = vadd.f32 %v6989_v50, %v3125_v58 }
 0x3ab   : > { %v3383_v27 = vadd.f32 %v3333_v11, %v3169_v2  ;;  %v8161_v2 = vld [vmem:[#allocation62_spill] sm:$0xff] }
 0x3ac   : > { %4904 = vmatmul.msk.f32.gmra.mxu1 %vm2996_vm2, %v6686_v17  ;;  %v578_v11 = vadd.f32 %v5105_v47, %v8161_v2  ;;  %v2694_v2 = vpop.f32.mrf.mxu0 }
 0x3ad   : > { %v7252_v32 = vadd.f32 %v3546_v24, %v3383_v27  ;;  %v8162_v24 = vld [vmem:[#allocation71_spill] sm:$0xff] }
 0x3ae   : > { %v1117_v27 = vadd.f32 %v8162_v24, %v847_v1 }
 0x3af   : > { %8157 = vst [vmem:[#allocation104_spill] sm:$0xff] %v7252_v32  ;;  %4928 = vmatmul.msk.f32.gmra.mxu2 %vm2996_vm2, %v6702_v59  ;;  %4953 = vmatmul.msk.f32.gmra.mxu3 %vm2996_vm2, %v6705_v34 }
 0x3b0   : > { %4989 = vmatmul.msk.f32.gmra.mxu0 %vm2996_vm2, %v7099_v30  ;;  %v1387_v35 = vadd.f32 %v8163_v60, %v1117_v27  ;;  %v8167_v27 = vld [vmem:[#allocation65_spill] sm:$0xff] }
 0x3b1   : > { %v3128_v17 = vpop.f32.mrf.mxu1  ;;  %v579_v60 = vadd.f32 %v5105_v47, %v8167_v27  ;;  %v8175_v27 = vld [vmem:[#allocation30_spill] sm:$0xff] }
 0x3b2   : > { %v3336_v3 = vpop.f32.mrf.mxu2  ;;  %v3549_v8 = vpop.f32.mrf.mxu3 }
 0x3b3   : > { %v3384_v9 = vadd.f32 %v3336_v3, %v3170_v12  ;;  %v8164_v12 = vld [vmem:[#allocation20_spill] sm:$0xff]  ;;  %v8165_v3 = vld [vmem:[#allocation89_spill] sm:$0xff] }
 0x3b4   : > { %4905 = vmatmul.msk.f32.gmra.mxu1 %vm2996_vm2, %v6719_v16  ;;  %v848_v33 = vadd.f32 %v8164_v12, %v578_v11  ;;  %v8170_v11 = vld [vmem:[#allocation27_spill] sm:$0xff] }
 0x3b5   : > { %v7268_v46 = vadd.f32 %v3549_v8, %v3384_v9  ;;  %v1657_v8 = vadd.f32 %v8165_v3, %v1387_v35  ;;  %v8171_v35 = vld [vmem:[#allocation6_spill] sm:$0xff] }
 0x3b6   : > { %v8172_v3 = vld [vmem:[#allocation22_spill] sm:$0xff] }
 0x3b7   : > { %8160 = vst [vmem:[#allocation13_spill] sm:$0xff] %v7268_v46  ;;  %4929 = vmatmul.msk.f32.gmra.mxu2 %vm2996_vm2, %v6735_v55  ;;  %4954 = vmatmul.msk.f32.gmra.mxu3 %vm2996_vm2, %v6738_v43  ;;  %v8168_v46 = vld [vmem:[#allocation74_spill] sm:$0xff]  ;;  %v1927_v58 = vadd.f32 %v6707_v31, %v1657_v8  ;;  %v849_v47 = vadd.f32 %v8172_v3, %v579_v60  ;;  %v8178_v43 = vld [vmem:[#allocation21_spill] sm:$0xff] }
 0x3b8   : > { %4990 = vmatmul.msk.f32.gmra.mxu0 %vm2996_vm2, %v7129_v52  ;;  %v1118_v32 = vadd.f32 %v8168_v46, %v848_v33  ;;  %v8174_v33 = vld [vmem:[#allocation91_spill] sm:$0xff]  ;;  %v8179_v3 = vld [vmem:[#allocation33_spill] sm:$0xff] }
 0x3b9   : > { %v3131_v16 = vpop.f32.mrf.mxu1 }
 0x3ba   : > { %v3339_v9 = vpop.f32.mrf.mxu2  ;;  %v3552_v1 = vpop.f32.mrf.mxu3  ;;  %v1388_v12 = vadd.f32 %v8171_v35, %v1118_v32 }
 0x3bb   : > { %v3385_v24 = vadd.f32 %v3339_v9, %v3171_v62  ;;  %v8173_v9 = vld [vmem:[#allocation25_spill] sm:$0xff]  ;;  %v2697_v32 = vpop.f32.mrf.mxu0 }
 0x3bc   : > { %4906 = vmatmul.msk.f32.gmra.mxu1 %vm2996_vm2, %v6752_v5  ;;  %v3172_v5 = vadd.f32 %v6989_v50, %v3128_v17  ;;  %v2197_v46 = vadd.f32 %v8173_v9, %v1927_v58  ;;  %v1658_v31 = vadd.f32 %v8174_v33, %v1388_v12  ;;  %v8180_v58 = vld [vmem:[#allocation34_spill] sm:$0xff]  ;;  %v8181_v12 = vld [vmem:[#allocation3_spill] sm:$0xff] }
 0x3bd   : > { %v7284_v26 = vadd.f32 %v3552_v1, %v3385_v24 }
 0x3bf   : > { %8166 = vst [vmem:[#allocation105_spill] sm:$0xff] %v7284_v26  ;;  %4930 = vmatmul.msk.f32.gmra.mxu2 %vm2996_vm2, %v8169_v18  ;;  %4955 = vmatmul.msk.f32.gmra.mxu3 %vm2996_vm2, %v8170_v11  ;;  %v2467_v26 = vadd.f32 %v8175_v27, %v2197_v46  ;;  %v8177_v11 = vld [vmem:[#allocation78_spill] sm:$0xff]  ;;  %v1928_v18 = vadd.f32 %v8178_v43, %v1658_v31  ;;  %v8182_v46 = vld [vmem:[#allocation35_spill] sm:$0xff] }
 0x3c0   : > { %4991 = vmatmul.msk.f32.gmra.mxu0 %vm2996_vm2, %v7159_v45  ;;  %v1119_v17 = vadd.f32 %v8177_v11, %v849_v47  ;;  %v8183_v11 = vld [vmem:[#allocation95_spill] sm:$0xff] }
 0x3c1   : > { %v3134_v62 = vpop.f32.mrf.mxu1  ;;  %v2737_v60 = vadd.f32 %v2694_v2, %v2467_v26  ;;  %v2198_v33 = vadd.f32 %v8182_v46, %v1928_v18  ;;  %v8187_v46 = vld [vmem:[#allocation63_spill] sm:$0xff] }
 0x3c2   : > { %v3342_v8 = vpop.f32.mrf.mxu2  ;;  %v3555_v1 = vpop.f32.mrf.mxu3 }
 0x3c3   : > { %v3386_v24 = vadd.f32 %v3342_v8, %v3172_v5  ;;  %v1389_v5 = vadd.f32 %v8181_v12, %v1119_v17  ;;  %v2768_v43 = vmax.f32 %v2737_v60, 0.0  ;;  %v8184_v8 = vld [vmem:[#allocation37_spill] sm:$0xff]  ;;  %v2700_v18 = vpop.f32.mrf.mxu0  ;;  %v8188_v60 = vld [vmem:[#allocation11_spill] sm:$0xff] }
 0x3c4   : > { %4907 = vmatmul.msk.f32.gmra.mxu1 %vm2996_vm2, %v6786_v38  ;;  %v3173_v38 = vadd.f32 %v6989_v50, %v3131_v16  ;;  %v8186_v17 = vld [vmem:[#allocation29_spill] sm:$0xff] }
 0x3c5   : > { %v7303_v35 = vadd.f32 %v3555_v1, %v3386_v24  ;;  %v1659_v47 = vadd.f32 %v8183_v11, %v1389_v5  ;;  %v2468_v1 = vadd.f32 %v8184_v8, %v2198_v33  ;;  %v2933_v24 = vpop.permute.xlu1 %2932  ;;  %v8190_v11 = vld [vmem:[#allocation8_spill] sm:$0xff] }
 0x3c6   : > { %v7323_v16 = vmul.f32 %v2933_v24, %v2768_v43  ;;  %v8192_v8 = vld [vmem:[#allocation92_spill] sm:$0xff]  ;;  %v2938_v24 = vpop.permute.xlu2 %2937 }
 0x3c7   : > { %8176 = vst [vmem:[#allocation45_spill] sm:$0xff] %v7303_v35  ;;  %4931 = vmatmul.msk.f32.gmra.mxu2 %vm2996_vm2, %v8179_v3  ;;  %4956 = vmatmul.msk.f32.gmra.mxu3 %vm2996_vm2, %v8180_v58  ;;  %v1929_v12 = vadd.f32 %v8186_v17, %v1659_v47  ;;  %v2738_v35 = vadd.f32 %v2697_v32, %v2468_v1  ;;  %v8191_v47 = vld [vmem:[#allocation99_spill] sm:$0xff] }
 0x3c8   : > { %4992 = vmatmul.msk.f32.gmra.mxu0 %vm2996_vm2, %v7181_v56  ;;  %v1660_v43 = vadd.f32 %v8191_v47, %v8190_v11  ;;  %v8197_v11 = vld [vmem:[#allocation39_spill] sm:$0xff] }
 0x3c9   : > { %v3137_v9 = vpop.f32.mrf.mxu1 }
 0x3ca   : > { %v3345_v26 = vpop.f32.mrf.mxu2  ;;  %v3558_v2 = vpop.f32.mrf.mxu3 }
 0x3cb   : > { %v3387_v31 = vadd.f32 %v3345_v26, %v3173_v38  ;;  %v8189_v38 = vld [vmem:[#allocation67_spill] sm:$0xff]  ;;  %v2769_v26 = vmax.f32 %v2738_v35, 0.0  ;;  %v8196_v35 = vld [vmem:[#allocation93_spill] sm:$0xff] }
 0x3cc   : > { %4908 = vmatmul.msk.f32.gmra.mxu1 %vm2996_vm2, %v6819_v10  ;;  %v3174_v10 = vadd.f32 %v6989_v50, %v3134_v62  ;;  %v2199_v33 = vadd.f32 %v8189_v38, %v1929_v12  ;;  %v8195_v38 = vld [vmem:[#allocation7_spill] sm:$0xff] }
 0x3cd   : > { %v7320_v27 = vadd.f32 %v3558_v2, %v3387_v31 }
 0x3ce   : > { %v2469_v1 = vadd.f32 %v8192_v8, %v2199_v33  ;;  %v8200_v8 = vld [vmem:[#allocation90_spill] sm:$0xff] }
 0x3cf   : > { %8185 = vst [vmem:[#allocation49_spill] sm:$0xff] %v7320_v27  ;;  %4932 = vmatmul.msk.f32.gmra.mxu2 %vm2996_vm2, %v8187_v46  ;;  %4957 = vmatmul.msk.f32.gmra.mxu3 %vm2996_vm2, %v8188_v60  ;;  %v8194_v27 = vld [vmem:[#allocation87_spill] sm:$0xff]  ;;  %v7341_v60 = vmul.f32 %v2938_v24, %v2769_v26  ;;  %v2943_v24 = vpop.permute.xlu0 %2942 }
 0x3d0   : > { %4993 = vmatmul.msk.f32.gmra.mxu0 %vm2996_vm2, %v7323_v16  ;;  %v1930_v62 = vadd.f32 %v8194_v27, %v1660_v43  ;;  %v2739_v12 = vadd.f32 %v2700_v18, %v2469_v1  ;;  %v8199_v27 = vld [vmem:[#allocation103_spill] sm:$0xff] }
 0x3d1   : > { %v3140_v5 = vpop.f32.mrf.mxu1 }
 0x3d2   : > { %v3348_v32 = vpop.f32.mrf.mxu2  ;;  %v3561_v2 = vpop.f32.mrf.mxu3  ;;  %v2200_v47 = vadd.f32 %v8197_v11, %v1930_v62  ;;  %v2770_v26 = vmax.f32 %v2739_v12, 0.0  ;;  %v8202_v11 = vld [vmem:[#allocation66_spill] sm:$0xff] }
 0x3d3   : > { %v3388_v31 = vadd.f32 %v3348_v32, %v3174_v10  ;;  %v2703_v10 = vpop.f32.mrf.mxu0  ;;  %v8198_v32 = vld [vmem:[#allocation5_spill] sm:$0xff]  ;;  %v8203_v12 = vld [vmem:[#allocation70_spill] sm:$0xff] }
 0x3d4   : > { %4909 = vmatmul.msk.f32.gmra.mxu1 %vm2996_vm2, %v6848_v39  ;;  %v3175_v39 = vadd.f32 %v6989_v50, %v3137_v9  ;;  %v1661_v43 = vadd.f32 %v8199_v27, %v8198_v32  ;;  %v2470_v1 = vadd.f32 %v8200_v8, %v2200_v47  ;;  %v8204_v47 = vld [vmem:[#allocation40_spill] sm:$0xff] }
 0x3d5   : > { %v7338_v17 = vadd.f32 %v3561_v2, %v3388_v31 }
 0x3d6   : > { %v2740_v62 = vadd.f32 %v2703_v10, %v2470_v1  ;;  %v8205_v10 = vld [vmem:[#allocation42_spill] sm:$0xff] }
 0x3d7   : > { %8193 = vst [vmem:[#allocation102_spill] sm:$0xff] %v7338_v17  ;;  %4933 = vmatmul.msk.f32.gmra.mxu2 %vm2996_vm2, %v8195_v38  ;;  %4958 = vmatmul.msk.f32.gmra.mxu3 %vm2996_vm2, %v8196_v35  ;;  %v8201_v35 = vld [vmem:[#allocation38_spill] sm:$0xff]  ;;  %v7359_v38 = vmul.f32 %v2943_v24, %v2770_v26 }
 0x3d8   : > { %4994 = vmatmul.msk.f32.gmra.mxu0 %vm2996_vm2, %v7341_v60  ;;  %v1931_v9 = vadd.f32 %v8201_v35, %v1661_v43  ;;  %v2771_v27 = vmax.f32 %v2740_v62, 0.0 }
 0x3d9   : > { %v3143_v33 = vpop.f32.mrf.mxu1 }
 0x3da   : > { %v3351_v18 = vpop.f32.mrf.mxu2  ;;  %v3564_v2 = vpop.f32.mrf.mxu3  ;;  %v2201_v32 = vadd.f32 %v8204_v47, %v1931_v9  ;;  %v8208_v9 = vld [vmem:[#allocation97_spill] sm:$0xff]  ;;  %v3177_v62 = vadd.f32 %v6989_v50, %v3143_v33 }
 0x3db   : > { %v3389_v31 = vadd.f32 %v3351_v18, %v3175_v39  ;;  %v3176_v39 = vadd.f32 %v6989_v50, %v3140_v5  ;;  %v2706_v43 = vpop.f32.mrf.mxu0  ;;  %v8207_v5 = vld [vmem:[#allocation36_spill] sm:$0xff] }
 0x3dc   : > { %4910 = vmatmul.msk.f32.gmra.mxu1 %vm2996_vm2, %v6881_v48 }
 0x3dd   : > { %v7356_v17 = vadd.f32 %v3564_v2, %v3389_v31  ;;  %v2471_v2 = vadd.f32 %v8205_v10, %v2201_v32  ;;  %v2948_v31 = vpop.permute.xlu1 %2947  ;;  %v8211_v10 = vld [vmem:[#allocation69_spill] sm:$0xff] }
 0x3de   : > { %v7374_v1 = vmul.f32 %v2948_v31, %v2771_v27  ;;  %v2953_v27 = vpop.permute.xlu2 %2952 }
 0x3df   : > { %4934 = vmatmul.msk.f32.gmra.mxu2 %vm2996_vm2, %v8202_v11  ;;  %4959 = vmatmul.msk.f32.gmra.mxu3 %vm2996_vm2, %v8203_v12  ;;  %v2741_v24 = vadd.f32 %v2706_v43, %v2471_v2 }
 0x3e0   : > { %4995 = vmatmul.msk.f32.gmra.mxu0 %vm2996_vm2, %v7359_v38  ;;  %8206 = vst [vmem:[#allocation75_spill] sm:$0xff] %v7374_v1 }
 0x3e1   : > { %v3146_v48 = vpop.f32.mrf.mxu1  ;;  %v2772_v47 = vmax.f32 %v2741_v24, 0.0 }
 0x3e2   : > { %v3354_v18 = vpop.f32.mrf.mxu2  ;;  %v3567_v35 = vpop.f32.mrf.mxu3  ;;  %v3178_v2 = vadd.f32 %v6989_v50, %v3146_v48 }
 0x3e3   : > { %v3390_v26 = vadd.f32 %v3354_v18, %v3176_v39  ;;  %v7387_v43 = vmul.f32 %v2953_v27, %v2772_v47  ;;  %v7393_v33 = vpop.f32.mrf.mxu0 }
 0x3e4   : > { %4911 = vmatmul.msk.f32.gmra.mxu1 %vm2996_vm2, %v6914_v23  ;;  %8212 = vst [vmem:[#allocation108_spill] sm:$0xff] %v7393_v33 }
 0x3e5   : > { %v7372_v8 = vadd.f32 %v3567_v35, %v3390_v26  ;;  %8209 = vst [vmem:[#allocation80_spill] sm:$0xff] %v7387_v43  ;;  %v8210_v26 = vld [vmem:[#allocation94_spill] sm:$0xff] }
 0x3e7   : > { %4935 = vmatmul.msk.f32.gmra.mxu2 %vm2996_vm2, %v8207_v5  ;;  %4960 = vmatmul.msk.f32.gmra.mxu3 %vm2996_vm2, %v8208_v9 }
 0x3e8   : > { %4996 = vmatmul.msk.f32.gmra.mxu0 %vm2996_vm2, %v7374_v1 }
 0x3e9   : > { %v3149_v39 = vpop.f32.mrf.mxu1 }
 0x3ea   : > { %v3357_v23 = vpop.f32.mrf.mxu2  ;;  %v3570_v32 = vpop.f32.mrf.mxu3 }
 0x3eb   : > { %v3391_v18 = vadd.f32 %v3357_v23, %v3177_v62  ;;  %v8214_v23 = vld [vmem:[#allocation10_spill] sm:$0xff] }
 0x3ec   : > { %4912 = vmatmul.msk.f32.gmra.mxu1 %vm2996_vm2, %v6945_v15 }
 0x3ed   : > { %v7385_v35 = vadd.f32 %v3570_v32, %v3391_v18  ;;  %v8215_v32 = vld [vmem:[#allocation101_spill] sm:$0xff]  ;;  %v3179_v18 = vadd.f32 %v6989_v50, %v3149_v39 }
 0x3ef   : > { %4936 = vmatmul.msk.f32.gmra.mxu2 %vm2996_vm2, %v8210_v26  ;;  %4961 = vmatmul.msk.f32.gmra.mxu3 %vm2996_vm2, %v8211_v10 }
 0x3f0   : > { %4997 = vmatmul.msk.f32.gmra.mxu0 %vm2996_vm2, %v7387_v43 }
 0x3f1   : > { %v3152_v31 = vpop.f32.mrf.mxu1 }
 0x3f2   : > { %v3360_v15 = vpop.f32.mrf.mxu2  ;;  %v3573_v24 = vpop.f32.mrf.mxu3 }
 0x3f3   : > { %v3392_v62 = vadd.f32 %v3360_v15, %v3178_v2  ;;  %v8217_v15 = vld [vmem:[#allocation98_spill] sm:$0xff] }
 0x3f4   : > { %4913 = vmatmul.msk.f32.gmra.mxu1 %vm2996_vm2, %v6976_v20  ;;  %v8216_v20 = vld [vmem:[#allocation46_spill] sm:$0xff] }
 0x3f5   : > { %v7400_v47 = vadd.f32 %v3573_v24, %v3392_v62  ;;  %v3180_v24 = vadd.f32 %v6989_v50, %v3152_v31 }
 0x3f7   : > { %8213 = vst [vmem:[#allocation26_spill] sm:$0xff] %v7400_v47  ;;  %4937 = vmatmul.msk.f32.gmra.mxu2 %vm2996_vm2, %v8214_v23  ;;  %4962 = vmatmul.msk.f32.gmra.mxu3 %vm2996_vm2, %v8215_v32 }
 0x3f9   : > { %v3155_v27 = vpop.f32.mrf.mxu1 }
 0x3fa   : > { %v3363_v43 = vpop.f32.mrf.mxu2  ;;  %v3576_v48 = vpop.f32.mrf.mxu3 }
 0x3fb   : > { %v3393_v33 = vadd.f32 %v3363_v43, %v3179_v18 }
 0x3fc   : > { %4914 = vmatmul.msk.f32.gmra.mxu1 %vm2996_vm2, %v7009_v44  ;;  %v3181_v44 = vadd.f32 %v6989_v50, %v3155_v27 }
 0x3fd   : > { %v7409_v2 = vadd.f32 %v3576_v48, %v3393_v33 }
 0x3ff   : > { %4938 = vmatmul.msk.f32.gmra.mxu2 %vm2996_vm2, %v8216_v20  ;;  %4963 = vmatmul.msk.f32.gmra.mxu3 %vm2996_vm2, %v8217_v15 }
 0x401   : > { %v3636_v62 = vpop.f32.mrf.mxu1 }
 0x402   : > { %v3366_v1 = vpop.f32.mrf.mxu2  ;;  %v3579_v39 = vpop.f32.mrf.mxu3 }
 0x403   : > { %v3394_v47 = vadd.f32 %v3366_v1, %v3180_v24 }
 0x404   : > { %4915 = vmatmul.msk.f32.gmra.mxu1 %vm2996_vm2, %v7039_v49  ;;  %v8218_v49 = vld [vmem:[#allocation43_spill] sm:$0xff] }
 0x405   : > { %v7418_v43 = vadd.f32 %v3579_v39, %v3394_v47  ;;  %v3708_v47 = vadd.f32 %v3636_v62, %v8218_v49 }
 0x407   : > { %4939 = vmatmul.msk.f32.gmra.mxu2 %vm2996_vm2, %v7053_v21  ;;  %4964 = vmatmul.msk.f32.gmra.mxu3 %vm2996_vm2, %v7056_v54 }
 0x409   : > { %v3639_v33 = vpop.f32.mrf.mxu1 }
 0x40a   : > { %v3369_v18 = vpop.f32.mrf.mxu2  ;;  %v3582_v48 = vpop.f32.mrf.mxu3 }
 0x40b   : > { %v3395_v31 = vadd.f32 %v3369_v18, %v3181_v44 }
 0x40c   : > { %4916 = vmatmul.msk.f32.gmra.mxu1 %vm2996_vm2, %v7069_v7  ;;  %v8219_v7 = vld [vmem:[#allocation72_spill] sm:$0xff] }
 0x40d   : > { %v7427_v1 = vadd.f32 %v3582_v48, %v3395_v31  ;;  %v3709_v27 = vadd.f32 %v3639_v33, %v8219_v7  ;;  %v3735_v7 = vrot.slane %v7323_v16, 1 }
 0x40f   : > { %4940 = vmatmul.msk.f32.gmra.mxu2 %vm2996_vm2, %v7083_v41  ;;  %4965 = vmatmul.msk.f32.gmra.mxu3 %vm2996_vm2, %v7086_v14 }
 0x411   : > { %v3642_v24 = vpop.f32.mrf.mxu1 }
 0x412   : > { %v3764_v39 = vpop.f32.mrf.mxu2 }
 0x413   : > { %v7434_v50 = vadd.f32 %v3764_v39, %v3708_v47 }
 0x414   : > { %4917 = vmatmul.msk.f32.gmra.mxu1 %vm2996_vm2, %v7099_v30  ;;  %v3710_v30 = vadd.f32 %v3642_v24, %v7079_v40 }
 0x417   : > { %4941 = vmatmul.msk.f32.gmra.mxu2 %vm2996_vm2, %v7114_v19  ;;  %4966 = vmatmul.msk.f32.gmra.mxu3 %vm2996_vm2, %v7117_v22 }
 0x419   : > { %v3645_v44 = vpop.f32.mrf.mxu1 }
 0x41a   : > { %v3767_v18 = vpop.f32.mrf.mxu2 }
 0x41b   : > { %v7443_v31 = vadd.f32 %v3767_v18, %v3709_v27 }
 0x41c   : > { %4918 = vmatmul.msk.f32.gmra.mxu1 %vm2996_vm2, %v7129_v52  ;;  %v3711_v52 = vadd.f32 %v3645_v44, %v7110_v0  ;;  %v3862_v0 = vrot.slane %v7323_v16, 2  ;;  %v8220_v44 = vrot.slane %v7181_v56, 1 }
 0x41e   : > { %v7479_v18 = vsel %vm3185_vm3, %v8220_v44, %v3735_v7 }
 0x41f   : > { %4942 = vmatmul.msk.f32.gmra.mxu2 %vm2996_vm2, %v7146_v28  ;;  %4967 = vmatmul.msk.f32.gmra.mxu3 %vm2996_vm2, %v7149_v42 }
 0x421   : > { %v3648_v62 = vpop.f32.mrf.mxu1 }
 0x422   : > { %v3770_v48 = vpop.f32.mrf.mxu2  ;;  %v3712_v40 = vadd.f32 %v3648_v62, %v7139_v37 }
 0x423   : > { %v7452_v49 = vadd.f32 %v3770_v48, %v3710_v30  ;;  %v8221_v30 = vrot.slane %v7181_v56, 2 }
 0x424   : > { %4919 = vmatmul.msk.f32.gmra.mxu1 %vm2996_vm2, %v7159_v45 }
 0x425   : > { %v7484_v37 = vsel %vm3398_vm4, %v8221_v30, %v3862_v0  ;;  %v3739_v30 = vrot.slane %v7359_v38, 1 }
 0x427   : > { %4943 = vmatmul.msk.f32.gmra.mxu2 %vm2996_vm2, %v7169_v57  ;;  %4968 = vmatmul.msk.f32.gmra.mxu3 %vm2996_vm2, %v7172_v6 }
 0x429   : > { %v3651_v33 = vpop.f32.mrf.mxu1 }
 0x42a   : > { %v3773_v47 = vpop.f32.mrf.mxu2  ;;  %v3713_v62 = vadd.f32 %v3651_v33, %v7166_v51 }
 0x42b   : > { %v7461_v39 = vadd.f32 %v3773_v47, %v3711_v52  ;;  %v3737_v52 = vrot.slane %v7341_v60, 1  ;;  %v3864_v47 = vrot.slane %v7341_v60, 2 }
 0x42c   : > { %4920 = vmatmul.msk.f32.gmra.mxu1 %vm2996_vm2, %v7181_v56 }
 0x42d   : > { %v7498_v56 = vsel %vm3185_vm3, %v3735_v7, %v3737_v52  ;;  %v7517_v7 = vsel %vm3185_vm3, %v3737_v52, %v3739_v30 }
 0x42f   : > { %4944 = vmatmul.msk.f32.gmra.mxu2 %vm2996_vm2, %v7192_v4  ;;  %4969 = vmatmul.msk.f32.gmra.mxu3 %vm2996_vm2, %v7197_v25 }
 0x431   : > { %v3654_v45 = vpop.f32.mrf.mxu1 }
 0x432   : > { %v3776_v24 = vpop.f32.mrf.mxu2  ;;  %v3714_v51 = vadd.f32 %v3654_v45, %v7187_v29 }
 0x433   : > { %v7472_v27 = vadd.f32 %v3776_v24, %v3712_v40  ;;  %v7501_v24 = vsel %vm3398_vm4, %v3862_v0, %v3864_v47 }
 0x434   : > { %4921 = vmatmul.msk.f32.gmra.mxu1 %vm2996_vm2, %v7323_v16 }
 0x437   : > { %4945 = vmatmul.msk.f32.gmra.mxu2 %vm2996_vm2, %v7479_v18  ;;  %4970 = vmatmul.msk.f32.gmra.mxu3 %vm2996_vm2, %v7484_v37 }
 0x439   : > { %v3657_v48 = vpop.f32.mrf.mxu1 }
 0x43a   : > { %v3779_v16 = vpop.f32.mrf.mxu2  ;;  %v3715_v45 = vadd.f32 %v3657_v48, %v7208_v61 }
 0x43b   : > { %v7493_v40 = vadd.f32 %v3779_v16, %v3713_v62 }
 0x43c   : > { %4922 = vmatmul.msk.f32.gmra.mxu1 %vm2996_vm2, %v7341_v60  ;;  %v3866_v60 = vrot.slane %v7359_v38, 2 }
 0x43e   : > { %v7522_v29 = vsel %vm3398_vm4, %v3864_v47, %v3866_v60 }
 0x43f   : > { %4946 = vmatmul.msk.f32.gmra.mxu2 %vm2996_vm2, %v7498_v56  ;;  %4971 = vmatmul.msk.f32.gmra.mxu3 %vm2996_vm2, %v7501_v24 }
 0x441   : > { %v3660_v33 = vpop.f32.mrf.mxu1 }
 0x442   : > { %v3782_v44 = vpop.f32.mrf.mxu2  ;;  %v3716_v52 = vadd.f32 %v3660_v33, %v7219_v53  ;;  %v8224_v53 = vld [vmem:[#allocation76_spill] sm:$0xff] }
 0x443   : > { %v7510_v62 = vadd.f32 %v3782_v44, %v3714_v51 }
 0x444   : > { %4999 = vmatmul.msk.f32.vlgmr.msra.gmra.mxu1 %vm2996_vm2, %v6671_v63 }
 0x447   : > { %4947 = vmatmul.msk.f32.gmra.mxu2 %vm2996_vm2, %v7517_v7  ;;  %4972 = vmatmul.msk.f32.gmra.mxu3 %vm2996_vm2, %v7522_v29 }
 0x449   : > { %v3663_v0 = vpop.f32.mrf.mxu1 }
 0x44a   : > { %v3785_v63 = vpop.f32.mrf.mxu2  ;;  %v3717_v61 = vadd.f32 %v3663_v0, %v7230_v36  ;;  %v8226_v36 = vld [vmem:[#allocation104_spill] sm:$0xff] }
 0x44b   : > { %v7529_v16 = vadd.f32 %v3785_v63, %v3715_v45  ;;  %v8222_v63 = vld [vmem:[#allocation23_spill] sm:$0xff] }
 0x44c   : > { %5000 = vmatmul.msk.f32.gmra.mxu1 %vm2996_vm2, %v6702_v59 }
 0x44f   : > { %5024 = vmatmul.msk.f32.vlgmr.msra.gmra.mxu2 %vm2996_vm2, %v6674_v13  ;;  %v8223_v13 = vld [vmem:[#allocation51_spill] sm:$0xff] }
 0x451   : > { %v3666_v47 = vpop.f32.mrf.mxu1 }
 0x452   : > { %v3788_v51 = vpop.f32.mrf.mxu2  ;;  %v3718_v33 = vadd.f32 %v3666_v47, %v8224_v53  ;;  %v8227_v47 = vld [vmem:[#allocation13_spill] sm:$0xff] }
 0x453   : > { %v7536_v44 = vadd.f32 %v3788_v51, %v3716_v52 }
 0x454   : > { %5001 = vmatmul.msk.f32.gmra.mxu1 %vm2996_vm2, %v6735_v55 }
 0x457   : > { %5025 = vmatmul.msk.f32.gmra.mxu2 %vm2996_vm2, %v6705_v34  ;;  %v8225_v34 = vld [vmem:[#allocation27_spill] sm:$0xff] }
 0x459   : > { %v3669_v48 = vpop.f32.mrf.mxu1 }
 0x45a   : > { %v3791_v45 = vpop.f32.mrf.mxu2  ;;  %v3719_v0 = vadd.f32 %v3669_v48, %v8226_v36  ;;  %v8229_v48 = vld [vmem:[#allocation11_spill] sm:$0xff] }
 0x45b   : > { %v7543_v59 = vadd.f32 %v3791_v45, %v3717_v61 }
 0x45c   : > { %5002 = vmatmul.msk.f32.gmra.mxu1 %vm2996_vm2, %v8222_v63 }
 0x45f   : > { %5026 = vmatmul.msk.f32.gmra.mxu2 %vm2996_vm2, %v8223_v13 }
 0x461   : > { %v3672_v52 = vpop.f32.mrf.mxu1 }
 0x462   : > { %v3794_v51 = vpop.f32.mrf.mxu2  ;;  %v3720_v13 = vadd.f32 %v3672_v52, %v8227_v47  ;;  %v8232_v52 = vld [vmem:[#allocation45_spill] sm:$0xff] }
 0x463   : > { %v7550_v55 = vadd.f32 %v3794_v51, %v3718_v33  ;;  %v8228_v51 = vld [vmem:[#allocation7_spill] sm:$0xff] }
 0x464   : > { %5003 = vmatmul.msk.f32.gmra.mxu1 %vm2996_vm2, %v8179_v3 }
 0x467   : > { %5027 = vmatmul.msk.f32.gmra.mxu2 %vm2996_vm2, %v8225_v34  ;;  %v8230_v34 = vld [vmem:[#allocation105_spill] sm:$0xff] }
 0x469   : > { %v3675_v61 = vpop.f32.mrf.mxu1 }
 0x46a   : > { %v3797_v45 = vpop.f32.mrf.mxu2  ;;  %v3721_v36 = vadd.f32 %v3675_v61, %v8230_v34  ;;  %v8233_v61 = vld [vmem:[#allocation49_spill] sm:$0xff] }
 0x46b   : > { %v7557_v63 = vadd.f32 %v3797_v45, %v3719_v0 }
 0x46c   : > { %5004 = vmatmul.msk.f32.gmra.mxu1 %vm2996_vm2, %v8187_v46 }
 0x46f   : > { %5028 = vmatmul.msk.f32.gmra.mxu2 %vm2996_vm2, %v8180_v58  ;;  %v8231_v58 = vld [vmem:[#allocation93_spill] sm:$0xff] }
 0x471   : > { %v3678_v53 = vpop.f32.mrf.mxu1 }
 0x472   : > { %v3800_v33 = vpop.f32.mrf.mxu2  ;;  %v3722_v47 = vadd.f32 %v3678_v53, %v8232_v52  ;;  %v8234_v53 = vld [vmem:[#allocation102_spill] sm:$0xff] }
 0x473   : > { %v7564_v3 = vadd.f32 %v3800_v33, %v3720_v13 }
 0x474   : > { %5005 = vmatmul.msk.f32.gmra.mxu1 %vm2996_vm2, %v8228_v51 }
 0x477   : > { %5029 = vmatmul.msk.f32.gmra.mxu2 %vm2996_vm2, %v8229_v48 }
 0x479   : > { %v3681_v0 = vpop.f32.mrf.mxu1 }
 0x47a   : > { %v3803_v45 = vpop.f32.mrf.mxu2  ;;  %v3723_v48 = vadd.f32 %v3681_v0, %v8233_v61 }
 0x47b   : > { %v7571_v46 = vadd.f32 %v3803_v45, %v3721_v36 }
 0x47c   : > { %5006 = vmatmul.msk.f32.gmra.mxu1 %vm2996_vm2, %v8202_v11 }
 0x47f   : > { %5030 = vmatmul.msk.f32.gmra.mxu2 %vm2996_vm2, %v8231_v58 }
 0x481   : > { %v3684_v13 = vpop.f32.mrf.mxu1 }
 0x482   : > { %v3806_v33 = vpop.f32.mrf.mxu2  ;;  %v3724_v45 = vadd.f32 %v3684_v13, %v8234_v53 }
 0x483   : > { %v7578_v51 = vadd.f32 %v3806_v33, %v3722_v47  ;;  %v3891_v33 = vpop.f32.mrf.mxu3 }
 0x484   : > { %5007 = vmatmul.msk.f32.gmra.mxu1 %vm2996_vm2, %v8207_v5 }
 0x487   : > { %5031 = vmatmul.msk.f32.gmra.mxu2 %vm2996_vm2, %v8203_v12 }
 0x489   : > { %v3687_v34 = vpop.f32.mrf.mxu1 }
 0x48a   : > { %v3809_v36 = vpop.f32.mrf.mxu2  ;;  %v3725_v12 = vadd.f32 %v3687_v34, %v7356_v17 }
 0x48b   : > { %v7585_v11 = vadd.f32 %v3809_v36, %v3723_v48  ;;  %v3894_v17 = vpop.f32.mrf.mxu3 }
 0x48c   : > { %5008 = vmatmul.msk.f32.gmra.mxu1 %vm2996_vm2, %v8210_v26 }
 0x48f   : > { %5032 = vmatmul.msk.f32.gmra.mxu2 %vm2996_vm2, %v8208_v9  ;;  %v4014_v9 = vpop.f32.mrf.mxu0 }
 0x491   : > { %v3690_v58 = vpop.f32.mrf.mxu1 }
 0x492   : > { %v3812_v52 = vpop.f32.mrf.mxu2  ;;  %v3726_v13 = vadd.f32 %v3690_v58, %v7372_v8 }
 0x493   : > { %v7592_v5 = vadd.f32 %v3812_v52, %v3724_v45  ;;  %v3897_v8 = vpop.f32.mrf.mxu3 }
 0x494   : > { %5009 = vmatmul.msk.f32.gmra.mxu1 %vm2996_vm2, %v8214_v23 }
 0x497   : > { %5033 = vmatmul.msk.f32.gmra.mxu2 %vm2996_vm2, %v8211_v10  ;;  %v4017_v10 = vpop.f32.mrf.mxu0 }
 0x499   : > { %v3693_v0 = vpop.f32.mrf.mxu1 }
 0x49a   : > { %v3815_v47 = vpop.f32.mrf.mxu2 }
 0x49b   : > { %v7599_v26 = vadd.f32 %v3815_v47, %v3725_v12  ;;  %v3900_v12 = vpop.f32.mrf.mxu3 }
 0x49c   : > { %5010 = vmatmul.msk.f32.gmra.mxu1 %vm2996_vm2, %v8216_v20  ;;  %v3727_v20 = vadd.f32 %v3693_v0, %v7385_v35 }
 0x49f   : > { %5034 = vmatmul.msk.f32.gmra.mxu2 %vm2996_vm2, %v8215_v32  ;;  %v8235_v32 = vld [vmem:[#allocation26_spill] sm:$0xff]  ;;  %v4020_v52 = vpop.f32.mrf.mxu0 }
 0x4a1   : > { %v3696_v23 = vpop.f32.mrf.mxu1 }
 0x4a2   : > { %v3818_v61 = vpop.f32.mrf.mxu2 }
 0x4a3   : > { %v7606_v48 = vadd.f32 %v3818_v61, %v3726_v13 }
 0x4a4   : > { %5011 = vmatmul.msk.f32.gmra.mxu1 %vm2996_vm2, %v7053_v21  ;;  %v3728_v21 = vadd.f32 %v3696_v23, %v8235_v32 }
 0x4a7   : > { %5035 = vmatmul.msk.f32.gmra.mxu2 %vm2996_vm2, %v8217_v15  ;;  %v4023_v47 = vpop.f32.mrf.mxu0 }
 0x4a9   : > { %v3699_v34 = vpop.f32.mrf.mxu1 }
 0x4aa   : > { %v3821_v36 = vpop.f32.mrf.mxu2  ;;  %v3729_v35 = vadd.f32 %v3699_v34, %v7409_v2  ;;  %v3903_v2 = vpop.f32.mrf.mxu3 }
 0x4ab   : > { %v7613_v53 = vadd.f32 %v3821_v36, %v3727_v20 }
 0x4ac   : > { %5012 = vmatmul.msk.f32.gmra.mxu1 %vm2996_vm2, %v7083_v41 }
 0x4af   : > { %5036 = vmatmul.msk.f32.gmra.mxu2 %vm2996_vm2, %v7056_v54  ;;  %v7638_v61 = vpop.f32.mrf.mxu0 }
 0x4b1   : > { %v3702_v45 = vpop.f32.mrf.mxu1 }
 0x4b2   : > { %v3824_v58 = vpop.f32.mrf.mxu2  ;;  %v7650_v36 = vpop.f32.mrf.mxu3 }
 0x4b3   : > { %v7620_v15 = vadd.f32 %v3824_v58, %v3728_v21 }
 0x4b4   : > { %5013 = vmatmul.msk.f32.gmra.mxu1 %vm2996_vm2, %v7114_v19  ;;  %v3730_v19 = vadd.f32 %v3702_v45, %v7418_v43  ;;  %v3963_v43 = vadd.f32 %v3891_v33, %v7434_v50  ;;  %v3964_v50 = vadd.f32 %v3894_v17, %v7443_v31 }
 0x4b7   : > { %5037 = vmatmul.msk.f32.gmra.mxu2 %vm2996_vm2, %v7086_v14 }
 0x4b9   : > { %v3705_v41 = vpop.f32.mrf.mxu1 }
 0x4ba   : > { %v3827_v54 = vpop.f32.mrf.mxu2 }
 0x4bb   : > { %v7627_v0 = vadd.f32 %v3827_v54, %v3729_v35  ;;  %v3965_v35 = vadd.f32 %v3897_v8, %v7452_v49  ;;  %v8237_v54 = vld [vmem:[#allocation106_spill] sm:$0xff]  ;;  %v8238_v8 = vld [vmem:[#allocation96_spill] sm:$0xff] }
 0x4bc   : > { %5014 = vmatmul.msk.f32.gmra.mxu1 %vm2996_vm2, %v7146_v28  ;;  %v3731_v28 = vadd.f32 %v3705_v41, %v7427_v1 }
 0x4bf   : > { %5038 = vmatmul.msk.f32.gmra.mxu2 %vm2996_vm2, %v7117_v22 }
 0x4c1   : > { %v4142_v13 = vpop.f32.mrf.mxu1 }
 0x4c2   : > { %v3830_v14 = vpop.f32.mrf.mxu2 }
 0x4c3   : > { %v7634_v23 = vadd.f32 %v3830_v14, %v3730_v19 }
 0x4c4   : > { %5015 = vmatmul.msk.f32.gmra.mxu1 %vm2996_vm2, %v7169_v57  ;;  %v4086_v57 = vadd.f32 %v4014_v9, %v3963_v43  ;;  %v7668_v9 = vpop.f32.mrf.mxu3 }
 0x4c6   : > { %v4214_v1 = vadd.f32 %v4142_v13, %v4086_v57  ;;  %v4088_v13 = vadd.f32 %v4020_v52, %v3965_v35  ;;  %v8239_v57 = vld [vmem:[#allocation73_spill] sm:$0xff] }
 0x4c7   : > { %5039 = vmatmul.msk.f32.gmra.mxu2 %vm2996_vm2, %v7149_v42  ;;  %v7654_v42 = vpop.f32.mrf.mxu0 }
 0x4c9   : > { %v4145_v20 = vpop.f32.mrf.mxu1 }
 0x4ca   : > { %v3833_v22 = vpop.f32.mrf.mxu2 }
 0x4cb   : > { %v7646_v34 = vadd.f32 %v3833_v22, %v3731_v28 }
 0x4cc   : > { %5016 = vmatmul.msk.f32.gmra.mxu1 %vm2996_vm2, %v7192_v4  ;;  %v4087_v4 = vadd.f32 %v4017_v10, %v3964_v50  ;;  %v8236_v10 = vld [vmem:[#allocation32_spill] sm:$0xff]  ;;  %v7681_v28 = vpop.f32.mrf.mxu3 }
 0x4cd   : > { %v1662_v19 = vadd.f32 %v8237_v54, %v8236_v10  ;;  %v8241_v50 = vld [vmem:[#allocation100_spill] sm:$0xff] }
 0x4ce   : > { %v4215_v31 = vadd.f32 %v4145_v20, %v4087_v4 }
 0x4cf   : > { %5040 = vmatmul.msk.f32.gmra.mxu2 %vm2996_vm2, %v7172_v6  ;;  %v7670_v58 = vpop.f32.mrf.mxu0  ;;  %v1932_v20 = vadd.f32 %v8238_v8, %v1662_v19  ;;  %v2958_v19 = vpop.permute.xlu0 %2957 }
 0x4d1   : > { %v4148_v32 = vpop.f32.mrf.mxu1 }
 0x4d2   : > { %v4269_v21 = vpop.f32.mrf.mxu2 }
 0x4d3   : > { %v4341_v33 = vadd.f32 %v4269_v21, %v4214_v1  ;;  %v2202_v1 = vadd.f32 %v8239_v57, %v1932_v20 }
 0x4d4   : > { %5017 = vmatmul.msk.f32.gmra.mxu1 %vm2996_vm2, %v7479_v18  ;;  %v3915_v35 = vpop.f32.mrf.mxu3 }
 0x4d5   : > { %v4365_v6 = vmax.f32 %v4341_v33, 0.0 }
 0x4d7   : > { %4389 = vst.msk [vmem:[%s7660_s13] sm:$0xff] %vm2996_vm2, %v4365_v6  ;;  %5041 = vmatmul.msk.f32.gmra.mxu2 %vm2996_vm2, %v7197_v25  ;;  %v4216_v25 = vadd.f32 %v4148_v32, %v4088_v13  ;;  %v7687_v43 = vpop.f32.mrf.mxu0 }
 0x4d9   : > { %v4151_v17 = vpop.f32.mrf.mxu1 }
 0x4da   : > { %v4272_v45 = vpop.f32.mrf.mxu2 }
 0x4db   : > { %v4342_v41 = vadd.f32 %v4272_v45, %v4215_v31  ;;  %v3967_v31 = vadd.f32 %v3903_v2, %v7472_v27 }
 0x4dc   : > { %5018 = vmatmul.msk.f32.gmra.mxu1 %vm2996_vm2, %v7498_v56  ;;  %v3966_v56 = vadd.f32 %v3900_v12, %v7461_v39  ;;  %v2472_v39 = vadd.f32 %v8241_v50, %v2202_v1 }
 0x4dd   : > { %v4366_v18 = vmax.f32 %v4342_v41, 0.0  ;;  %v4090_v10 = vadd.f32 %v7638_v61, %v3967_v31 }
 0x4de   : > { %v4089_v21 = vadd.f32 %v4023_v47, %v3966_v56 }
 0x4df   : > { %4390 = vst.msk [vmem:[%s7660_s13 + $0x8] sm:$0xff] %vm2996_vm2, %v4366_v18  ;;  %5042 = vmatmul.msk.f32.gmra.mxu2 %vm2996_vm2, %v7484_v37  ;;  %v8240_v37 = vld [vmem:[#allocation75_spill] sm:$0xff]  ;;  %v4038_v18 = vpop.f32.mrf.mxu0 }
 0x4e0   : > { %v4113_v32 = vrot.slane %v8240_v37, 1  ;;  %v4217_v12 = vadd.f32 %v4151_v17, %v4089_v21  ;;  %v8243_v17 = vld [vmem:[#allocation80_spill] sm:$0xff]  ;;  %v4240_v13 = vrot.slane %v8240_v37, 2  ;;  %v3969_v21 = vadd.f32 %v7668_v9, %v7510_v62 }
 0x4e1   : > { %v4154_v14 = vpop.f32.mrf.mxu1  ;;  %v4115_v27 = vrot.slane %v8243_v17, 1  ;;  %v4242_v1 = vrot.slane %v8243_v17, 2 }
 0x4e2   : > { %v4275_v49 = vpop.f32.mrf.mxu2  ;;  %v4114_v47 = vsel %vm3185_vm3, %v3739_v30, %v4113_v32  ;;  %v4218_v2 = vadd.f32 %v4154_v14, %v4090_v10  ;;  %v4241_v14 = vsel %vm3398_vm4, %v3866_v60, %v4240_v13  ;;  %v3971_v10 = vadd.f32 %v3915_v35, %v7536_v44 }
 0x4e3   : > { %v4343_v22 = vadd.f32 %v4275_v49, %v4216_v25  ;;  %v3968_v49 = vadd.f32 %v7650_v36, %v7493_v40  ;;  %v4116_v61 = vsel %vm3185_vm3, %v4113_v32, %v4115_v27  ;;  %v4092_v32 = vadd.f32 %v7670_v58, %v3969_v21 }
 0x4e4   : > { %5019 = vmatmul.msk.f32.gmra.mxu1 %vm2996_vm2, %v7517_v7  ;;  %v8242_v7 = vld [vmem:[#allocation108_spill] sm:$0xff] }
 0x4e5   : > { %v4367_v52 = vmax.f32 %v4343_v22, 0.0  ;;  %v2742_v4 = vadd.f32 %v8242_v7, %v2472_v39  ;;  %v4091_v22 = vadd.f32 %v7654_v42, %v3968_v49  ;;  %v4243_v42 = vsel %vm3398_vm4, %v4240_v13, %v4242_v1 }
 0x4e7   : > { %4391 = vst.msk [vmem:[%s7660_s13 + $0x10] sm:$0xff] %vm2996_vm2, %v4367_v52  ;;  %5043 = vmatmul.msk.f32.gmra.mxu2 %vm2996_vm2, %v7501_v24  ;;  %v2773_v41 = vmax.f32 %v2742_v4, 0.0  ;;  %v4041_v40 = vpop.f32.mrf.mxu0 }
 0x4e9   : > { %v4157_v33 = vpop.f32.mrf.mxu1  ;;  %v2990_v25 = vmul.f32 %v2958_v19, %v2773_v41 }
 0x4ea   : > { %v4278_v6 = vpop.f32.mrf.mxu2  ;;  %v4219_v36 = vadd.f32 %v4157_v33, %v4091_v22 }
 0x4eb   : > { %v4344_v45 = vadd.f32 %v4278_v6, %v4217_v12  ;;  %v4117_v56 = vrot.slane %v2990_v25, 1  ;;  %v4244_v33 = vrot.slane %v2990_v25, 2  ;;  %v3970_v6 = vadd.f32 %v7681_v28, %v7529_v16 }
 0x4ec   : > { %5020 = vmatmul.msk.f32.gmra.mxu1 %vm2996_vm2, %v4114_v47 }
 0x4ed   : > { %v4368_v24 = vmax.f32 %v4344_v45, 0.0  ;;  %v4118_v60 = vsel %vm3185_vm3, %v4115_v27, %v4117_v56  ;;  %v4245_v31 = vsel %vm3398_vm4, %v4242_v1, %v4244_v33  ;;  %v4093_v58 = vadd.f32 %v7687_v43, %v3970_v6 }
 0x4ee   : > { %v4094_v27 = vadd.f32 %v4038_v18, %v3971_v10 }
 0x4ef   : > { %4392 = vst.msk [vmem:[%s7660_s13 + $0x18] sm:$0xff] %vm2996_vm2, %v4368_v24  ;;  %5044 = vmatmul.msk.f32.gmra.mxu2 %vm2996_vm2, %v7522_v29  ;;  %v3918_v29 = vpop.f32.mrf.mxu3  ;;  %v4044_v9 = vpop.f32.mrf.mxu0 }
 0x4f0   : > { %v3972_v19 = vadd.f32 %v3918_v29, %v7543_v59 }
 0x4f1   : > { %v4160_v54 = vpop.f32.mrf.mxu1 }
 0x4f2   : > { %v4281_v30 = vpop.f32.mrf.mxu2  ;;  %v4220_v39 = vadd.f32 %v4160_v54, %v4092_v32 }
 0x4f3   : > { %v4345_v8 = vadd.f32 %v4281_v30, %v4218_v2 }
 0x4f4   : > { %5021 = vmatmul.msk.f32.gmra.mxu1 %vm2996_vm2, %v4116_v61 }
 0x4f5   : > { %v4369_v20 = vmax.f32 %v4345_v8, 0.0  ;;  %v4095_v8 = vadd.f32 %v4041_v40, %v3972_v19 }
 0x4f7   : > { %4393 = vst.msk [vmem:[%s7660_s13 + $0x20] sm:$0xff] %vm2996_vm2, %v4369_v20  ;;  %5045 = vmatmul.msk.f32.gmra.mxu2 %vm2996_vm2, %v4241_v14  ;;  %v3921_v50 = vpop.f32.mrf.mxu3  ;;  %v4047_v16 = vpop.f32.mrf.mxu0 }
 0x4f8   : > { %v3973_v18 = vadd.f32 %v3921_v50, %v7550_v55 }
 0x4f9   : > { %v4163_v52 = vpop.f32.mrf.mxu1 }
 0x4fa   : > { %v4284_v57 = vpop.f32.mrf.mxu2  ;;  %v4221_v45 = vadd.f32 %v4163_v52, %v4093_v58  ;;  %v4096_v22 = vadd.f32 %v4044_v9, %v3973_v18 }
 0x4fb   : > { %v4346_v38 = vadd.f32 %v4284_v57, %v4219_v36 }
 0x4fc   : > { %5022 = vmatmul.msk.f32.gmra.mxu1 %vm2996_vm2, %v4118_v60 }
 0x4fd   : > { %v4370_v37 = vmax.f32 %v4346_v38, 0.0 }
 0x4ff   : > { %4394 = vst.msk [vmem:[%s7660_s13 + $0x28] sm:$0xff] %vm2996_vm2, %v4370_v37  ;;  %5046 = vmatmul.msk.f32.gmra.mxu2 %vm2996_vm2, %v4243_v42  ;;  %v3924_v24 = vpop.f32.mrf.mxu3  ;;  %v4050_v49 = vpop.f32.mrf.mxu0 }
 0x500   : > { %v3974_v40 = vadd.f32 %v3924_v24, %v7557_v63 }
 0x501   : > { %v4166_v12 = vpop.f32.mrf.mxu1 }
 0x502   : > { %v4287_v62 = vpop.f32.mrf.mxu2  ;;  %v4222_v2 = vadd.f32 %v4166_v12, %v4094_v27  ;;  %v4097_v21 = vadd.f32 %v4047_v16, %v3974_v40 }
 0x503   : > { %v4347_v7 = vadd.f32 %v4287_v62, %v4220_v39 }
 0x505   : > { %v4371_v4 = vmax.f32 %v4347_v7, 0.0 }
 0x507   : > { %4395 = vst.msk [vmem:[%s7660_s13 + $0x30] sm:$0xff] %vm2996_vm2, %v4371_v4  ;;  %5047 = vmatmul.msk.f32.gmra.mxu2 %vm2996_vm2, %v4245_v31  ;;  %v3927_v13 = vpop.f32.mrf.mxu3  ;;  %v4053_v59 = vpop.f32.mrf.mxu0 }
 0x508   : > { %v3975_v32 = vadd.f32 %v3927_v13, %v7564_v3 }
 0x509   : > { %v4169_v47 = vpop.f32.mrf.mxu1 }
 0x50a   : > { %v4290_v41 = vpop.f32.mrf.mxu2  ;;  %v4223_v44 = vadd.f32 %v4169_v47, %v4095_v8  ;;  %v4098_v12 = vadd.f32 %v4050_v49, %v3975_v32 }
 0x50b   : > { %v4348_v17 = vadd.f32 %v4290_v41, %v4221_v45 }
 0x50d   : > { %v4372_v28 = vmax.f32 %v4348_v17, 0.0 }
 0x50f   : > { %4396 = vst.msk [vmem:[%s7660_s13 + $0x38] sm:$0xff] %vm2996_vm2, %v4372_v28  ;;  %v3930_v56 = vpop.f32.mrf.mxu3  ;;  %v4056_v42 = vpop.f32.mrf.mxu0 }
 0x510   : > { %v3976_v6 = vadd.f32 %v3930_v56, %v7571_v46 }
 0x511   : > { %v4172_v54 = vpop.f32.mrf.mxu1 }
 0x512   : > { %v4293_v43 = vpop.f32.mrf.mxu2  ;;  %v4224_v29 = vadd.f32 %v4172_v54, %v4096_v22  ;;  %v4099_v58 = vadd.f32 %v4053_v59, %v3976_v6 }
 0x513   : > { %v4349_v30 = vadd.f32 %v4293_v43, %v4222_v2 }
 0x515   : > { %v4373_v25 = vmax.f32 %v4349_v30, 0.0 }
 0x517   : > { %4397 = vst.msk [vmem:[%s7660_s13 + $0x40] sm:$0xff] %vm2996_vm2, %v4373_v25  ;;  %v3933_v38 = vpop.f32.mrf.mxu3  ;;  %v4059_v4 = vpop.f32.mrf.mxu0 }
 0x518   : > { %v3977_v24 = vadd.f32 %v3933_v38, %v7578_v51 }
 0x519   : > { %v4175_v35 = vpop.f32.mrf.mxu1 }
 0x51a   : > { %v4296_v61 = vpop.f32.mrf.mxu2  ;;  %v4225_v55 = vadd.f32 %v4175_v35, %v4097_v21  ;;  %v4100_v28 = vadd.f32 %v4056_v42, %v3977_v24 }
 0x51b   : > { %v4350_v20 = vadd.f32 %v4296_v61, %v4223_v44 }
 0x51d   : > { %v4374_v14 = vmax.f32 %v4350_v20, 0.0 }
 0x51f   : > { %4398 = vst.msk [vmem:[%s7660_s13 + $0x48] sm:$0xff] %vm2996_vm2, %v4374_v14  ;;  %v3936_v62 = vpop.f32.mrf.mxu3  ;;  %v4062_v16 = vpop.f32.mrf.mxu0 }
 0x520   : > { %v3978_v54 = vadd.f32 %v3936_v62, %v7585_v11 }
 0x521   : > { %v4178_v36 = vpop.f32.mrf.mxu1 }
 0x522   : > { %v4299_v52 = vpop.f32.mrf.mxu2  ;;  %v4226_v33 = vadd.f32 %v4178_v36, %v4098_v12  ;;  %v4101_v13 = vadd.f32 %v4059_v4, %v3978_v54 }
 0x523   : > { %v4351_v57 = vadd.f32 %v4299_v52, %v4224_v29 }
 0x525   : > { %v4375_v1 = vmax.f32 %v4351_v57, 0.0 }
 0x527   : > { %4399 = vst.msk [vmem:[%s7660_s13 + $0x50] sm:$0xff] %vm2996_vm2, %v4375_v1  ;;  %v3939_v10 = vpop.f32.mrf.mxu3  ;;  %v4065_v51 = vpop.f32.mrf.mxu0 }
 0x528   : > { %v3979_v44 = vadd.f32 %v3939_v10, %v7592_v5 }
 0x529   : > { %v4181_v60 = vpop.f32.mrf.mxu1 }
 0x52a   : > { %v4302_v37 = vpop.f32.mrf.mxu2  ;;  %v4227_v45 = vadd.f32 %v4181_v60, %v4099_v58  ;;  %v4102_v18 = vadd.f32 %v4062_v16, %v3979_v44 }
 0x52b   : > { %v4352_v50 = vadd.f32 %v4302_v37, %v4225_v55 }
 0x52d   : > { %v4376_v39 = vmax.f32 %v4352_v50, 0.0 }
 0x52f   : > { %4400 = vst.msk [vmem:[%s7660_s13 + $0x58] sm:$0xff] %vm2996_vm2, %v4376_v39  ;;  %v3942_v30 = vpop.f32.mrf.mxu3  ;;  %v4068_v56 = vpop.f32.mrf.mxu0 }
 0x530   : > { %v3980_v22 = vadd.f32 %v3942_v30, %v7599_v26 }
 0x531   : > { %v4184_v63 = vpop.f32.mrf.mxu1 }
 0x532   : > { %v4305_v9 = vpop.f32.mrf.mxu2  ;;  %v4228_v46 = vadd.f32 %v4184_v63, %v4100_v28  ;;  %v4103_v52 = vadd.f32 %v4065_v51, %v3980_v22 }
 0x533   : > { %v4353_v7 = vadd.f32 %v4305_v9, %v4226_v33 }
 0x535   : > { %v4377_v31 = vmax.f32 %v4353_v7, 0.0 }
 0x537   : > { %4401 = vst.msk [vmem:[%s7660_s13 + $0x60] sm:$0xff] %vm2996_vm2, %v4377_v31  ;;  %v3945_v20 = vpop.f32.mrf.mxu3  ;;  %v4071_v38 = vpop.f32.mrf.mxu0 }
 0x538   : > { %v3981_v1 = vadd.f32 %v3945_v20, %v7606_v48 }
 0x539   : > { %v4187_v3 = vpop.f32.mrf.mxu1 }
 0x53a   : > { %v4308_v47 = vpop.f32.mrf.mxu2  ;;  %v4229_v25 = vadd.f32 %v4187_v3, %v4101_v13  ;;  %v4104_v37 = vadd.f32 %v4068_v56, %v3981_v1 }
 0x53b   : > { %v4354_v41 = vadd.f32 %v4308_v47, %v4227_v45 }
 0x53d   : > { %v4378_v17 = vmax.f32 %v4354_v41, 0.0 }
 0x53f   : > { %4402 = vst.msk [vmem:[%s7660_s13 + $0x68] sm:$0xff] %vm2996_vm2, %v4378_v17  ;;  %v3948_v5 = vpop.f32.mrf.mxu3  ;;  %v4074_v33 = vpop.f32.mrf.mxu0 }
 0x540   : > { %v3982_v32 = vadd.f32 %v3948_v5, %v7613_v53 }
 0x541   : > { %v4190_v27 = vpop.f32.mrf.mxu1 }
 0x542   : > { %v4311_v2 = vpop.f32.mrf.mxu2  ;;  %v4230_v11 = vadd.f32 %v4190_v27, %v4102_v18  ;;  %v4105_v63 = vadd.f32 %v4071_v38, %v3982_v32 }
 0x543   : > { %v4355_v43 = vadd.f32 %v4311_v2, %v4228_v46 }
 0x545   : > { %v4379_v19 = vmax.f32 %v4355_v43, 0.0 }
 0x547   : > { %4403 = vst.msk [vmem:[%s7660_s13 + $0x70] sm:$0xff] %vm2996_vm2, %v4379_v19  ;;  %v3951_v39 = vpop.f32.mrf.mxu3  ;;  %v4077_v53 = vpop.f32.mrf.mxu0 }
 0x548   : > { %v3983_v6 = vadd.f32 %v3951_v39, %v7620_v15 }
 0x549   : > { %v4193_v49 = vpop.f32.mrf.mxu1 }
 0x54a   : > { %v4314_v8 = vpop.f32.mrf.mxu2  ;;  %v4231_v40 = vadd.f32 %v4193_v49, %v4103_v52  ;;  %v4106_v58 = vadd.f32 %v4074_v33, %v3983_v6 }
 0x54b   : > { %v4356_v35 = vadd.f32 %v4314_v8, %v4229_v25 }
 0x54d   : > { %v4380_v61 = vmax.f32 %v4356_v35, 0.0 }
 0x54f   : > { %4404 = vst.msk [vmem:[%s7660_s13 + $0x78] sm:$0xff] %vm2996_vm2, %v4380_v61  ;;  %v3954_v31 = vpop.f32.mrf.mxu3  ;;  %v4080_v2 = vpop.f32.mrf.mxu0 }
 0x550   : > { %v3984_v24 = vadd.f32 %v3954_v31, %v7627_v0 }
 0x551   : > { %v4196_v29 = vpop.f32.mrf.mxu1 }
 0x552   : > { %v4317_v14 = vpop.f32.mrf.mxu2  ;;  %v4232_v26 = vadd.f32 %v4196_v29, %v4104_v37  ;;  %v4107_v17 = vadd.f32 %v4077_v53, %v3984_v24 }
 0x553   : > { %v4357_v59 = vadd.f32 %v4317_v14, %v4230_v11 }
 0x555   : > { %v4381_v36 = vmax.f32 %v4357_v59, 0.0 }
 0x557   : > { %4405 = vst.msk [vmem:[%s7660_s13 + $0x80] sm:$0xff] %vm2996_vm2, %v4381_v36  ;;  %v3957_v16 = vpop.f32.mrf.mxu3  ;;  %v4083_v8 = vpop.f32.mrf.mxu0 }
 0x558   : > { %v3985_v46 = vadd.f32 %v3957_v16, %v7634_v23 }
 0x559   : > { %v4199_v60 = vpop.f32.mrf.mxu1 }
 0x55a   : > { %v4320_v57 = vpop.f32.mrf.mxu2  ;;  %v4233_v62 = vadd.f32 %v4199_v60, %v4105_v63  ;;  %v4108_v19 = vadd.f32 %v4080_v2, %v3985_v46 }
 0x55b   : > { %v4358_v21 = vadd.f32 %v4320_v57, %v4231_v40 }
 0x55d   : > { %v4382_v55 = vmax.f32 %v4358_v21, 0.0 }
 0x55f   : > { %4406 = vst.msk [vmem:[%s7660_s13 + $0x88] sm:$0xff] %vm2996_vm2, %v4382_v55  ;;  %v3960_v30 = vpop.f32.mrf.mxu3 }
 0x560   : > { %v3986_v51 = vadd.f32 %v3960_v30, %v7646_v34 }
 0x561   : > { %v4202_v48 = vpop.f32.mrf.mxu1 }
 0x562   : > { %v4323_v42 = vpop.f32.mrf.mxu2  ;;  %v4234_v45 = vadd.f32 %v4202_v48, %v4106_v58  ;;  %v4109_v35 = vadd.f32 %v4083_v8, %v3986_v51 }
 0x563   : > { %v4359_v50 = vadd.f32 %v4323_v42, %v4232_v26 }
 0x565   : > { %v4383_v12 = vmax.f32 %v4359_v50, 0.0 }
 0x567   : > { %4407 = vst.msk [vmem:[%s7660_s13 + $0x90] sm:$0xff] %vm2996_vm2, %v4383_v12 }
 0x569   : > { %v4205_v3 = vpop.f32.mrf.mxu1 }
 0x56a   : > { %v4326_v9 = vpop.f32.mrf.mxu2  ;;  %v4235_v15 = vadd.f32 %v4205_v3, %v4107_v17 }
 0x56b   : > { %v4360_v7 = vadd.f32 %v4326_v9, %v4233_v62 }
 0x56d   : > { %v4384_v4 = vmax.f32 %v4360_v7, 0.0 }
 0x56f   : > { %4408 = vst.msk [vmem:[%s7660_s13 + $0x98] sm:$0xff] %vm2996_vm2, %v4384_v4 }
 0x571   : > { %v4208_v54 = vpop.f32.mrf.mxu1 }
 0x572   : > { %v4329_v47 = vpop.f32.mrf.mxu2  ;;  %v4236_v0 = vadd.f32 %v4208_v54, %v4108_v19 }
 0x573   : > { %v4361_v41 = vadd.f32 %v4329_v47, %v4234_v45 }
 0x575   : > { %v4385_v10 = vmax.f32 %v4361_v41, 0.0 }
 0x577   : > { %4409 = vst.msk [vmem:[%s7660_s13 + $0xa0] sm:$0xff] %vm2996_vm2, %v4385_v10 }
 0x579   : > { %v4211_v44 = vpop.f32.mrf.mxu1 }
 0x57a   : > { %v4332_v28 = vpop.f32.mrf.mxu2  ;;  %v4237_v23 = vadd.f32 %v4211_v44, %v4109_v35 }
 0x57b   : > { %v4362_v27 = vadd.f32 %v4332_v28, %v4235_v15 }
 0x57d   : > { %v4386_v43 = vmax.f32 %v4362_v27, 0.0 }
 0x57f   : > { %4410 = vst.msk [vmem:[%s7660_s13 + $0xa8] sm:$0xff] %vm2996_vm2, %v4386_v43 }
 0x582   : > { %v4335_v13 = vpop.f32.mrf.mxu2 }
 0x583   : > { %v4363_v25 = vadd.f32 %v4335_v13, %v4236_v0 }
 0x585   : > { %v4387_v49 = vmax.f32 %v4363_v25, 0.0 }
 0x587   : > { %4411 = vst.msk [vmem:[%s7660_s13 + $0xb0] sm:$0xff] %vm2996_vm2, %v4387_v49 }
 0x58a   : > { %v4338_v61 = vpop.f32.mrf.mxu2 }
 0x58b   : > { %v4364_v18 = vadd.f32 %v4338_v61, %v4237_v23 }
 0x58d   : > { %v4388_v20 = vmax.f32 %v4364_v18, 0.0 }
 0x58f   : > { %4412 = vst.msk [vmem:[%s7660_s13 + $0xb8] sm:$0xff] %vm2996_vm2, %v4388_v20 }
 0x590 PF: > { %s16_s25 = sadd.s32 1, %s5144_s25   ;;  %s8244_s21 = smov %s5136_s23 }
 0x591   : > { %p13_p7 = scmp.ge.s32.totalorder %s16_s25, 6   ;;  %s8245_s22 = smov %s5140_s24 }
 0x592   : > { %s8246_s23 = smov %s8249_s26  ;;  %s8247_s24 = smov %s8253_s27 }
 0x593   :  { %15 = sbr.rel (!%p13_p7) target bundleno = 3 (0x3), region = 93 }

</bundles_post_ra>
